<compile_context>
chip_gen: v6e
topology: v6e:2x2x1
jax: 0.10.0
libtpu: 0.0.40
codegen_flags: <defaults>
</compile_context>

<pallas_src>
import functools

import jax
import jax.numpy as jnp
from jax.experimental import pallas as pl
from jax.experimental.pallas import tpu as pltpu

EPS = 1e-5          # BatchNorm eps (PyTorch default)
NEG_SLOPE = 0.2     # LeakyReLU slope
LANE = 128
VMEM_LIMIT = 48 * 1024 * 1024


def _round_up(v, m):
    return ((v + m - 1) // m) * m


def _choose_tm(m, preferred):
    """Largest row tile <= preferred that covers m (multiple of 8)."""
    return min(preferred, _round_up(max(m, 1), 8))


# ----------------------------------------------------------------------------
# Pallas kernels
# ----------------------------------------------------------------------------
def conv_kernel(p_ref, w_ref, y_ref, *stat_refs, act, need_stats):
    """y = patches @ W (bf16 in, f32 acc). Optionally emits per-tile partial
    column sums / sums-of-squares (for BatchNorm) and/or a fused activation."""
    y = jnp.dot(p_ref[...], w_ref[...], preferred_element_type=jnp.float32)

    if need_stats:
        sum_ref, ssq_ref = stat_refs
        # Sublane-grouped partial reduction: (tm, N) -> (tm//8, 8, N) -> (8, N).
        ps = y.reshape(-1, 8, y.shape[-1])
        sum_ref[...] = jnp.sum(ps, axis=0)
        ssq_ref[...] = jnp.sum(ps * ps, axis=0)

    if act == "leaky":
        y = jnp.where(y > 0, y, NEG_SLOPE * y)
    elif act == "sigmoid":
        y = jax.nn.sigmoid(y)
    y_ref[...] = y.astype(y_ref.dtype)


def bn_leaky_kernel(y_ref, scale_ref, shift_ref, o_ref):
    """out = LeakyReLU(y * scale[c] + shift[c]); written in place (aliased)."""
    y = y_ref[...] * scale_ref[...] + shift_ref[...]
    o_ref[...] = jnp.where(y > 0, y, NEG_SLOPE * y)


# ----------------------------------------------------------------------------
# Pallas wrappers
# ----------------------------------------------------------------------------
def conv_matmul_pallas(patches, w_mat, *, act, need_stats, tm):
    """patches: (M, K) bf16, w_mat: (K, Np) bf16 (Np multiple of 128).
    Returns padded y (Mp, Np) [+ per-tile partial sum/sumsq if need_stats]."""
    M, K = patches.shape
    Np = w_mat.shape[1]
    Mp = _round_up(M, tm)
    if Mp != M:
        patches = jnp.pad(patches, ((0, Mp - M), (0, 0)))
    grid = Mp // tm

    # bf16 output only where it feeds the next im2col directly (layer 1).
    y_dtype = jnp.bfloat16 if act == "leaky" else jnp.float32
    y_shape = jax.ShapeDtypeStruct((Mp, Np), y_dtype)
    y_spec = pl.BlockSpec((tm, Np), lambda i: (i, 0))

    if need_stats:
        out_shape = (
            y_shape,
            jax.ShapeDtypeStruct((8 * grid, Np), jnp.float32),
            jax.ShapeDtypeStruct((8 * grid, Np), jnp.float32),
        )
        out_specs = (
            y_spec,
            pl.BlockSpec((8, Np), lambda i: (i, 0)),
            pl.BlockSpec((8, Np), lambda i: (i, 0)),
        )
    else:
        out_shape = y_shape
        out_specs = y_spec

    return pl.pallas_call(
        functools.partial(conv_kernel, act=act, need_stats=need_stats),
        out_shape=out_shape,
        grid_spec=pltpu.PrefetchScalarGridSpec(
            num_scalar_prefetch=0,
            grid=(grid,),
            in_specs=[
                pl.BlockSpec((tm, K), lambda i: (i, 0)),
                pl.BlockSpec((K, Np), lambda i: (0, 0)),
            ],
            out_specs=out_specs,
        ),
        compiler_params=pltpu.CompilerParams(
            dimension_semantics=("parallel",),
            vmem_limit_bytes=VMEM_LIMIT,
        ),
    )(patches, w_mat)


def bn_leaky_pallas(y, scale, shift, *, tm):
    """y: (Mp, Np) f32 (padded); scale/shift: (Np,). In-place BN + LeakyReLU."""
    Mp, Np = y.shape
    grid = Mp // tm
    return pl.pallas_call(
        bn_leaky_kernel,
        out_shape=jax.ShapeDtypeStruct((Mp, Np), y.dtype),
        grid_spec=pltpu.PrefetchScalarGridSpec(
            num_scalar_prefetch=0,
            grid=(grid,),
            in_specs=[
                pl.BlockSpec((tm, Np), lambda i: (i, 0)),
                pl.BlockSpec((1, Np), lambda i: (0, 0)),
                pl.BlockSpec((1, Np), lambda i: (0, 0)),
            ],
            out_specs=pl.BlockSpec((tm, Np), lambda i: (i, 0)),
        ),
        input_output_aliases={0: 0},
        compiler_params=pltpu.CompilerParams(
            dimension_semantics=("parallel",),
            vmem_limit_bytes=VMEM_LIMIT,
        ),
    )(y, scale.reshape(1, Np), shift.reshape(1, Np))


# ----------------------------------------------------------------------------
# Plain-JAX glue: NHWC im2col + parameters + layer orchestration
# ----------------------------------------------------------------------------
def im2col_nhwc(x, kh, kw, stride, pad):
    """x: (B, H, W, C) -> bf16 patches (B*Ho*Wo, kh*kw*C), ordered (kh, kw, c)."""
    B, H, W, C = x.shape
    x = x.astype(jnp.bfloat16)
    xp = jnp.pad(x, ((0, 0), (pad, pad), (pad, pad), (0, 0)))
    Ho = (H + 2 * pad - kh) // stride + 1
    Wo = (W + 2 * pad - kw) // stride + 1
    cols = []
    for i in range(kh):
        for j in range(kw):
            cols.append(xp[:, i:i + stride * Ho:stride, j:j + stride * Wo:stride, :])
    col = jnp.stack(cols, axis=3)                      # (B, Ho, Wo, kh*kw, C)
    col = col.reshape(B * Ho * Wo, kh * kw * C)
    return col, Ho, Wo


def init_params(key, nc, ndf):
    """DCGAN-style init. Conv weights (C_out, C_in, 4, 4); BN gamma=1, beta=0."""
    keys = jax.random.split(key, 5)
    chans = [(nc, ndf), (ndf, ndf * 2), (ndf * 2, ndf * 4),
             (ndf * 4, ndf * 8), (ndf * 8, 1)]
    params = {}
    for idx, (cin, cout) in enumerate(chans):
        params[f"w{idx + 1}"] = 0.02 * jax.random.normal(
            keys[idx], (cout, cin, 4, 4), jnp.float32)
    for idx, cout in enumerate([ndf * 2, ndf * 4, ndf * 8]):
        params[f"gamma{idx + 2}"] = jnp.ones((cout,), jnp.float32)
        params[f"beta{idx + 2}"] = jnp.zeros((cout,), jnp.float32)
    return params


def prepare_weight_matrices(params):
    """Hoisted out of the forward pass: (C_out, C_in, 4, 4) -> bf16 (K, Np)
    matrices matching the (kh, kw, c) im2col ordering, N padded to 128 lanes."""
    wmats = {}
    for li in range(1, 6):
        w = params[f"w{li}"]
        cout = w.shape[0]
        wm = jnp.transpose(w, (2, 3, 1, 0)).reshape(-1, cout)   # (kh*kw*Cin, Cout)
        np_pad = _round_up(cout, LANE)
        if np_pad != cout:
            wm = jnp.pad(wm, ((0, 0), (0, np_pad - cout)))
        wmats[f"w{li}"] = wm.astype(jnp.bfloat16)
    return wmats


def conv_leaky_layer(x, wmat, n_out, tm_pref):
    B = x.shape[0]
    p, Ho, Wo = im2col_nhwc(x, 4, 4, 2, 1)
    M = B * Ho * Wo
    tm = _choose_tm(M, tm_pref)
    y = conv_matmul_pallas(p, wmat, act="leaky", need_stats=False, tm=tm)
    return y[:M, :n_out].reshape(B, Ho, Wo, n_out)


def conv_bn_leaky_layer(x, wmat, gamma, beta, tm_pref):
    B = x.shape[0]
    n_out = gamma.shape[0]
    np_pad = wmat.shape[1]
    p, Ho, Wo = im2col_nhwc(x, 4, 4, 2, 1)
    M = B * Ho * Wo
    tm = _choose_tm(M, tm_pref)
    y, psum, pssq = conv_matmul_pallas(p, wmat, act="none", need_stats=True, tm=tm)
    # Reduce per-tile partials (padded rows are zero and contribute nothing).
    s = jnp.sum(psum[:, :n_out], axis=0)
    ss = jnp.sum(pssq[:, :n_out], axis=0)
    mean = s / M
    var = jnp.maximum(ss / M - mean * mean, 0.0)   # clamp numerical negatives
    scale = gamma * jax.lax.rsqrt(var + EPS)
    shift = beta - mean * scale
    if np_pad != n_out:
        scale = jnp.pad(scale, (0, np_pad - n_out))
        shift = jnp.pad(shift, (0, np_pad - n_out))
    y = bn_leaky_pallas(y, scale, shift, tm=tm)
    return y[:M, :n_out].reshape(B, Ho, Wo, n_out)


def conv_sigmoid_head(x, wmat):
    B = x.shape[0]
    p, Ho, Wo = im2col_nhwc(x, 4, 4, 1, 0)          # Ho = Wo = 1
    M = B * Ho * Wo
    tm = _choose_tm(M, 256)
    y = conv_matmul_pallas(p, wmat, act="sigmoid", need_stats=False, tm=tm)
    return y[:M, :1].reshape(B, 1, 1, 1)            # NCHW (B, 1, 1, 1)


def discriminator_forward(x_nchw, params, wmats):
    """DiscriminatorCelebA forward (training-mode BatchNorm with batch stats).
    Input NCHW (B, nc, 64, 64) -> (B, 1, 1, 1)."""
    x = jnp.transpose(x_nchw, (0, 2, 3, 1))         # single NCHW -> NHWC transpose
    x = conv_leaky_layer(x, wmats["w1"], params["w1"].shape[0], tm_pref=1024)
    for li, tm_pref in ((2, 512), (3, 512), (4, 256)):
        x = conv_bn_leaky_layer(x, wmats[f"w{li}"], params[f"gamma{li}"],
                                params[f"beta{li}"], tm_pref=tm_pref)
    return conv_sigmoid_head(x, wmats["w5"])


if __name__ == "__main__":
    B, nc, ndf = 2, 3, 8          # small channel counts; 64x64 spatial required
    key = jax.random.PRNGKey(0)
    k_x, k_p = jax.random.split(key)
    x = jax.random.normal(k_x, (B, nc, 64, 64), jnp.float32)
    params = init_params(k_p, nc, ndf)
    wmats = prepare_weight_matrices(params)   # weight prep hoisted out of forward

    fwd = jax.jit(discriminator_forward)
    out = jax.block_until_ready(fwd(x, params, wmats))

    assert out.shape == (B, 1, 1, 1)
    assert bool(jnp.all(jnp.isfinite(out)))
    assert bool(jnp.all((out >= 0.0) & (out <= 1.0)))   # sigmoid range
    print("KERNEL_OK")
</pallas_src>

<mosaic_0001>
module attributes {stable_mosaic.version = 11 : i64} {
  func.func @conv_kernel(%arg0: i32, %arg1: memref<1024x48xbf16, #tpu.memory_space<vmem>>, %arg2: memref<48x128xbf16, #tpu.memory_space<vmem>>, %arg3: memref<1024x128xbf16, #tpu.memory_space<vmem>>) attributes {dimension_semantics = [#tpu.dimension_semantics<parallel>], iteration_bounds = array<i64: 2>, scalar_prefetch = 0 : i64, scratch_operands = 0 : i64, tpu.core_type = #tpu.core_type<tc>, window_params = [{transform_indices = @transform_0, window_bounds = array<i64: 1024, 48>}, {pipeline_mode = #tpu.pipeline_mode<synchronous>, transform_indices = @transform_1, window_bounds = array<i64: 48, 128>}, {transform_indices = @transform_2, window_bounds = array<i64: 1024, 128>}]} {
    %c0 = arith.constant 0 : index
    %c0_0 = arith.constant 0 : index
    %0 = vector.load %arg1[%c0, %c0_0] : memref<1024x48xbf16, #tpu.memory_space<vmem>>, vector<1024x48xbf16>
    %c0_1 = arith.constant 0 : index
    %c0_2 = arith.constant 0 : index
    %1 = vector.load %arg2[%c0_1, %c0_2] : memref<48x128xbf16, #tpu.memory_space<vmem>>, vector<48x128xbf16>
    %cst = arith.constant dense<0.000000e+00> : vector<1024x128xf32>
    %2 = tpu.matmul %0, %1, %cst {dimension_numbers = #tpu.dot_dimension_numbers<[1], [0], [0], [1], [0, 0, 1, 1], [], []>} : vector<1024x48xbf16>, vector<48x128xbf16>, vector<1024x128xf32> -> vector<1024x128xf32>
    %cst_3 = arith.constant 0.000000e+00 : f32
    %3 = vector.broadcast %cst_3 : f32 to vector<1024x128xf32>
    %4 = arith.cmpf ogt, %2, %3 : vector<1024x128xf32>
    %cst_4 = arith.constant 2.000000e-01 : f32
    %5 = vector.broadcast %cst_4 : f32 to vector<1024x128xf32>
    %6 = arith.mulf %5, %2 : vector<1024x128xf32>
    %7 = arith.select %4, %2, %6 : vector<1024x128xi1>, vector<1024x128xf32>
    %8 = arith.truncf %7 : vector<1024x128xf32> to vector<1024x128xbf16>
    %c0_5 = arith.constant 0 : index
    %c0_6 = arith.constant 0 : index
    %9 = vector.load %arg3[%c0_5, %c0_6] : memref<1024x128xbf16, #tpu.memory_space<vmem>>, vector<1024x128xbf16>
    tpu.vector_store %arg3[%c0_5, %c0_6], %8 {strides = array<i32>} : memref<1024x128xbf16, #tpu.memory_space<vmem>>, vector<1024x128xbf16>,
    return
  }
  func.func @transform_0(%arg0: i32) -> (i32, i32) {
    %c0_i32 = arith.constant 0 : i32
    %c0_i32_0 = arith.constant 0 : i32
    return %arg0, %c0_i32 : i32, i32
  }
  func.func @transform_1(%arg0: i32) -> (i32, i32) {
    %c0_i32 = arith.constant 0 : i32
    %c0_i32_0 = arith.constant 0 : i32
    %c0_i32_1 = arith.constant 0 : i32
    return %c0_i32, %c0_i32_0 : i32, i32
  }
  func.func @transform_2(%arg0: i32) -> (i32, i32) {
    %c0_i32 = arith.constant 0 : i32
    %c0_i32_0 = arith.constant 0 : i32
    return %arg0, %c0_i32 : i32, i32
  }
}

module attributes {stable_mosaic.version = 11 : i64} {
  func.func @conv_kernel(%arg0: i32, %arg1: memref<512x128xbf16, #tpu.memory_space<vmem>>, %arg2: memref<128x128xbf16, #tpu.memory_space<vmem>>, %arg3: memref<512x128xf32, #tpu.memory_space<vmem>>, %arg4: memref<8x128xf32, #tpu.memory_space<vmem>>, %arg5: memref<8x128xf32, #tpu.memory_space<vmem>>) attributes {dimension_semantics = [#tpu.dimension_semantics<parallel>], iteration_bounds = array<i64: 1>, scalar_prefetch = 0 : i64, scratch_operands = 0 : i64, tpu.core_type = #tpu.core_type<tc>, window_params = [{transform_indices = @transform_0, window_bounds = array<i64: 512, 128>}, {pipeline_mode = #tpu.pipeline_mode<synchronous>, transform_indices = @transform_1, window_bounds = array<i64: 128, 128>}, {transform_indices = @transform_2, window_bounds = array<i64: 512, 128>}, {transform_indices = @transform_3, window_bounds = array<i64: 8, 128>}, {transform_indices = @transform_4, window_bounds = array<i64: 8, 128>}]} {
    %c0 = arith.constant 0 : index
    %c0_0 = arith.constant 0 : index
    %0 = vector.load %arg1[%c0, %c0_0] : memref<512x128xbf16, #tpu.memory_space<vmem>>, vector<512x128xbf16>
    %c0_1 = arith.constant 0 : index
    %c0_2 = arith.constant 0 : index
    %1 = vector.load %arg2[%c0_1, %c0_2] : memref<128x128xbf16, #tpu.memory_space<vmem>>, vector<128x128xbf16>
    %cst = arith.constant dense<0.000000e+00> : vector<512x128xf32>
    %2 = tpu.matmul %0, %1, %cst {dimension_numbers = #tpu.dot_dimension_numbers<[1], [0], [0], [1], [0, 0, 1, 1], [], []>} : vector<512x128xbf16>, vector<128x128xbf16>, vector<512x128xf32> -> vector<512x128xf32>
    %3 = vector.shape_cast %2 : vector<512x128xf32> to vector<64x8x128xf32>
    %cst_3 = arith.constant dense<0.000000e+00> : vector<8x128xf32>
    %4 = vector.multi_reduction <add>, %3, %cst_3 [0] : vector<64x8x128xf32> to vector<8x128xf32>
    %c0_4 = arith.constant 0 : index
    %c0_5 = arith.constant 0 : index
    %5 = vector.load %arg4[%c0_4, %c0_5] : memref<8x128xf32, #tpu.memory_space<vmem>>, vector<8x128xf32>
    tpu.vector_store %arg4[%c0_4, %c0_5], %4 {strides = array<i32>} : memref<8x128xf32, #tpu.memory_space<vmem>>, vector<8x128xf32>,
    %6 = arith.mulf %3, %3 : vector<64x8x128xf32>
    %cst_6 = arith.constant dense<0.000000e+00> : vector<8x128xf32>
    %7 = vector.multi_reduction <add>, %6, %cst_6 [0] : vector<64x8x128xf32> to vector<8x128xf32>
    %c0_7 = arith.constant 0 : index
    %c0_8 = arith.constant 0 : index
    %8 = vector.load %arg5[%c0_7, %c0_8] : memref<8x128xf32, #tpu.memory_space<vmem>>, vector<8x128xf32>
    tpu.vector_store %arg5[%c0_7, %c0_8], %7 {strides = array<i32>} : memref<8x128xf32, #tpu.memory_space<vmem>>, vector<8x128xf32>,
    %c0_9 = arith.constant 0 : index
    %c0_10 = arith.constant 0 : index
    %9 = vector.load %arg3[%c0_9, %c0_10] : memref<512x128xf32, #tpu.memory_space<vmem>>, vector<512x128xf32>
    tpu.vector_store %arg3[%c0_9, %c0_10], %2 {strides = array<i32>} : memref<512x128xf32, #tpu.memory_space<vmem>>, vector<512x128xf32>,
    return
  }
  func.func @transform_0(%arg0: i32) -> (i32, i32) {
    %c0_i32 = arith.constant 0 : i32
    %c0_i32_0 = arith.constant 0 : i32
    return %arg0, %c0_i32 : i32, i32
  }
  func.func @transform_1(%arg0: i32) -> (i32, i32) {
    %c0_i32 = arith.constant 0 : i32
    %c0_i32_0 = arith.constant 0 : i32
    %c0_i32_1 = arith.constant 0 : i32
    return %c0_i32, %c0_i32_0 : i32, i32
  }
  func.func @transform_2(%arg0: i32) -> (i32, i32) {
    %c0_i32 = arith.constant 0 : i32
    %c0_i32_0 = arith.constant 0 : i32
    return %arg0, %c0_i32 : i32, i32
  }
  func.func @transform_3(%arg0: i32) -> (i32, i32) {
    %c0_i32 = arith.constant 0 : i32
    %c0_i32_0 = arith.constant 0 : i32
    return %arg0, %c0_i32 : i32, i32
  }
  func.func @transform_4(%arg0: i32) -> (i32, i32) {
    %c0_i32 = arith.constant 0 : i32
    %c0_i32_0 = arith.constant 0 : i32
    return %arg0, %c0_i32 : i32, i32
  }
}

module attributes {stable_mosaic.version = 11 : i64} {
  func.func @bn_leaky_kernel(%arg0: i32, %arg1: memref<512x128xf32, #tpu.memory_space<vmem>>, %arg2: memref<1x128xf32, #tpu.memory_space<vmem>>, %arg3: memref<1x128xf32, #tpu.memory_space<vmem>>, %arg4: memref<512x128xf32, #tpu.memory_space<vmem>>) attributes {dimension_semantics = [#tpu.dimension_semantics<parallel>], iteration_bounds = array<i64: 1>, scalar_prefetch = 0 : i64, scratch_operands = 0 : i64, tpu.core_type = #tpu.core_type<tc>, window_params = [{transform_indices = @transform_0, window_bounds = array<i64: 512, 128>}, {pipeline_mode = #tpu.pipeline_mode<synchronous>, transform_indices = @transform_1, window_bounds = array<i64: 1, 128>}, {pipeline_mode = #tpu.pipeline_mode<synchronous>, transform_indices = @transform_2, window_bounds = array<i64: 1, 128>}, {transform_indices = @transform_3, window_bounds = array<i64: 512, 128>}]} {
    %c0 = arith.constant 0 : index
    %c0_0 = arith.constant 0 : index
    %0 = vector.load %arg1[%c0, %c0_0] : memref<512x128xf32, #tpu.memory_space<vmem>>, vector<512x128xf32>
    %c0_1 = arith.constant 0 : index
    %c0_2 = arith.constant 0 : index
    %1 = vector.load %arg2[%c0_1, %c0_2] : memref<1x128xf32, #tpu.memory_space<vmem>>, vector<1x128xf32>
    %2 = vector.broadcast %1 : vector<1x128xf32> to vector<512x128xf32>
    %3 = arith.mulf %0, %2 : vector<512x128xf32>
    %c0_3 = arith.constant 0 : index
    %c0_4 = arith.constant 0 : index
    %4 = vector.load %arg3[%c0_3, %c0_4] : memref<1x128xf32, #tpu.memory_space<vmem>>, vector<1x128xf32>
    %5 = vector.broadcast %4 : vector<1x128xf32> to vector<512x128xf32>
    %6 = arith.addf %3, %5 : vector<512x128xf32>
    %cst = arith.constant 0.000000e+00 : f32
    %7 = vector.broadcast %cst : f32 to vector<512x128xf32>
    %8 = arith.cmpf ogt, %6, %7 : vector<512x128xf32>
    %cst_5 = arith.constant 2.000000e-01 : f32
    %9 = vector.broadcast %cst_5 : f32 to vector<512x128xf32>
    %10 = arith.mulf %9, %6 : vector<512x128xf32>
    %11 = arith.select %8, %6, %10 : vector<512x128xi1>, vector<512x128xf32>
    %c0_6 = arith.constant 0 : index
    %c0_7 = arith.constant 0 : index
    %12 = vector.load %arg4[%c0_6, %c0_7] : memref<512x128xf32, #tpu.memory_space<vmem>>, vector<512x128xf32>
    tpu.vector_store %arg4[%c0_6, %c0_7], %11 {strides = array<i32>} : memref<512x128xf32, #tpu.memory_space<vmem>>, vector<512x128xf32>,
    return
  }
  func.func @transform_0(%arg0: i32) -> (i32, i32) {
    %c0_i32 = arith.constant 0 : i32
    %c0_i32_0 = arith.constant 0 : i32
    return %arg0, %c0_i32 : i32, i32
  }
  func.func @transform_1(%arg0: i32) -> (i32, i32) {
    %c0_i32 = arith.constant 0 : i32
    %c0_i32_0 = arith.constant 0 : i32
    %c0_i32_1 = arith.constant 0 : i32
    return %c0_i32, %c0_i32_0 : i32, i32
  }
  func.func @transform_2(%arg0: i32) -> (i32, i32) {
    %c0_i32 = arith.constant 0 : i32
    %c0_i32_0 = arith.constant 0 : i32
    %c0_i32_1 = arith.constant 0 : i32
    return %c0_i32, %c0_i32_0 : i32, i32
  }
  func.func @transform_3(%arg0: i32) -> (i32, i32) {
    %c0_i32 = arith.constant 0 : i32
    %c0_i32_0 = arith.constant 0 : i32
    return %arg0, %c0_i32 : i32, i32
  }
}

module attributes {stable_mosaic.version = 11 : i64} {
  func.func @conv_kernel(%arg0: i32, %arg1: memref<128x256xbf16, #tpu.memory_space<vmem>>, %arg2: memref<256x128xbf16, #tpu.memory_space<vmem>>, %arg3: memref<128x128xf32, #tpu.memory_space<vmem>>, %arg4: memref<8x128xf32, #tpu.memory_space<vmem>>, %arg5: memref<8x128xf32, #tpu.memory_space<vmem>>) attributes {dimension_semantics = [#tpu.dimension_semantics<parallel>], iteration_bounds = array<i64: 1>, scalar_prefetch = 0 : i64, scratch_operands = 0 : i64, tpu.core_type = #tpu.core_type<tc>, window_params = [{transform_indices = @transform_0, window_bounds = array<i64: 128, 256>}, {pipeline_mode = #tpu.pipeline_mode<synchronous>, transform_indices = @transform_1, window_bounds = array<i64: 256, 128>}, {transform_indices = @transform_2, window_bounds = array<i64: 128, 128>}, {transform_indices = @transform_3, window_bounds = array<i64: 8, 128>}, {transform_indices = @transform_4, window_bounds = array<i64: 8, 128>}]} {
    %c0 = arith.constant 0 : index
    %c0_0 = arith.constant 0 : index
    %0 = vector.load %arg1[%c0, %c0_0] : memref<128x256xbf16, #tpu.memory_space<vmem>>, vector<128x256xbf16>
    %c0_1 = arith.constant 0 : index
    %c0_2 = arith.constant 0 : index
    %1 = vector.load %arg2[%c0_1, %c0_2] : memref<256x128xbf16, #tpu.memory_space<vmem>>, vector<256x128xbf16>
    %cst = arith.constant dense<0.000000e+00> : vector<128x128xf32>
    %2 = tpu.matmul %0, %1, %cst {dimension_numbers = #tpu.dot_dimension_numbers<[1], [0], [0], [1], [0, 0, 1, 1], [], []>} : vector<128x256xbf16>, vector<256x128xbf16>, vector<128x128xf32> -> vector<128x128xf32>
    %3 = vector.shape_cast %2 : vector<128x128xf32> to vector<16x8x128xf32>
    %cst_3 = arith.constant dense<0.000000e+00> : vector<8x128xf32>
    %4 = vector.multi_reduction <add>, %3, %cst_3 [0] : vector<16x8x128xf32> to vector<8x128xf32>
    %c0_4 = arith.constant 0 : index
    %c0_5 = arith.constant 0 : index
    %5 = vector.load %arg4[%c0_4, %c0_5] : memref<8x128xf32, #tpu.memory_space<vmem>>, vector<8x128xf32>
    tpu.vector_store %arg4[%c0_4, %c0_5], %4 {strides = array<i32>} : memref<8x128xf32, #tpu.memory_space<vmem>>, vector<8x128xf32>,
    %6 = arith.mulf %3, %3 : vector<16x8x128xf32>
    %cst_6 = arith.constant dense<0.000000e+00> : vector<8x128xf32>
    %7 = vector.multi_reduction <add>, %6, %cst_6 [0] : vector<16x8x128xf32> to vector<8x128xf32>
    %c0_7 = arith.constant 0 : index
    %c0_8 = arith.constant 0 : index
    %8 = vector.load %arg5[%c0_7, %c0_8] : memref<8x128xf32, #tpu.memory_space<vmem>>, vector<8x128xf32>
    tpu.vector_store %arg5[%c0_7, %c0_8], %7 {strides = array<i32>} : memref<8x128xf32, #tpu.memory_space<vmem>>, vector<8x128xf32>,
    %c0_9 = arith.constant 0 : index
    %c0_10 = arith.constant 0 : index
    %9 = vector.load %arg3[%c0_9, %c0_10] : memref<128x128xf32, #tpu.memory_space<vmem>>, vector<128x128xf32>
    tpu.vector_store %arg3[%c0_9, %c0_10], %2 {strides = array<i32>} : memref<128x128xf32, #tpu.memory_space<vmem>>, vector<128x128xf32>,
    return
  }
  func.func @transform_0(%arg0: i32) -> (i32, i32) {
    %c0_i32 = arith.constant 0 : i32
    %c0_i32_0 = arith.constant 0 : i32
    return %arg0, %c0_i32 : i32, i32
  }
  func.func @transform_1(%arg0: i32) -> (i32, i32) {
    %c0_i32 = arith.constant 0 : i32
    %c0_i32_0 = arith.constant 0 : i32
    %c0_i32_1 = arith.constant 0 : i32
    return %c0_i32, %c0_i32_0 : i32, i32
  }
  func.func @transform_2(%arg0: i32) -> (i32, i32) {
    %c0_i32 = arith.constant 0 : i32
    %c0_i32_0 = arith.constant 0 : i32
    return %arg0, %c0_i32 : i32, i32
  }
  func.func @transform_3(%arg0: i32) -> (i32, i32) {
    %c0_i32 = arith.constant 0 : i32
    %c0_i32_0 = arith.constant 0 : i32
    return %arg0, %c0_i32 : i32, i32
  }
  func.func @transform_4(%arg0: i32) -> (i32, i32) {
    %c0_i32 = arith.constant 0 : i32
    %c0_i32_0 = arith.constant 0 : i32
    return %arg0, %c0_i32 : i32, i32
  }
}

module attributes {stable_mosaic.version = 11 : i64} {
  func.func @bn_leaky_kernel(%arg0: i32, %arg1: memref<128x128xf32, #tpu.memory_space<vmem>>, %arg2: memref<1x128xf32, #tpu.memory_space<vmem>>, %arg3: memref<1x128xf32, #tpu.memory_space<vmem>>, %arg4: memref<128x128xf32, #tpu.memory_space<vmem>>) attributes {dimension_semantics = [#tpu.dimension_semantics<parallel>], iteration_bounds = array<i64: 1>, scalar_prefetch = 0 : i64, scratch_operands = 0 : i64, tpu.core_type = #tpu.core_type<tc>, window_params = [{transform_indices = @transform_0, window_bounds = array<i64: 128, 128>}, {pipeline_mode = #tpu.pipeline_mode<synchronous>, transform_indices = @transform_1, window_bounds = array<i64: 1, 128>}, {pipeline_mode = #tpu.pipeline_mode<synchronous>, transform_indices = @transform_2, window_bounds = array<i64: 1, 128>}, {transform_indices = @transform_3, window_bounds = array<i64: 128, 128>}]} {
    %c0 = arith.constant 0 : index
    %c0_0 = arith.constant 0 : index
    %0 = vector.load %arg1[%c0, %c0_0] : memref<128x128xf32, #tpu.memory_space<vmem>>, vector<128x128xf32>
    %c0_1 = arith.constant 0 : index
    %c0_2 = arith.constant 0 : index
    %1 = vector.load %arg2[%c0_1, %c0_2] : memref<1x128xf32, #tpu.memory_space<vmem>>, vector<1x128xf32>
    %2 = vector.broadcast %1 : vector<1x128xf32> to vector<128x128xf32>
    %3 = arith.mulf %0, %2 : vector<128x128xf32>
    %c0_3 = arith.constant 0 : index
    %c0_4 = arith.constant 0 : index
    %4 = vector.load %arg3[%c0_3, %c0_4] : memref<1x128xf32, #tpu.memory_space<vmem>>, vector<1x128xf32>
    %5 = vector.broadcast %4 : vector<1x128xf32> to vector<128x128xf32>
    %6 = arith.addf %3, %5 : vector<128x128xf32>
    %cst = arith.constant 0.000000e+00 : f32
    %7 = vector.broadcast %cst : f32 to vector<128x128xf32>
    %8 = arith.cmpf ogt, %6, %7 : vector<128x128xf32>
    %cst_5 = arith.constant 2.000000e-01 : f32
    %9 = vector.broadcast %cst_5 : f32 to vector<128x128xf32>
    %10 = arith.mulf %9, %6 : vector<128x128xf32>
    %11 = arith.select %8, %6, %10 : vector<128x128xi1>, vector<128x128xf32>
    %c0_6 = arith.constant 0 : index
    %c0_7 = arith.constant 0 : index
    %12 = vector.load %arg4[%c0_6, %c0_7] : memref<128x128xf32, #tpu.memory_space<vmem>>, vector<128x128xf32>
    tpu.vector_store %arg4[%c0_6, %c0_7], %11 {strides = array<i32>} : memref<128x128xf32, #tpu.memory_space<vmem>>, vector<128x128xf32>,
    return
  }
  func.func @transform_0(%arg0: i32) -> (i32, i32) {
    %c0_i32 = arith.constant 0 : i32
    %c0_i32_0 = arith.constant 0 : i32
    return %arg0, %c0_i32 : i32, i32
  }
  func.func @transform_1(%arg0: i32) -> (i32, i32) {
    %c0_i32 = arith.constant 0 : i32
    %c0_i32_0 = arith.constant 0 : i32
    %c0_i32_1 = arith.constant 0 : i32
    return %c0_i32, %c0_i32_0 : i32, i32
  }
  func.func @transform_2(%arg0: i32) -> (i32, i32) {
    %c0_i32 = arith.constant 0 : i32
    %c0_i32_0 = arith.constant 0 : i32
    %c0_i32_1 = arith.constant 0 : i32
    return %c0_i32, %c0_i32_0 : i32, i32
  }
  func.func @transform_3(%arg0: i32) -> (i32, i32) {
    %c0_i32 = arith.constant 0 : i32
    %c0_i32_0 = arith.constant 0 : i32
    return %arg0, %c0_i32 : i32, i32
  }
}

module attributes {stable_mosaic.version = 11 : i64} {
  func.func @conv_kernel(%arg0: i32, %arg1: memref<32x512xbf16, #tpu.memory_space<vmem>>, %arg2: memref<512x128xbf16, #tpu.memory_space<vmem>>, %arg3: memref<32x128xf32, #tpu.memory_space<vmem>>, %arg4: memref<8x128xf32, #tpu.memory_space<vmem>>, %arg5: memref<8x128xf32, #tpu.memory_space<vmem>>) attributes {dimension_semantics = [#tpu.dimension_semantics<parallel>], iteration_bounds = array<i64: 1>, scalar_prefetch = 0 : i64, scratch_operands = 0 : i64, tpu.core_type = #tpu.core_type<tc>, window_params = [{transform_indices = @transform_0, window_bounds = array<i64: 32, 512>}, {pipeline_mode = #tpu.pipeline_mode<synchronous>, transform_indices = @transform_1, window_bounds = array<i64: 512, 128>}, {transform_indices = @transform_2, window_bounds = array<i64: 32, 128>}, {transform_indices = @transform_3, window_bounds = array<i64: 8, 128>}, {transform_indices = @transform_4, window_bounds = array<i64: 8, 128>}]} {
    %c0 = arith.constant 0 : index
    %c0_0 = arith.constant 0 : index
    %0 = vector.load %arg1[%c0, %c0_0] : memref<32x512xbf16, #tpu.memory_space<vmem>>, vector<32x512xbf16>
    %c0_1 = arith.constant 0 : index
    %c0_2 = arith.constant 0 : index
    %1 = vector.load %arg2[%c0_1, %c0_2] : memref<512x128xbf16, #tpu.memory_space<vmem>>, vector<512x128xbf16>
    %cst = arith.constant dense<0.000000e+00> : vector<32x128xf32>
    %2 = tpu.matmul %0, %1, %cst {dimension_numbers = #tpu.dot_dimension_numbers<[1], [0], [0], [1], [0, 0, 1, 1], [], []>} : vector<32x512xbf16>, vector<512x128xbf16>, vector<32x128xf32> -> vector<32x128xf32>
    %3 = vector.shape_cast %2 : vector<32x128xf32> to vector<4x8x128xf32>
    %cst_3 = arith.constant dense<0.000000e+00> : vector<8x128xf32>
    %4 = vector.multi_reduction <add>, %3, %cst_3 [0] : vector<4x8x128xf32> to vector<8x128xf32>
    %c0_4 = arith.constant 0 : index
    %c0_5 = arith.constant 0 : index
    %5 = vector.load %arg4[%c0_4, %c0_5] : memref<8x128xf32, #tpu.memory_space<vmem>>, vector<8x128xf32>
    tpu.vector_store %arg4[%c0_4, %c0_5], %4 {strides = array<i32>} : memref<8x128xf32, #tpu.memory_space<vmem>>, vector<8x128xf32>,
    %6 = arith.mulf %3, %3 : vector<4x8x128xf32>
    %cst_6 = arith.constant dense<0.000000e+00> : vector<8x128xf32>
    %7 = vector.multi_reduction <add>, %6, %cst_6 [0] : vector<4x8x128xf32> to vector<8x128xf32>
    %c0_7 = arith.constant 0 : index
    %c0_8 = arith.constant 0 : index
    %8 = vector.load %arg5[%c0_7, %c0_8] : memref<8x128xf32, #tpu.memory_space<vmem>>, vector<8x128xf32>
    tpu.vector_store %arg5[%c0_7, %c0_8], %7 {strides = array<i32>} : memref<8x128xf32, #tpu.memory_space<vmem>>, vector<8x128xf32>,
    %c0_9 = arith.constant 0 : index
    %c0_10 = arith.constant 0 : index
    %9 = vector.load %arg3[%c0_9, %c0_10] : memref<32x128xf32, #tpu.memory_space<vmem>>, vector<32x128xf32>
    tpu.vector_store %arg3[%c0_9, %c0_10], %2 {strides = array<i32>} : memref<32x128xf32, #tpu.memory_space<vmem>>, vector<32x128xf32>,
    return
  }
  func.func @transform_0(%arg0: i32) -> (i32, i32) {
    %c0_i32 = arith.constant 0 : i32
    %c0_i32_0 = arith.constant 0 : i32
    return %arg0, %c0_i32 : i32, i32
  }
  func.func @transform_1(%arg0: i32) -> (i32, i32) {
    %c0_i32 = arith.constant 0 : i32
    %c0_i32_0 = arith.constant 0 : i32
    %c0_i32_1 = arith.constant 0 : i32
    return %c0_i32, %c0_i32_0 : i32, i32
  }
  func.func @transform_2(%arg0: i32) -> (i32, i32) {
    %c0_i32 = arith.constant 0 : i32
    %c0_i32_0 = arith.constant 0 : i32
    return %arg0, %c0_i32 : i32, i32
  }
  func.func @transform_3(%arg0: i32) -> (i32, i32) {
    %c0_i32 = arith.constant 0 : i32
    %c0_i32_0 = arith.constant 0 : i32
    return %arg0, %c0_i32 : i32, i32
  }
  func.func @transform_4(%arg0: i32) -> (i32, i32) {
    %c0_i32 = arith.constant 0 : i32
    %c0_i32_0 = arith.constant 0 : i32
    return %arg0, %c0_i32 : i32, i32
  }
}

module attributes {stable_mosaic.version = 11 : i64} {
  func.func @bn_leaky_kernel(%arg0: i32, %arg1: memref<32x128xf32, #tpu.memory_space<vmem>>, %arg2: memref<1x128xf32, #tpu.memory_space<vmem>>, %arg3: memref<1x128xf32, #tpu.memory_space<vmem>>, %arg4: memref<32x128xf32, #tpu.memory_space<vmem>>) attributes {dimension_semantics = [#tpu.dimension_semantics<parallel>], iteration_bounds = array<i64: 1>, scalar_prefetch = 0 : i64, scratch_operands = 0 : i64, tpu.core_type = #tpu.core_type<tc>, window_params = [{transform_indices = @transform_0, window_bounds = array<i64: 32, 128>}, {pipeline_mode = #tpu.pipeline_mode<synchronous>, transform_indices = @transform_1, window_bounds = array<i64: 1, 128>}, {pipeline_mode = #tpu.pipeline_mode<synchronous>, transform_indices = @transform_2, window_bounds = array<i64: 1, 128>}, {transform_indices = @transform_3, window_bounds = array<i64: 32, 128>}]} {
    %c0 = arith.constant 0 : index
    %c0_0 = arith.constant 0 : index
    %0 = vector.load %arg1[%c0, %c0_0] : memref<32x128xf32, #tpu.memory_space<vmem>>, vector<32x128xf32>
    %c0_1 = arith.constant 0 : index
    %c0_2 = arith.constant 0 : index
    %1 = vector.load %arg2[%c0_1, %c0_2] : memref<1x128xf32, #tpu.memory_space<vmem>>, vector<1x128xf32>
    %2 = vector.broadcast %1 : vector<1x128xf32> to vector<32x128xf32>
    %3 = arith.mulf %0, %2 : vector<32x128xf32>
    %c0_3 = arith.constant 0 : index
    %c0_4 = arith.constant 0 : index
    %4 = vector.load %arg3[%c0_3, %c0_4] : memref<1x128xf32, #tpu.memory_space<vmem>>, vector<1x128xf32>
    %5 = vector.broadcast %4 : vector<1x128xf32> to vector<32x128xf32>
    %6 = arith.addf %3, %5 : vector<32x128xf32>
    %cst = arith.constant 0.000000e+00 : f32
    %7 = vector.broadcast %cst : f32 to vector<32x128xf32>
    %8 = arith.cmpf ogt, %6, %7 : vector<32x128xf32>
    %cst_5 = arith.constant 2.000000e-01 : f32
    %9 = vector.broadcast %cst_5 : f32 to vector<32x128xf32>
    %10 = arith.mulf %9, %6 : vector<32x128xf32>
    %11 = arith.select %8, %6, %10 : vector<32x128xi1>, vector<32x128xf32>
    %c0_6 = arith.constant 0 : index
    %c0_7 = arith.constant 0 : index
    %12 = vector.load %arg4[%c0_6, %c0_7] : memref<32x128xf32, #tpu.memory_space<vmem>>, vector<32x128xf32>
    tpu.vector_store %arg4[%c0_6, %c0_7], %11 {strides = array<i32>} : memref<32x128xf32, #tpu.memory_space<vmem>>, vector<32x128xf32>,
    return
  }
  func.func @transform_0(%arg0: i32) -> (i32, i32) {
    %c0_i32 = arith.constant 0 : i32
    %c0_i32_0 = arith.constant 0 : i32
    return %arg0, %c0_i32 : i32, i32
  }
  func.func @transform_1(%arg0: i32) -> (i32, i32) {
    %c0_i32 = arith.constant 0 : i32
    %c0_i32_0 = arith.constant 0 : i32
    %c0_i32_1 = arith.constant 0 : i32
    return %c0_i32, %c0_i32_0 : i32, i32
  }
  func.func @transform_2(%arg0: i32) -> (i32, i32) {
    %c0_i32 = arith.constant 0 : i32
    %c0_i32_0 = arith.constant 0 : i32
    %c0_i32_1 = arith.constant 0 : i32
    return %c0_i32, %c0_i32_0 : i32, i32
  }
  func.func @transform_3(%arg0: i32) -> (i32, i32) {
    %c0_i32 = arith.constant 0 : i32
    %c0_i32_0 = arith.constant 0 : i32
    return %arg0, %c0_i32 : i32, i32
  }
}

module attributes {stable_mosaic.version = 11 : i64} {
  func.func @conv_kernel(%arg0: i32, %arg1: memref<8x1024xbf16, #tpu.memory_space<vmem>>, %arg2: memref<1024x128xbf16, #tpu.memory_space<vmem>>, %arg3: memref<8x128xf32, #tpu.memory_space<vmem>>) attributes {dimension_semantics = [#tpu.dimension_semantics<parallel>], iteration_bounds = array<i64: 1>, scalar_prefetch = 0 : i64, scratch_operands = 0 : i64, tpu.core_type = #tpu.core_type<tc>, window_params = [{transform_indices = @transform_0, window_bounds = array<i64: 8, 1024>}, {pipeline_mode = #tpu.pipeline_mode<synchronous>, transform_indices = @transform_1, window_bounds = array<i64: 1024, 128>}, {transform_indices = @transform_2, window_bounds = array<i64: 8, 128>}]} {
    %c0 = arith.constant 0 : index
    %c0_0 = arith.constant 0 : index
    %0 = vector.load %arg1[%c0, %c0_0] : memref<8x1024xbf16, #tpu.memory_space<vmem>>, vector<8x1024xbf16>
    %c0_1 = arith.constant 0 : index
    %c0_2 = arith.constant 0 : index
    %1 = vector.load %arg2[%c0_1, %c0_2] : memref<1024x128xbf16, #tpu.memory_space<vmem>>, vector<1024x128xbf16>
    %cst = arith.constant dense<0.000000e+00> : vector<8x128xf32>
    %2 = tpu.matmul %0, %1, %cst {dimension_numbers = #tpu.dot_dimension_numbers<[1], [0], [0], [1], [0, 0, 1, 1], [], []>} : vector<8x1024xbf16>, vector<1024x128xbf16>, vector<8x128xf32> -> vector<8x128xf32>
    %3 = arith.negf %2 : vector<8x128xf32>
    %4 = math.exp %3 : vector<8x128xf32>
    %cst_3 = arith.constant 1.000000e+00 : f32
    %5 = vector.broadcast %cst_3 : f32 to vector<8x128xf32>
    %6 = arith.addf %5, %4 : vector<8x128xf32>
    %7 = arith.divf %5, %6 : vector<8x128xf32>
    %c0_4 = arith.constant 0 : index
    %c0_5 = arith.constant 0 : index
    %8 = vector.load %arg3[%c0_4, %c0_5] : memref<8x128xf32, #tpu.memory_space<vmem>>, vector<8x128xf32>
    tpu.vector_store %arg3[%c0_4, %c0_5], %7 {strides = array<i32>} : memref<8x128xf32, #tpu.memory_space<vmem>>, vector<8x128xf32>,
    return
  }
  func.func @transform_0(%arg0: i32) -> (i32, i32) {
    %c0_i32 = arith.constant 0 : i32
    %c0_i32_0 = arith.constant 0 : i32
    return %arg0, %c0_i32 : i32, i32
  }
  func.func @transform_1(%arg0: i32) -> (i32, i32) {
    %c0_i32 = arith.constant 0 : i32
    %c0_i32_0 = arith.constant 0 : i32
    %c0_i32_1 = arith.constant 0 : i32
    return %c0_i32, %c0_i32_0 : i32, i32
  }
  func.func @transform_2(%arg0: i32) -> (i32, i32) {
    %c0_i32 = arith.constant 0 : i32
    %c0_i32_0 = arith.constant 0 : i32
    return %arg0, %c0_i32 : i32, i32
  }
}

</mosaic_0001>

<bundles_post_ra>
// kernel: discriminator_forward.8
= control target key start
LH: loop header
LB: loop body
LE: loop exit
PB: predicated region body
PF: predicated region fallthrough
CT: control target
= control target key end

     0   :  { %s3524_s9 = smov 0   ;;  %s3770_s0 = inlined_call_operand.vmem [shape: bf16[2048,48], index: 0, kind: input, shape index: {}]   ;;  %s3771_s1 = inlined_call_operand.vmem [shape: bf16[48,128], index: 1, kind: input, shape index: {}]   ;;  %s3772_s2 = inlined_call_operand.vmem [shape: bf16[2048,128], index: 2, kind: output, shape index: {}]  }
   0x1 LB: > { %s2438_s10 = sadd.s32 4294967295, %s3507_s9   ;;  %p2442_p0 = scmp.ge.s32.totalorder %s3507_s9, 1  ;;  %s3507_s9 = sphi %s3524_s9, %s12_s9  }
   0x2   : > { %p113_p1 = scmp.lt.s32.totalorder %s3507_s9, 3 }
   0x4   : > { %p114_p2 = pnand %p2442_p0, %p113_p1 }
   0x5   : > { %s2443_s13 = sshll.u32 (!%p114_p2), %s2438_s10, 7 }
   0x6   : > { %117 = sbr.rel (%p114_p2) target bundleno = 350 (0x15e), region = 28  ;;  %p136_p3 = scmp.lt.s32.totalorder (!%p114_p2), %s2443_s13, 255 }
   0xb   : > { %v3434_v0 = vld [vmem:[%s3771_s1 + $0x10] sm:$0xff]   ;;  %v3435_v1 = vld [vmem:[%s3771_s1 + $0x8] sm:$0xff]   ;;  %s3774_s13 = smov (!%p136_p3, %s2443_s13), 255  ;;  %v3436_v2 = vld [vmem:[%s3771_s1] sm:$0xff]   ;;  %vm620_vm0 = vcmask 392192  }
   0xc   : > { %3286 = vmatprep.subr.bf16.mxu0 %v3434_v0  ;;  %3420 = vmatprep.subr.bf16.mxu1 %v3434_v0  ;;  %s2444_s18 = sshll.u32 %s3774_s13, 2 }
   0xd   : > { %3287 = vmatpush3.bf16.msra.mxu0 %v3434_v0  ;;  %3423 = vmatpush3.bf16.msra.mxu1 %v3434_v0  ;;  %s3549_s21 = scalar_lea.vmem %s3770_s0, %s2444_s18  ;;  %s3684_s24 = scalar_lea.vmem %s3772_s2, %s2444_s18 }
   0xe   : > { %3288 = vmatprep.subr.bf16.mxu0 %v3435_v1  ;;  %3421 = vmatprep.subr.bf16.mxu1 %v3435_v1  ;;  %v3437_v3 = vld [vmem:[%s3549_s21] sm:$0xff]   ;;  %v3439_v5 = vld [vmem:[%s3549_s21 + $0x8] sm:$0xff]   ;;  %v3441_v7 = vld [vmem:[%s3549_s21 + $0x10] sm:$0xff]  }
   0xf   : > { %v3438_v4 = vld [vmem:[%s3549_s21 + $0x100] sm:$0xff]   ;;  %3292 = vmatprep.mubr.msk.bf16.mxu0 %vm620_vm0, %v3437_v3  ;;  %v3440_v6 = vld [vmem:[%s3549_s21 + $0x108] sm:$0xff]   ;;  %v3442_v8 = vld [vmem:[%s3549_s21 + $0x110] sm:$0xff]  }
  0x10   : > { %3356 = vmatprep.mubr.msk.bf16.mxu1 %vm620_vm0, %v3438_v4  ;;  %v3443_v9 = vld [vmem:[%s3549_s21 + $0x18] sm:$0xff]   ;;  %v3445_v11 = vld [vmem:[%s3549_s21 + $0x20] sm:$0xff]   ;;  %v3447_v13 = vld [vmem:[%s3549_s21 + $0x28] sm:$0xff]  }
  0x11   : > { %3289 = vmatpush3.bf16.msra.mxu0 %v3435_v1  ;;  %3424 = vmatpush3.bf16.msra.mxu1 %v3435_v1  ;;  %v3444_v10 = vld [vmem:[%s3549_s21 + $0x118] sm:$0xff]   ;;  %v3446_v12 = vld [vmem:[%s3549_s21 + $0x120] sm:$0xff]   ;;  %v3448_v14 = vld [vmem:[%s3549_s21 + $0x128] sm:$0xff]  }
  0x12   : > { %3290 = vmatprep.subr.bf16.mxu0 %v3436_v2  ;;  %3422 = vmatprep.subr.bf16.mxu1 %v3436_v2  ;;  %v3449_v15 = vld [vmem:[%s3549_s21 + $0x30] sm:$0xff]   ;;  %v3451_v17 = vld [vmem:[%s3549_s21 + $0x38] sm:$0xff]   ;;  %v3453_v19 = vld [vmem:[%s3549_s21 + $0x40] sm:$0xff]  }
  0x13   : > { %v3450_v16 = vld [vmem:[%s3549_s21 + $0x130] sm:$0xff]   ;;  %v3452_v18 = vld [vmem:[%s3549_s21 + $0x138] sm:$0xff]   ;;  %v3454_v20 = vld [vmem:[%s3549_s21 + $0x140] sm:$0xff]  }
  0x14   : > { %v3455_v21 = vld [vmem:[%s3549_s21 + $0x48] sm:$0xff]   ;;  %v3457_v23 = vld [vmem:[%s3549_s21 + $0x50] sm:$0xff]   ;;  %v3459_v25 = vld [vmem:[%s3549_s21 + $0x58] sm:$0xff]  }
  0x15   : > { %3291 = vmatpush3.bf16.msra.mxu0 %v3436_v2  ;;  %3425 = vmatpush3.bf16.msra.mxu1 %v3436_v2  ;;  %v3456_v22 = vld [vmem:[%s3549_s21 + $0x148] sm:$0xff]   ;;  %v3458_v24 = vld [vmem:[%s3549_s21 + $0x150] sm:$0xff]   ;;  %v3460_v26 = vld [vmem:[%s3549_s21 + $0x158] sm:$0xff]  }
  0x16   : > { %v3461_v27 = vld [vmem:[%s3549_s21 + $0x60] sm:$0xff]   ;;  %v3463_v29 = vld [vmem:[%s3549_s21 + $0x68] sm:$0xff]   ;;  %v3465_v31 = vld [vmem:[%s3549_s21 + $0x70] sm:$0xff]  }
  0x17   : > { %v3462_v28 = vld [vmem:[%s3549_s21 + $0x160] sm:$0xff]   ;;  %v3464_v30 = vld [vmem:[%s3549_s21 + $0x168] sm:$0xff]   ;;  %v3466_v32 = vld [vmem:[%s3549_s21 + $0x170] sm:$0xff]  }
  0x18   : > { %3293 = vmatmul.mubr.msk.bf16.vlgmr.msra.gmra.mxu0 %vm620_vm0, %v3439_v5  ;;  %3357 = vmatmul.mubr.msk.bf16.vlgmr.msra.gmra.mxu1 %vm620_vm0, %v3440_v6  ;;  %v3467_v33 = vld [vmem:[%s3549_s21 + $0x78] sm:$0xff]   ;;  %v3469_v35 = vld [vmem:[%s3549_s21 + $0x80] sm:$0xff]   ;;  %v3471_v37 = vld [vmem:[%s3549_s21 + $0x88] sm:$0xff]  }
  0x19   : > { %3296 = vmatprep.mubr.msk.bf16.mxu0 %vm620_vm0, %v3441_v7  ;;  %3360 = vmatprep.mubr.msk.bf16.mxu1 %vm620_vm0, %v3442_v8  ;;  %v3468_v34 = vld [vmem:[%s3549_s21 + $0x178] sm:$0xff]   ;;  %v3470_v36 = vld [vmem:[%s3549_s21 + $0x180] sm:$0xff]   ;;  %v3472_v38 = vld [vmem:[%s3549_s21 + $0x188] sm:$0xff]  }
  0x1a   : > { %v3473_v39 = vld [vmem:[%s3549_s21 + $0x90] sm:$0xff]   ;;  %v3475_v41 = vld [vmem:[%s3549_s21 + $0x98] sm:$0xff]   ;;  %v3477_v43 = vld [vmem:[%s3549_s21 + $0xa0] sm:$0xff]  }
  0x1b   : > { %v3474_v40 = vld [vmem:[%s3549_s21 + $0x190] sm:$0xff]   ;;  %v3476_v42 = vld [vmem:[%s3549_s21 + $0x198] sm:$0xff]   ;;  %v3478_v44 = vld [vmem:[%s3549_s21 + $0x1a0] sm:$0xff]  }
  0x1c   : > { %v3479_v45 = vld [vmem:[%s3549_s21 + $0xa8] sm:$0xff]   ;;  %v3481_v47 = vld [vmem:[%s3549_s21 + $0xb0] sm:$0xff]   ;;  %v3483_v49 = vld [vmem:[%s3549_s21 + $0xb8] sm:$0xff]  }
  0x1d   : > { %v3480_v46 = vld [vmem:[%s3549_s21 + $0x1a8] sm:$0xff]   ;;  %v3482_v48 = vld [vmem:[%s3549_s21 + $0x1b0] sm:$0xff]   ;;  %v3484_v50 = vld [vmem:[%s3549_s21 + $0x1b8] sm:$0xff]  }
  0x1e   : > { %v3485_v51 = vld [vmem:[%s3549_s21 + $0xc0] sm:$0xff]   ;;  %v3487_v53 = vld [vmem:[%s3549_s21 + $0xc8] sm:$0xff]   ;;  %v3489_v55 = vld [vmem:[%s3549_s21 + $0xd0] sm:$0xff]  }
  0x1f   : > { %v3486_v52 = vld [vmem:[%s3549_s21 + $0x1c0] sm:$0xff]   ;;  %v3488_v54 = vld [vmem:[%s3549_s21 + $0x1c8] sm:$0xff]   ;;  %v3490_v56 = vld [vmem:[%s3549_s21 + $0x1d0] sm:$0xff]  }
  0x20   : > { %3297 = vmatmul.mubr.msk.bf16.gmra.mxu0 %vm620_vm0, %v3443_v9  ;;  %3361 = vmatmul.mubr.msk.bf16.gmra.mxu1 %vm620_vm0, %v3444_v10  ;;  %v3491_v57 = vld [vmem:[%s3549_s21 + $0xd8] sm:$0xff]   ;;  %v3493_v59 = vld [vmem:[%s3549_s21 + $0xe0] sm:$0xff]   ;;  %v3495_v61 = vld [vmem:[%s3549_s21 + $0xe8] sm:$0xff]  }
  0x21   : > { %3300 = vmatprep.mubr.msk.bf16.mxu0 %vm620_vm0, %v3445_v11  ;;  %3364 = vmatprep.mubr.msk.bf16.mxu1 %vm620_vm0, %v3446_v12  ;;  %v3492_v58 = vld [vmem:[%s3549_s21 + $0x1d8] sm:$0xff]   ;;  %v3494_v60 = vld [vmem:[%s3549_s21 + $0x1e0] sm:$0xff]   ;;  %v3496_v62 = vld [vmem:[%s3549_s21 + $0x1e8] sm:$0xff]  }
  0x22   : > { %v3497_v63 = vld [vmem:[%s3549_s21 + $0xf0] sm:$0xff]   ;;  %v3499_v1 = vld [vmem:[%s3549_s21 + $0xf8] sm:$0xff]  }
  0x23   : > { %v3498_v0 = vld [vmem:[%s3549_s21 + $0x1f0] sm:$0xff]   ;;  %v3500_v2 = vld [vmem:[%s3549_s21 + $0x1f8] sm:$0xff]  }
  0x28   : > { %3301 = vmatmul.mubr.msk.bf16.gmra.mxu0 %vm620_vm0, %v3447_v13  ;;  %3365 = vmatmul.mubr.msk.bf16.gmra.mxu1 %vm620_vm0, %v3448_v14 }
  0x29   : > { %3304 = vmatprep.mubr.msk.bf16.mxu0 %vm620_vm0, %v3449_v15  ;;  %3368 = vmatprep.mubr.msk.bf16.mxu1 %vm620_vm0, %v3450_v16 }
  0x30   : > { %3305 = vmatmul.mubr.msk.bf16.gmra.mxu0 %vm620_vm0, %v3451_v17  ;;  %3369 = vmatmul.mubr.msk.bf16.gmra.mxu1 %vm620_vm0, %v3452_v18 }
  0x31   : > { %3308 = vmatprep.mubr.msk.bf16.mxu0 %vm620_vm0, %v3453_v19  ;;  %3372 = vmatprep.mubr.msk.bf16.mxu1 %vm620_vm0, %v3454_v20 }
  0x38   : > { %3309 = vmatmul.mubr.msk.bf16.gmra.mxu0 %vm620_vm0, %v3455_v21  ;;  %3373 = vmatmul.mubr.msk.bf16.gmra.mxu1 %vm620_vm0, %v3456_v22 }
  0x39   : > { %3312 = vmatprep.mubr.msk.bf16.mxu0 %vm620_vm0, %v3457_v23  ;;  %3376 = vmatprep.mubr.msk.bf16.mxu1 %vm620_vm0, %v3458_v24 }
  0x40   : > { %3313 = vmatmul.mubr.msk.bf16.gmra.mxu0 %vm620_vm0, %v3459_v25  ;;  %3377 = vmatmul.mubr.msk.bf16.gmra.mxu1 %vm620_vm0, %v3460_v26 }
  0x41   : > { %3316 = vmatprep.mubr.msk.bf16.mxu0 %vm620_vm0, %v3461_v27  ;;  %3380 = vmatprep.mubr.msk.bf16.mxu1 %vm620_vm0, %v3462_v28 }
  0x48   : > { %3317 = vmatmul.mubr.msk.bf16.gmra.mxu0 %vm620_vm0, %v3463_v29  ;;  %3381 = vmatmul.mubr.msk.bf16.gmra.mxu1 %vm620_vm0, %v3464_v30 }
  0x49   : > { %3320 = vmatprep.mubr.msk.bf16.mxu0 %vm620_vm0, %v3465_v31  ;;  %3384 = vmatprep.mubr.msk.bf16.mxu1 %vm620_vm0, %v3466_v32 }
  0x50   : > { %3321 = vmatmul.mubr.msk.bf16.gmra.mxu0 %vm620_vm0, %v3467_v33  ;;  %3385 = vmatmul.mubr.msk.bf16.gmra.mxu1 %vm620_vm0, %v3468_v34 }
  0x51   : > { %3324 = vmatprep.mubr.msk.bf16.mxu0 %vm620_vm0, %v3469_v35  ;;  %3388 = vmatprep.mubr.msk.bf16.mxu1 %vm620_vm0, %v3470_v36 }
  0x58   : > { %3325 = vmatmul.mubr.msk.bf16.gmra.mxu0 %vm620_vm0, %v3471_v37  ;;  %3389 = vmatmul.mubr.msk.bf16.gmra.mxu1 %vm620_vm0, %v3472_v38 }
  0x59   : > { %3328 = vmatprep.mubr.msk.bf16.mxu0 %vm620_vm0, %v3473_v39  ;;  %3392 = vmatprep.mubr.msk.bf16.mxu1 %vm620_vm0, %v3474_v40 }
  0x60   : > { %3329 = vmatmul.mubr.msk.bf16.gmra.mxu0 %vm620_vm0, %v3475_v41  ;;  %3393 = vmatmul.mubr.msk.bf16.gmra.mxu1 %vm620_vm0, %v3476_v42 }
  0x61   : > { %3332 = vmatprep.mubr.msk.bf16.mxu0 %vm620_vm0, %v3477_v43  ;;  %3396 = vmatprep.mubr.msk.bf16.mxu1 %vm620_vm0, %v3478_v44 }
  0x68   : > { %3333 = vmatmul.mubr.msk.bf16.gmra.mxu0 %vm620_vm0, %v3479_v45  ;;  %3397 = vmatmul.mubr.msk.bf16.gmra.mxu1 %vm620_vm0, %v3480_v46 }
  0x69   : > { %3336 = vmatprep.mubr.msk.bf16.mxu0 %vm620_vm0, %v3481_v47  ;;  %3400 = vmatprep.mubr.msk.bf16.mxu1 %vm620_vm0, %v3482_v48 }
  0x70   : > { %3337 = vmatmul.mubr.msk.bf16.gmra.mxu0 %vm620_vm0, %v3483_v49  ;;  %3401 = vmatmul.mubr.msk.bf16.gmra.mxu1 %vm620_vm0, %v3484_v50 }
  0x71   : > { %3340 = vmatprep.mubr.msk.bf16.mxu0 %vm620_vm0, %v3485_v51  ;;  %3404 = vmatprep.mubr.msk.bf16.mxu1 %vm620_vm0, %v3486_v52 }
  0x78   : > { %3341 = vmatmul.mubr.msk.bf16.gmra.mxu0 %vm620_vm0, %v3487_v53  ;;  %3405 = vmatmul.mubr.msk.bf16.gmra.mxu1 %vm620_vm0, %v3488_v54 }
  0x79   : > { %3344 = vmatprep.mubr.msk.bf16.mxu0 %vm620_vm0, %v3489_v55  ;;  %3408 = vmatprep.mubr.msk.bf16.mxu1 %vm620_vm0, %v3490_v56 }
  0x80   : > { %3345 = vmatmul.mubr.msk.bf16.gmra.mxu0 %vm620_vm0, %v3491_v57  ;;  %3409 = vmatmul.mubr.msk.bf16.gmra.mxu1 %vm620_vm0, %v3492_v58 }
  0x81   : > { %3348 = vmatprep.mubr.msk.bf16.mxu0 %vm620_vm0, %v3493_v59  ;;  %3412 = vmatprep.mubr.msk.bf16.mxu1 %vm620_vm0, %v3494_v60 }
  0x88   : > { %3349 = vmatmul.mubr.msk.bf16.gmra.mxu0 %vm620_vm0, %v3495_v61  ;;  %3413 = vmatmul.mubr.msk.bf16.gmra.mxu1 %vm620_vm0, %v3496_v62 }
  0x89   : > { %3352 = vmatprep.mubr.msk.bf16.mxu0 %vm620_vm0, %v3497_v63  ;;  %3416 = vmatprep.mubr.msk.bf16.mxu1 %vm620_vm0, %v3498_v0 }
  0x90   : > { %3353 = vmatmul.mubr.msk.bf16.gmra.mxu0 %vm620_vm0, %v3499_v1  ;;  %3417 = vmatmul.mubr.msk.bf16.gmra.mxu1 %vm620_vm0, %v3500_v2 }
  0xd8   : > { %v3294_v3 = vpop.f32.mrf.mxu0  ;;  %v3358_v4 = vpop.f32.mrf.mxu1 }
  0xd9   : > { %vm1360_vm1 = vcmp.gt.f32.partialorder %v3294_v3, 0.0  ;;  %v1488_v5 = vmul.f32 0.2, %v3294_v3  ;;  %v1552_v6 = vmul.f32 0.2, %v3358_v4  ;;  %vm1424_vm2 = vcmp.gt.f32.partialorder %v3358_v4, 0.0 }
  0xda   : > { %v847_v7 = vpop.f32.mrf.mxu0  ;;  %v1103_v8 = vpop.f32.mrf.mxu1 }
  0xdb   : > { %v1616_v9 = vsel %vm1360_vm1, %v3294_v3, %v1488_v5  ;;  %v1486_v10 = vmul.f32 0.2, %v847_v7  ;;  %vm1358_vm3 = vcmp.gt.f32.partialorder %v847_v7, 0.0  ;;  %v1680_v14 = vsel %vm1424_vm2, %v3358_v4, %v1552_v6 }
  0xdc   : > { %v3295_v11 = vpop.f32.mrf.mxu0  ;;  %v3359_v12 = vpop.f32.mrf.mxu1  ;;  %vm1422_vm6 = vcmp.gt.f32.partialorder %v1103_v8, 0.0  ;;  %v1550_v15 = vmul.f32 0.2, %v1103_v8 }
  0xdd   : > { %vm1361_vm4 = vcmp.gt.f32.partialorder %v3295_v11, 0.0  ;;  %v1489_v13 = vmul.f32 0.2, %v3295_v11  ;;  %vm1425_vm5 = vcmp.gt.f32.partialorder %v3359_v12, 0.0  ;;  %v1553_v16 = vmul.f32 0.2, %v3359_v12 }
  0xde   : > { %v850_v17 = vpop.f32.mrf.mxu0  ;;  %v1106_v18 = vpop.f32.mrf.mxu1  ;;  %v1614_v21 = vsel %vm1358_vm3, %v847_v7, %v1486_v10  ;;  %v1678_v30 = vsel %vm1422_vm6, %v1103_v8, %v1550_v15 }
  0xdf   : > { %v1617_v19 = vsel %vm1361_vm4, %v3295_v11, %v1489_v13  ;;  %vm1359_vm7 = vcmp.gt.f32.partialorder %v850_v17, 0.0  ;;  %v1487_v20 = vmul.f32 0.2, %v850_v17  ;;  %vm1423_vm8 = vcmp.gt.f32.partialorder %v1106_v18, 0.0 }
  0xe0   : > { %v2844_v22 = vpack.c.bf16 %v1617_v19, %v1616_v9  ;;  %v1681_v23 = vsel %vm1425_vm5, %v3359_v12, %v1553_v16  ;;  %v1551_v24 = vmul.f32 0.2, %v1106_v18  ;;  %v3298_v25 = vpop.f32.mrf.mxu0  ;;  %v3362_v26 = vpop.f32.mrf.mxu1 }
  0xe1   : > { %v3004_v27 = vpack.c.bf16 %v1681_v23, %v1680_v14  ;;  %v1615_v28 = vsel %vm1359_vm7, %v850_v17, %v1487_v20  ;;  %vm1364_vm9 = vcmp.gt.f32.partialorder %v3298_v25, 0.0  ;;  %v1492_v29 = vmul.f32 0.2, %v3298_v25 }
  0xe2   : > { %3156 = vst [vmem:[%s3684_s24 + $0x8] sm:$0xff] %v2844_v22   ;;  %v2839_v31 = vpack.c.bf16 %v1615_v28, %v1614_v21  ;;  %v1679_v32 = vsel %vm1423_vm8, %v1106_v18, %v1551_v24  ;;  %v1556_v33 = vmul.f32 0.2, %v3362_v26  ;;  %v863_v34 = vpop.f32.mrf.mxu0  ;;  %v1119_v35 = vpop.f32.mrf.mxu1  ;;  %vm1428_vm10 = vcmp.gt.f32.partialorder %v3362_v26, 0.0 }
  0xe3   : > { %3188 = vst [vmem:[%s3684_s24 + $0x108] sm:$0xff] %v3004_v27   ;;  %v2999_v36 = vpack.c.bf16 %v1679_v32, %v1678_v30  ;;  %v1620_v37 = vsel %vm1364_vm9, %v3298_v25, %v1492_v29  ;;  %v1490_v38 = vmul.f32 0.2, %v863_v34  ;;  %vm1362_vm11 = vcmp.gt.f32.partialorder %v863_v34, 0.0 }
  0xe4   : > { %2840 = vst [vmem:[%s3684_s24] sm:$0xff] %v2839_v31   ;;  %v3299_v39 = vpop.f32.mrf.mxu0  ;;  %v3363_v40 = vpop.f32.mrf.mxu1  ;;  %v1684_v42 = vsel %vm1428_vm10, %v3362_v26, %v1556_v33  ;;  %vm1426_vm14 = vcmp.gt.f32.partialorder %v1119_v35, 0.0  ;;  %v1554_v43 = vmul.f32 0.2, %v1119_v35 }
  0xe5   : > { %3187 = vst [vmem:[%s3684_s24 + $0x100] sm:$0xff] %v2999_v36   ;;  %vm1365_vm12 = vcmp.gt.f32.partialorder %v3299_v39, 0.0  ;;  %v1493_v41 = vmul.f32 0.2, %v3299_v39  ;;  %vm1429_vm13 = vcmp.gt.f32.partialorder %v3363_v40, 0.0  ;;  %v1618_v49 = vsel %vm1362_vm11, %v863_v34, %v1490_v38 }
  0xe6   : > { %v1557_v44 = vmul.f32 0.2, %v3363_v40  ;;  %v866_v45 = vpop.f32.mrf.mxu0  ;;  %v1122_v46 = vpop.f32.mrf.mxu1  ;;  %v1682_v58 = vsel %vm1426_vm14, %v1119_v35, %v1554_v43 }
  0xe7   : > { %v1621_v47 = vsel %vm1365_vm12, %v3299_v39, %v1493_v41  ;;  %vm1363_vm15 = vcmp.gt.f32.partialorder %v866_v45, 0.0  ;;  %v1491_v48 = vmul.f32 0.2, %v866_v45  ;;  %vm1427_vm0 = vcmp.gt.f32.partialorder %v1122_v46, 0.0 }
  0xe8   : > { %v2854_v50 = vpack.c.bf16 %v1621_v47, %v1620_v37  ;;  %v1685_v51 = vsel %vm1429_vm13, %v3363_v40, %v1557_v44  ;;  %v1555_v52 = vmul.f32 0.2, %v1122_v46  ;;  %v3302_v53 = vpop.f32.mrf.mxu0  ;;  %v3366_v54 = vpop.f32.mrf.mxu1 }
  0xe9   : > { %v3014_v55 = vpack.c.bf16 %v1685_v51, %v1684_v42  ;;  %v1619_v56 = vsel %vm1363_vm15, %v866_v45, %v1491_v48  ;;  %vm1368_vm1 = vcmp.gt.f32.partialorder %v3302_v53, 0.0  ;;  %v1496_v57 = vmul.f32 0.2, %v3302_v53 }
  0xea   : > { %3158 = vst [vmem:[%s3684_s24 + $0x18] sm:$0xff] %v2854_v50   ;;  %v2849_v59 = vpack.c.bf16 %v1619_v56, %v1618_v49  ;;  %v1683_v60 = vsel %vm1427_vm0, %v1122_v46, %v1555_v52  ;;  %v1560_v61 = vmul.f32 0.2, %v3366_v54  ;;  %v879_v62 = vpop.f32.mrf.mxu0  ;;  %v1135_v63 = vpop.f32.mrf.mxu1  ;;  %vm1432_vm2 = vcmp.gt.f32.partialorder %v3366_v54, 0.0 }
  0xeb   : > { %3190 = vst [vmem:[%s3684_s24 + $0x118] sm:$0xff] %v3014_v55   ;;  %v3009_v0 = vpack.c.bf16 %v1683_v60, %v1682_v58  ;;  %v1624_v1 = vsel %vm1368_vm1, %v3302_v53, %v1496_v57  ;;  %v1494_v2 = vmul.f32 0.2, %v879_v62  ;;  %vm1366_vm3 = vcmp.gt.f32.partialorder %v879_v62, 0.0 }
  0xec   : > { %3157 = vst [vmem:[%s3684_s24 + $0x10] sm:$0xff] %v2849_v59   ;;  %v3303_v3 = vpop.f32.mrf.mxu0  ;;  %v3367_v4 = vpop.f32.mrf.mxu1  ;;  %v1688_v6 = vsel %vm1432_vm2, %v3366_v54, %v1560_v61  ;;  %vm1430_vm6 = vcmp.gt.f32.partialorder %v1135_v63, 0.0  ;;  %v1558_v7 = vmul.f32 0.2, %v1135_v63 }
  0xed   : > { %3189 = vst [vmem:[%s3684_s24 + $0x110] sm:$0xff] %v3009_v0   ;;  %vm1369_vm4 = vcmp.gt.f32.partialorder %v3303_v3, 0.0  ;;  %v1497_v5 = vmul.f32 0.2, %v3303_v3  ;;  %vm1433_vm5 = vcmp.gt.f32.partialorder %v3367_v4, 0.0  ;;  %v1622_v13 = vsel %vm1366_vm3, %v879_v62, %v1494_v2 }
  0xee   : > { %v1561_v8 = vmul.f32 0.2, %v3367_v4  ;;  %v882_v9 = vpop.f32.mrf.mxu0  ;;  %v1138_v10 = vpop.f32.mrf.mxu1  ;;  %v1686_v22 = vsel %vm1430_vm6, %v1135_v63, %v1558_v7 }
  0xef   : > { %v1625_v11 = vsel %vm1369_vm4, %v3303_v3, %v1497_v5  ;;  %vm1367_vm7 = vcmp.gt.f32.partialorder %v882_v9, 0.0  ;;  %v1495_v12 = vmul.f32 0.2, %v882_v9  ;;  %vm1431_vm8 = vcmp.gt.f32.partialorder %v1138_v10, 0.0 }
  0xf0   : > { %v2864_v14 = vpack.c.bf16 %v1625_v11, %v1624_v1  ;;  %v1689_v15 = vsel %vm1433_vm5, %v3367_v4, %v1561_v8  ;;  %v1559_v16 = vmul.f32 0.2, %v1138_v10  ;;  %v3306_v17 = vpop.f32.mrf.mxu0  ;;  %v3370_v18 = vpop.f32.mrf.mxu1 }
  0xf1   : > { %v3024_v19 = vpack.c.bf16 %v1689_v15, %v1688_v6  ;;  %v1623_v20 = vsel %vm1367_vm7, %v882_v9, %v1495_v12  ;;  %vm1372_vm9 = vcmp.gt.f32.partialorder %v3306_v17, 0.0  ;;  %v1500_v21 = vmul.f32 0.2, %v3306_v17 }
  0xf2   : > { %3160 = vst [vmem:[%s3684_s24 + $0x28] sm:$0xff] %v2864_v14   ;;  %v2859_v23 = vpack.c.bf16 %v1623_v20, %v1622_v13  ;;  %v1687_v24 = vsel %vm1431_vm8, %v1138_v10, %v1559_v16  ;;  %v1564_v25 = vmul.f32 0.2, %v3370_v18  ;;  %v895_v26 = vpop.f32.mrf.mxu0  ;;  %v1151_v27 = vpop.f32.mrf.mxu1  ;;  %vm1436_vm10 = vcmp.gt.f32.partialorder %v3370_v18, 0.0 }
  0xf3   : > { %3192 = vst [vmem:[%s3684_s24 + $0x128] sm:$0xff] %v3024_v19   ;;  %v3019_v28 = vpack.c.bf16 %v1687_v24, %v1686_v22  ;;  %v1628_v29 = vsel %vm1372_vm9, %v3306_v17, %v1500_v21  ;;  %v1498_v30 = vmul.f32 0.2, %v895_v26  ;;  %vm1370_vm11 = vcmp.gt.f32.partialorder %v895_v26, 0.0 }
  0xf4   : > { %3159 = vst [vmem:[%s3684_s24 + $0x20] sm:$0xff] %v2859_v23   ;;  %v3307_v31 = vpop.f32.mrf.mxu0  ;;  %v3371_v32 = vpop.f32.mrf.mxu1  ;;  %v1692_v34 = vsel %vm1436_vm10, %v3370_v18, %v1564_v25  ;;  %vm1434_vm14 = vcmp.gt.f32.partialorder %v1151_v27, 0.0  ;;  %v1562_v35 = vmul.f32 0.2, %v1151_v27 }
  0xf5   : > { %3191 = vst [vmem:[%s3684_s24 + $0x120] sm:$0xff] %v3019_v28   ;;  %vm1373_vm12 = vcmp.gt.f32.partialorder %v3307_v31, 0.0  ;;  %v1501_v33 = vmul.f32 0.2, %v3307_v31  ;;  %vm1437_vm13 = vcmp.gt.f32.partialorder %v3371_v32, 0.0  ;;  %v1626_v41 = vsel %vm1370_vm11, %v895_v26, %v1498_v30 }
  0xf6   : > { %v1565_v36 = vmul.f32 0.2, %v3371_v32  ;;  %v898_v37 = vpop.f32.mrf.mxu0  ;;  %v1154_v38 = vpop.f32.mrf.mxu1  ;;  %v1690_v50 = vsel %vm1434_vm14, %v1151_v27, %v1562_v35 }
  0xf7   : > { %v1629_v39 = vsel %vm1373_vm12, %v3307_v31, %v1501_v33  ;;  %vm1371_vm15 = vcmp.gt.f32.partialorder %v898_v37, 0.0  ;;  %v1499_v40 = vmul.f32 0.2, %v898_v37  ;;  %vm1435_vm0 = vcmp.gt.f32.partialorder %v1154_v38, 0.0 }
  0xf8   : > { %v2874_v42 = vpack.c.bf16 %v1629_v39, %v1628_v29  ;;  %v1693_v43 = vsel %vm1437_vm13, %v3371_v32, %v1565_v36  ;;  %v1563_v44 = vmul.f32 0.2, %v1154_v38  ;;  %v3310_v45 = vpop.f32.mrf.mxu0  ;;  %v3374_v46 = vpop.f32.mrf.mxu1 }
  0xf9   : > { %v3034_v47 = vpack.c.bf16 %v1693_v43, %v1692_v34  ;;  %v1627_v48 = vsel %vm1371_vm15, %v898_v37, %v1499_v40  ;;  %vm1376_vm1 = vcmp.gt.f32.partialorder %v3310_v45, 0.0  ;;  %v1504_v49 = vmul.f32 0.2, %v3310_v45 }
  0xfa   : > { %3162 = vst [vmem:[%s3684_s24 + $0x38] sm:$0xff] %v2874_v42   ;;  %v2869_v51 = vpack.c.bf16 %v1627_v48, %v1626_v41  ;;  %v1691_v52 = vsel %vm1435_vm0, %v1154_v38, %v1563_v44  ;;  %v1568_v53 = vmul.f32 0.2, %v3374_v46  ;;  %v911_v54 = vpop.f32.mrf.mxu0  ;;  %v1167_v55 = vpop.f32.mrf.mxu1  ;;  %vm1440_vm2 = vcmp.gt.f32.partialorder %v3374_v46, 0.0 }
  0xfb   : > { %3194 = vst [vmem:[%s3684_s24 + $0x138] sm:$0xff] %v3034_v47   ;;  %v3029_v56 = vpack.c.bf16 %v1691_v52, %v1690_v50  ;;  %v1632_v57 = vsel %vm1376_vm1, %v3310_v45, %v1504_v49  ;;  %v1502_v58 = vmul.f32 0.2, %v911_v54  ;;  %vm1374_vm3 = vcmp.gt.f32.partialorder %v911_v54, 0.0 }
  0xfc   : > { %3161 = vst [vmem:[%s3684_s24 + $0x30] sm:$0xff] %v2869_v51   ;;  %v3311_v59 = vpop.f32.mrf.mxu0  ;;  %v3375_v60 = vpop.f32.mrf.mxu1  ;;  %v1696_v62 = vsel %vm1440_vm2, %v3374_v46, %v1568_v53  ;;  %vm1438_vm6 = vcmp.gt.f32.partialorder %v1167_v55, 0.0  ;;  %v1566_v63 = vmul.f32 0.2, %v1167_v55 }
  0xfd   : > { %3193 = vst [vmem:[%s3684_s24 + $0x130] sm:$0xff] %v3029_v56   ;;  %vm1377_vm4 = vcmp.gt.f32.partialorder %v3311_v59, 0.0  ;;  %v1505_v61 = vmul.f32 0.2, %v3311_v59  ;;  %vm1441_vm5 = vcmp.gt.f32.partialorder %v3375_v60, 0.0  ;;  %v1630_v5 = vsel %vm1374_vm3, %v911_v54, %v1502_v58 }
  0xfe   : > { %v1569_v0 = vmul.f32 0.2, %v3375_v60  ;;  %v914_v1 = vpop.f32.mrf.mxu0  ;;  %v1170_v2 = vpop.f32.mrf.mxu1  ;;  %v1694_v14 = vsel %vm1438_vm6, %v1167_v55, %v1566_v63 }
  0xff   : > { %v1633_v3 = vsel %vm1377_vm4, %v3311_v59, %v1505_v61  ;;  %vm1375_vm7 = vcmp.gt.f32.partialorder %v914_v1, 0.0  ;;  %v1503_v4 = vmul.f32 0.2, %v914_v1  ;;  %vm1439_vm8 = vcmp.gt.f32.partialorder %v1170_v2, 0.0 }
 0x100   : > { %v2884_v6 = vpack.c.bf16 %v1633_v3, %v1632_v57  ;;  %v1697_v7 = vsel %vm1441_vm5, %v3375_v60, %v1569_v0  ;;  %v1567_v8 = vmul.f32 0.2, %v1170_v2  ;;  %v3314_v9 = vpop.f32.mrf.mxu0  ;;  %v3378_v10 = vpop.f32.mrf.mxu1 }
 0x101   : > { %v3044_v11 = vpack.c.bf16 %v1697_v7, %v1696_v62  ;;  %v1631_v12 = vsel %vm1375_vm7, %v914_v1, %v1503_v4  ;;  %vm1380_vm9 = vcmp.gt.f32.partialorder %v3314_v9, 0.0  ;;  %v1508_v13 = vmul.f32 0.2, %v3314_v9 }
 0x102   : > { %3164 = vst [vmem:[%s3684_s24 + $0x48] sm:$0xff] %v2884_v6   ;;  %v2879_v15 = vpack.c.bf16 %v1631_v12, %v1630_v5  ;;  %v1695_v16 = vsel %vm1439_vm8, %v1170_v2, %v1567_v8  ;;  %v1572_v17 = vmul.f32 0.2, %v3378_v10  ;;  %v927_v18 = vpop.f32.mrf.mxu0  ;;  %v1183_v19 = vpop.f32.mrf.mxu1  ;;  %vm1444_vm10 = vcmp.gt.f32.partialorder %v3378_v10, 0.0 }
 0x103   : > { %3196 = vst [vmem:[%s3684_s24 + $0x148] sm:$0xff] %v3044_v11   ;;  %v3039_v20 = vpack.c.bf16 %v1695_v16, %v1694_v14  ;;  %v1636_v21 = vsel %vm1380_vm9, %v3314_v9, %v1508_v13  ;;  %v1506_v22 = vmul.f32 0.2, %v927_v18  ;;  %vm1378_vm11 = vcmp.gt.f32.partialorder %v927_v18, 0.0 }
 0x104   : > { %3163 = vst [vmem:[%s3684_s24 + $0x40] sm:$0xff] %v2879_v15   ;;  %v3315_v23 = vpop.f32.mrf.mxu0  ;;  %v3379_v24 = vpop.f32.mrf.mxu1  ;;  %v1700_v26 = vsel %vm1444_vm10, %v3378_v10, %v1572_v17  ;;  %vm1442_vm14 = vcmp.gt.f32.partialorder %v1183_v19, 0.0  ;;  %v1570_v27 = vmul.f32 0.2, %v1183_v19 }
 0x105   : > { %3195 = vst [vmem:[%s3684_s24 + $0x140] sm:$0xff] %v3039_v20   ;;  %vm1381_vm12 = vcmp.gt.f32.partialorder %v3315_v23, 0.0  ;;  %v1509_v25 = vmul.f32 0.2, %v3315_v23  ;;  %vm1445_vm13 = vcmp.gt.f32.partialorder %v3379_v24, 0.0  ;;  %v1634_v33 = vsel %vm1378_vm11, %v927_v18, %v1506_v22 }
 0x106   : > { %v1573_v28 = vmul.f32 0.2, %v3379_v24  ;;  %v930_v29 = vpop.f32.mrf.mxu0  ;;  %v1186_v30 = vpop.f32.mrf.mxu1  ;;  %v1698_v42 = vsel %vm1442_vm14, %v1183_v19, %v1570_v27 }
 0x107   : > { %v1637_v31 = vsel %vm1381_vm12, %v3315_v23, %v1509_v25  ;;  %vm1379_vm15 = vcmp.gt.f32.partialorder %v930_v29, 0.0  ;;  %v1507_v32 = vmul.f32 0.2, %v930_v29  ;;  %vm1443_vm0 = vcmp.gt.f32.partialorder %v1186_v30, 0.0 }
 0x108   : > { %v2894_v34 = vpack.c.bf16 %v1637_v31, %v1636_v21  ;;  %v1701_v35 = vsel %vm1445_vm13, %v3379_v24, %v1573_v28  ;;  %v1571_v36 = vmul.f32 0.2, %v1186_v30  ;;  %v3318_v37 = vpop.f32.mrf.mxu0  ;;  %v3382_v38 = vpop.f32.mrf.mxu1 }
 0x109   : > { %v3054_v39 = vpack.c.bf16 %v1701_v35, %v1700_v26  ;;  %v1635_v40 = vsel %vm1379_vm15, %v930_v29, %v1507_v32  ;;  %vm1384_vm1 = vcmp.gt.f32.partialorder %v3318_v37, 0.0  ;;  %v1512_v41 = vmul.f32 0.2, %v3318_v37 }
 0x10a   : > { %3166 = vst [vmem:[%s3684_s24 + $0x58] sm:$0xff] %v2894_v34   ;;  %v2889_v43 = vpack.c.bf16 %v1635_v40, %v1634_v33  ;;  %v1699_v44 = vsel %vm1443_vm0, %v1186_v30, %v1571_v36  ;;  %v1576_v45 = vmul.f32 0.2, %v3382_v38  ;;  %v943_v46 = vpop.f32.mrf.mxu0  ;;  %v1199_v47 = vpop.f32.mrf.mxu1  ;;  %vm1448_vm2 = vcmp.gt.f32.partialorder %v3382_v38, 0.0 }
 0x10b   : > { %3198 = vst [vmem:[%s3684_s24 + $0x158] sm:$0xff] %v3054_v39   ;;  %v3049_v48 = vpack.c.bf16 %v1699_v44, %v1698_v42  ;;  %v1640_v49 = vsel %vm1384_vm1, %v3318_v37, %v1512_v41  ;;  %v1510_v50 = vmul.f32 0.2, %v943_v46  ;;  %vm1382_vm3 = vcmp.gt.f32.partialorder %v943_v46, 0.0 }
 0x10c   : > { %3165 = vst [vmem:[%s3684_s24 + $0x50] sm:$0xff] %v2889_v43   ;;  %v3319_v51 = vpop.f32.mrf.mxu0  ;;  %v3383_v52 = vpop.f32.mrf.mxu1  ;;  %v1704_v54 = vsel %vm1448_vm2, %v3382_v38, %v1576_v45  ;;  %vm1446_vm6 = vcmp.gt.f32.partialorder %v1199_v47, 0.0  ;;  %v1574_v55 = vmul.f32 0.2, %v1199_v47 }
 0x10d   : > { %3197 = vst [vmem:[%s3684_s24 + $0x150] sm:$0xff] %v3049_v48   ;;  %vm1385_vm4 = vcmp.gt.f32.partialorder %v3319_v51, 0.0  ;;  %v1513_v53 = vmul.f32 0.2, %v3319_v51  ;;  %vm1449_vm5 = vcmp.gt.f32.partialorder %v3383_v52, 0.0  ;;  %v1638_v61 = vsel %vm1382_vm3, %v943_v46, %v1510_v50 }
 0x10e   : > { %v1577_v56 = vmul.f32 0.2, %v3383_v52  ;;  %v946_v57 = vpop.f32.mrf.mxu0  ;;  %v1202_v58 = vpop.f32.mrf.mxu1  ;;  %v1702_v6 = vsel %vm1446_vm6, %v1199_v47, %v1574_v55 }
 0x10f   : > { %v1641_v59 = vsel %vm1385_vm4, %v3319_v51, %v1513_v53  ;;  %vm1383_vm7 = vcmp.gt.f32.partialorder %v946_v57, 0.0  ;;  %v1511_v60 = vmul.f32 0.2, %v946_v57  ;;  %vm1447_vm8 = vcmp.gt.f32.partialorder %v1202_v58, 0.0 }
 0x110   : > { %v2904_v62 = vpack.c.bf16 %v1641_v59, %v1640_v49  ;;  %v1705_v63 = vsel %vm1449_vm5, %v3383_v52, %v1577_v56  ;;  %v1575_v0 = vmul.f32 0.2, %v1202_v58  ;;  %v3322_v1 = vpop.f32.mrf.mxu0  ;;  %v3386_v2 = vpop.f32.mrf.mxu1 }
 0x111   : > { %v3064_v3 = vpack.c.bf16 %v1705_v63, %v1704_v54  ;;  %v1639_v4 = vsel %vm1383_vm7, %v946_v57, %v1511_v60  ;;  %vm1388_vm9 = vcmp.gt.f32.partialorder %v3322_v1, 0.0  ;;  %v1516_v5 = vmul.f32 0.2, %v3322_v1 }
 0x112   : > { %3168 = vst [vmem:[%s3684_s24 + $0x68] sm:$0xff] %v2904_v62   ;;  %v2899_v7 = vpack.c.bf16 %v1639_v4, %v1638_v61  ;;  %v1703_v8 = vsel %vm1447_vm8, %v1202_v58, %v1575_v0  ;;  %v1580_v9 = vmul.f32 0.2, %v3386_v2  ;;  %v959_v10 = vpop.f32.mrf.mxu0  ;;  %v1215_v11 = vpop.f32.mrf.mxu1  ;;  %vm1452_vm10 = vcmp.gt.f32.partialorder %v3386_v2, 0.0 }
 0x113   : > { %3200 = vst [vmem:[%s3684_s24 + $0x168] sm:$0xff] %v3064_v3   ;;  %v3059_v12 = vpack.c.bf16 %v1703_v8, %v1702_v6  ;;  %v1644_v13 = vsel %vm1388_vm9, %v3322_v1, %v1516_v5  ;;  %v1514_v14 = vmul.f32 0.2, %v959_v10  ;;  %vm1386_vm11 = vcmp.gt.f32.partialorder %v959_v10, 0.0 }
 0x114   : > { %3167 = vst [vmem:[%s3684_s24 + $0x60] sm:$0xff] %v2899_v7   ;;  %v3323_v15 = vpop.f32.mrf.mxu0  ;;  %v3387_v16 = vpop.f32.mrf.mxu1  ;;  %v1708_v18 = vsel %vm1452_vm10, %v3386_v2, %v1580_v9  ;;  %vm1450_vm14 = vcmp.gt.f32.partialorder %v1215_v11, 0.0  ;;  %v1578_v19 = vmul.f32 0.2, %v1215_v11 }
 0x115   : > { %3199 = vst [vmem:[%s3684_s24 + $0x160] sm:$0xff] %v3059_v12   ;;  %vm1389_vm12 = vcmp.gt.f32.partialorder %v3323_v15, 0.0  ;;  %v1517_v17 = vmul.f32 0.2, %v3323_v15  ;;  %vm1453_vm13 = vcmp.gt.f32.partialorder %v3387_v16, 0.0  ;;  %v1642_v25 = vsel %vm1386_vm11, %v959_v10, %v1514_v14 }
 0x116   : > { %v1581_v20 = vmul.f32 0.2, %v3387_v16  ;;  %v962_v21 = vpop.f32.mrf.mxu0  ;;  %v1218_v22 = vpop.f32.mrf.mxu1  ;;  %v1706_v34 = vsel %vm1450_vm14, %v1215_v11, %v1578_v19 }
 0x117   : > { %v1645_v23 = vsel %vm1389_vm12, %v3323_v15, %v1517_v17  ;;  %vm1387_vm15 = vcmp.gt.f32.partialorder %v962_v21, 0.0  ;;  %v1515_v24 = vmul.f32 0.2, %v962_v21  ;;  %vm1451_vm0 = vcmp.gt.f32.partialorder %v1218_v22, 0.0 }
 0x118   : > { %v2914_v26 = vpack.c.bf16 %v1645_v23, %v1644_v13  ;;  %v1709_v27 = vsel %vm1453_vm13, %v3387_v16, %v1581_v20  ;;  %v1579_v28 = vmul.f32 0.2, %v1218_v22  ;;  %v3326_v29 = vpop.f32.mrf.mxu0  ;;  %v3390_v30 = vpop.f32.mrf.mxu1 }
 0x119   : > { %v3074_v31 = vpack.c.bf16 %v1709_v27, %v1708_v18  ;;  %v1643_v32 = vsel %vm1387_vm15, %v962_v21, %v1515_v24  ;;  %vm1392_vm1 = vcmp.gt.f32.partialorder %v3326_v29, 0.0  ;;  %v1520_v33 = vmul.f32 0.2, %v3326_v29 }
 0x11a   : > { %3170 = vst [vmem:[%s3684_s24 + $0x78] sm:$0xff] %v2914_v26   ;;  %v2909_v35 = vpack.c.bf16 %v1643_v32, %v1642_v25  ;;  %v1707_v36 = vsel %vm1451_vm0, %v1218_v22, %v1579_v28  ;;  %v1584_v37 = vmul.f32 0.2, %v3390_v30  ;;  %v975_v38 = vpop.f32.mrf.mxu0  ;;  %v1231_v39 = vpop.f32.mrf.mxu1  ;;  %vm1456_vm2 = vcmp.gt.f32.partialorder %v3390_v30, 0.0 }
 0x11b   : > { %3202 = vst [vmem:[%s3684_s24 + $0x178] sm:$0xff] %v3074_v31   ;;  %v3069_v40 = vpack.c.bf16 %v1707_v36, %v1706_v34  ;;  %v1648_v41 = vsel %vm1392_vm1, %v3326_v29, %v1520_v33  ;;  %v1518_v42 = vmul.f32 0.2, %v975_v38  ;;  %vm1390_vm3 = vcmp.gt.f32.partialorder %v975_v38, 0.0 }
 0x11c   : > { %3169 = vst [vmem:[%s3684_s24 + $0x70] sm:$0xff] %v2909_v35   ;;  %v3327_v43 = vpop.f32.mrf.mxu0  ;;  %v3391_v44 = vpop.f32.mrf.mxu1  ;;  %v1712_v46 = vsel %vm1456_vm2, %v3390_v30, %v1584_v37  ;;  %vm1454_vm6 = vcmp.gt.f32.partialorder %v1231_v39, 0.0  ;;  %v1582_v47 = vmul.f32 0.2, %v1231_v39 }
 0x11d   : > { %3201 = vst [vmem:[%s3684_s24 + $0x170] sm:$0xff] %v3069_v40   ;;  %vm1393_vm4 = vcmp.gt.f32.partialorder %v3327_v43, 0.0  ;;  %v1521_v45 = vmul.f32 0.2, %v3327_v43  ;;  %vm1457_vm5 = vcmp.gt.f32.partialorder %v3391_v44, 0.0  ;;  %v1646_v53 = vsel %vm1390_vm3, %v975_v38, %v1518_v42 }
 0x11e   : > { %v1585_v48 = vmul.f32 0.2, %v3391_v44  ;;  %v978_v49 = vpop.f32.mrf.mxu0  ;;  %v1234_v50 = vpop.f32.mrf.mxu1  ;;  %v1710_v62 = vsel %vm1454_vm6, %v1231_v39, %v1582_v47 }
 0x11f   : > { %v1649_v51 = vsel %vm1393_vm4, %v3327_v43, %v1521_v45  ;;  %vm1391_vm7 = vcmp.gt.f32.partialorder %v978_v49, 0.0  ;;  %v1519_v52 = vmul.f32 0.2, %v978_v49  ;;  %vm1455_vm8 = vcmp.gt.f32.partialorder %v1234_v50, 0.0 }
 0x120   : > { %v2924_v54 = vpack.c.bf16 %v1649_v51, %v1648_v41  ;;  %v1713_v55 = vsel %vm1457_vm5, %v3391_v44, %v1585_v48  ;;  %v1583_v56 = vmul.f32 0.2, %v1234_v50  ;;  %v3330_v57 = vpop.f32.mrf.mxu0  ;;  %v3394_v58 = vpop.f32.mrf.mxu1 }
 0x121   : > { %v3084_v59 = vpack.c.bf16 %v1713_v55, %v1712_v46  ;;  %v1647_v60 = vsel %vm1391_vm7, %v978_v49, %v1519_v52  ;;  %vm1396_vm9 = vcmp.gt.f32.partialorder %v3330_v57, 0.0  ;;  %v1524_v61 = vmul.f32 0.2, %v3330_v57 }
 0x122   : > { %3172 = vst [vmem:[%s3684_s24 + $0x88] sm:$0xff] %v2924_v54   ;;  %v2919_v63 = vpack.c.bf16 %v1647_v60, %v1646_v53  ;;  %v1711_v0 = vsel %vm1455_vm8, %v1234_v50, %v1583_v56  ;;  %v1588_v1 = vmul.f32 0.2, %v3394_v58  ;;  %v991_v2 = vpop.f32.mrf.mxu0  ;;  %v1247_v3 = vpop.f32.mrf.mxu1  ;;  %vm1460_vm10 = vcmp.gt.f32.partialorder %v3394_v58, 0.0 }
 0x123   : > { %3204 = vst [vmem:[%s3684_s24 + $0x188] sm:$0xff] %v3084_v59   ;;  %v3079_v4 = vpack.c.bf16 %v1711_v0, %v1710_v62  ;;  %v1652_v5 = vsel %vm1396_vm9, %v3330_v57, %v1524_v61  ;;  %v1522_v6 = vmul.f32 0.2, %v991_v2  ;;  %vm1394_vm11 = vcmp.gt.f32.partialorder %v991_v2, 0.0 }
 0x124   : > { %3171 = vst [vmem:[%s3684_s24 + $0x80] sm:$0xff] %v2919_v63   ;;  %v3331_v7 = vpop.f32.mrf.mxu0  ;;  %v3395_v8 = vpop.f32.mrf.mxu1  ;;  %v1716_v10 = vsel %vm1460_vm10, %v3394_v58, %v1588_v1  ;;  %vm1458_vm14 = vcmp.gt.f32.partialorder %v1247_v3, 0.0  ;;  %v1586_v11 = vmul.f32 0.2, %v1247_v3 }
 0x125   : > { %3203 = vst [vmem:[%s3684_s24 + $0x180] sm:$0xff] %v3079_v4   ;;  %vm1397_vm12 = vcmp.gt.f32.partialorder %v3331_v7, 0.0  ;;  %v1525_v9 = vmul.f32 0.2, %v3331_v7  ;;  %vm1461_vm13 = vcmp.gt.f32.partialorder %v3395_v8, 0.0  ;;  %v1650_v17 = vsel %vm1394_vm11, %v991_v2, %v1522_v6 }
 0x126   : > { %v1589_v12 = vmul.f32 0.2, %v3395_v8  ;;  %v994_v13 = vpop.f32.mrf.mxu0  ;;  %v1250_v14 = vpop.f32.mrf.mxu1  ;;  %v1714_v26 = vsel %vm1458_vm14, %v1247_v3, %v1586_v11 }
 0x127   : > { %v1653_v15 = vsel %vm1397_vm12, %v3331_v7, %v1525_v9  ;;  %vm1395_vm15 = vcmp.gt.f32.partialorder %v994_v13, 0.0  ;;  %v1523_v16 = vmul.f32 0.2, %v994_v13  ;;  %vm1459_vm0 = vcmp.gt.f32.partialorder %v1250_v14, 0.0 }
 0x128   : > { %v2934_v18 = vpack.c.bf16 %v1653_v15, %v1652_v5  ;;  %v1717_v19 = vsel %vm1461_vm13, %v3395_v8, %v1589_v12  ;;  %v1587_v20 = vmul.f32 0.2, %v1250_v14  ;;  %v3334_v21 = vpop.f32.mrf.mxu0  ;;  %v3398_v22 = vpop.f32.mrf.mxu1 }
 0x129   : > { %v3094_v23 = vpack.c.bf16 %v1717_v19, %v1716_v10  ;;  %v1651_v24 = vsel %vm1395_vm15, %v994_v13, %v1523_v16  ;;  %vm1400_vm1 = vcmp.gt.f32.partialorder %v3334_v21, 0.0  ;;  %v1528_v25 = vmul.f32 0.2, %v3334_v21 }
 0x12a   : > { %3174 = vst [vmem:[%s3684_s24 + $0x98] sm:$0xff] %v2934_v18   ;;  %v2929_v27 = vpack.c.bf16 %v1651_v24, %v1650_v17  ;;  %v1715_v28 = vsel %vm1459_vm0, %v1250_v14, %v1587_v20  ;;  %v1592_v29 = vmul.f32 0.2, %v3398_v22  ;;  %v1007_v30 = vpop.f32.mrf.mxu0  ;;  %v1263_v31 = vpop.f32.mrf.mxu1  ;;  %vm1464_vm2 = vcmp.gt.f32.partialorder %v3398_v22, 0.0 }
 0x12b   : > { %3206 = vst [vmem:[%s3684_s24 + $0x198] sm:$0xff] %v3094_v23   ;;  %v3089_v32 = vpack.c.bf16 %v1715_v28, %v1714_v26  ;;  %v1656_v33 = vsel %vm1400_vm1, %v3334_v21, %v1528_v25  ;;  %v1526_v34 = vmul.f32 0.2, %v1007_v30  ;;  %vm1398_vm3 = vcmp.gt.f32.partialorder %v1007_v30, 0.0 }
 0x12c   : > { %3173 = vst [vmem:[%s3684_s24 + $0x90] sm:$0xff] %v2929_v27   ;;  %v3335_v35 = vpop.f32.mrf.mxu0  ;;  %v3399_v36 = vpop.f32.mrf.mxu1  ;;  %v1720_v38 = vsel %vm1464_vm2, %v3398_v22, %v1592_v29  ;;  %vm1462_vm6 = vcmp.gt.f32.partialorder %v1263_v31, 0.0  ;;  %v1590_v39 = vmul.f32 0.2, %v1263_v31 }
 0x12d   : > { %3205 = vst [vmem:[%s3684_s24 + $0x190] sm:$0xff] %v3089_v32   ;;  %vm1401_vm4 = vcmp.gt.f32.partialorder %v3335_v35, 0.0  ;;  %v1529_v37 = vmul.f32 0.2, %v3335_v35  ;;  %vm1465_vm5 = vcmp.gt.f32.partialorder %v3399_v36, 0.0  ;;  %v1654_v45 = vsel %vm1398_vm3, %v1007_v30, %v1526_v34 }
 0x12e   : > { %v1593_v40 = vmul.f32 0.2, %v3399_v36  ;;  %v1010_v41 = vpop.f32.mrf.mxu0  ;;  %v1266_v42 = vpop.f32.mrf.mxu1  ;;  %v1718_v54 = vsel %vm1462_vm6, %v1263_v31, %v1590_v39 }
 0x12f   : > { %v1657_v43 = vsel %vm1401_vm4, %v3335_v35, %v1529_v37  ;;  %vm1399_vm7 = vcmp.gt.f32.partialorder %v1010_v41, 0.0  ;;  %v1527_v44 = vmul.f32 0.2, %v1010_v41  ;;  %vm1463_vm8 = vcmp.gt.f32.partialorder %v1266_v42, 0.0 }
 0x130   : > { %v2944_v46 = vpack.c.bf16 %v1657_v43, %v1656_v33  ;;  %v1721_v47 = vsel %vm1465_vm5, %v3399_v36, %v1593_v40  ;;  %v1591_v48 = vmul.f32 0.2, %v1266_v42  ;;  %v3338_v49 = vpop.f32.mrf.mxu0  ;;  %v3402_v50 = vpop.f32.mrf.mxu1 }
 0x131   : > { %v3104_v51 = vpack.c.bf16 %v1721_v47, %v1720_v38  ;;  %v1655_v52 = vsel %vm1399_vm7, %v1010_v41, %v1527_v44  ;;  %vm1404_vm9 = vcmp.gt.f32.partialorder %v3338_v49, 0.0  ;;  %v1532_v53 = vmul.f32 0.2, %v3338_v49 }
 0x132   : > { %3176 = vst [vmem:[%s3684_s24 + $0xa8] sm:$0xff] %v2944_v46   ;;  %v2939_v55 = vpack.c.bf16 %v1655_v52, %v1654_v45  ;;  %v1719_v56 = vsel %vm1463_vm8, %v1266_v42, %v1591_v48  ;;  %v1596_v57 = vmul.f32 0.2, %v3402_v50  ;;  %v1023_v58 = vpop.f32.mrf.mxu0  ;;  %v1279_v59 = vpop.f32.mrf.mxu1  ;;  %vm1468_vm10 = vcmp.gt.f32.partialorder %v3402_v50, 0.0 }
 0x133   : > { %3208 = vst [vmem:[%s3684_s24 + $0x1a8] sm:$0xff] %v3104_v51   ;;  %v3099_v60 = vpack.c.bf16 %v1719_v56, %v1718_v54  ;;  %v1660_v61 = vsel %vm1404_vm9, %v3338_v49, %v1532_v53  ;;  %v1530_v62 = vmul.f32 0.2, %v1023_v58  ;;  %vm1402_vm11 = vcmp.gt.f32.partialorder %v1023_v58, 0.0 }
 0x134   : > { %3175 = vst [vmem:[%s3684_s24 + $0xa0] sm:$0xff] %v2939_v55   ;;  %v3339_v63 = vpop.f32.mrf.mxu0  ;;  %v3403_v0 = vpop.f32.mrf.mxu1  ;;  %v1724_v2 = vsel %vm1468_vm10, %v3402_v50, %v1596_v57  ;;  %vm1466_vm14 = vcmp.gt.f32.partialorder %v1279_v59, 0.0  ;;  %v1594_v3 = vmul.f32 0.2, %v1279_v59 }
 0x135   : > { %3207 = vst [vmem:[%s3684_s24 + $0x1a0] sm:$0xff] %v3099_v60   ;;  %vm1405_vm12 = vcmp.gt.f32.partialorder %v3339_v63, 0.0  ;;  %v1533_v1 = vmul.f32 0.2, %v3339_v63  ;;  %vm1469_vm13 = vcmp.gt.f32.partialorder %v3403_v0, 0.0  ;;  %v1658_v9 = vsel %vm1402_vm11, %v1023_v58, %v1530_v62 }
 0x136   : > { %v1597_v4 = vmul.f32 0.2, %v3403_v0  ;;  %v1026_v5 = vpop.f32.mrf.mxu0  ;;  %v1282_v6 = vpop.f32.mrf.mxu1  ;;  %v1722_v18 = vsel %vm1466_vm14, %v1279_v59, %v1594_v3 }
 0x137   : > { %v1661_v7 = vsel %vm1405_vm12, %v3339_v63, %v1533_v1  ;;  %vm1403_vm15 = vcmp.gt.f32.partialorder %v1026_v5, 0.0  ;;  %v1531_v8 = vmul.f32 0.2, %v1026_v5  ;;  %vm1467_vm0 = vcmp.gt.f32.partialorder %v1282_v6, 0.0 }
 0x138   : > { %v2954_v10 = vpack.c.bf16 %v1661_v7, %v1660_v61  ;;  %v1725_v11 = vsel %vm1469_vm13, %v3403_v0, %v1597_v4  ;;  %v1595_v12 = vmul.f32 0.2, %v1282_v6  ;;  %v3342_v13 = vpop.f32.mrf.mxu0  ;;  %v3406_v14 = vpop.f32.mrf.mxu1 }
 0x139   : > { %v3114_v15 = vpack.c.bf16 %v1725_v11, %v1724_v2  ;;  %v1659_v16 = vsel %vm1403_vm15, %v1026_v5, %v1531_v8  ;;  %vm1408_vm1 = vcmp.gt.f32.partialorder %v3342_v13, 0.0  ;;  %v1536_v17 = vmul.f32 0.2, %v3342_v13 }
 0x13a   : > { %3178 = vst [vmem:[%s3684_s24 + $0xb8] sm:$0xff] %v2954_v10   ;;  %v2949_v19 = vpack.c.bf16 %v1659_v16, %v1658_v9  ;;  %v1723_v20 = vsel %vm1467_vm0, %v1282_v6, %v1595_v12  ;;  %v1600_v21 = vmul.f32 0.2, %v3406_v14  ;;  %v1039_v22 = vpop.f32.mrf.mxu0  ;;  %v1295_v23 = vpop.f32.mrf.mxu1  ;;  %vm1472_vm2 = vcmp.gt.f32.partialorder %v3406_v14, 0.0 }
 0x13b   : > { %3210 = vst [vmem:[%s3684_s24 + $0x1b8] sm:$0xff] %v3114_v15   ;;  %v3109_v24 = vpack.c.bf16 %v1723_v20, %v1722_v18  ;;  %v1664_v25 = vsel %vm1408_vm1, %v3342_v13, %v1536_v17  ;;  %v1534_v26 = vmul.f32 0.2, %v1039_v22  ;;  %vm1406_vm3 = vcmp.gt.f32.partialorder %v1039_v22, 0.0 }
 0x13c   : > { %3177 = vst [vmem:[%s3684_s24 + $0xb0] sm:$0xff] %v2949_v19   ;;  %v3343_v27 = vpop.f32.mrf.mxu0  ;;  %v3407_v28 = vpop.f32.mrf.mxu1  ;;  %v1728_v30 = vsel %vm1472_vm2, %v3406_v14, %v1600_v21  ;;  %vm1470_vm6 = vcmp.gt.f32.partialorder %v1295_v23, 0.0  ;;  %v1598_v31 = vmul.f32 0.2, %v1295_v23 }
 0x13d   : > { %3209 = vst [vmem:[%s3684_s24 + $0x1b0] sm:$0xff] %v3109_v24   ;;  %vm1409_vm4 = vcmp.gt.f32.partialorder %v3343_v27, 0.0  ;;  %v1537_v29 = vmul.f32 0.2, %v3343_v27  ;;  %vm1473_vm5 = vcmp.gt.f32.partialorder %v3407_v28, 0.0  ;;  %v1662_v37 = vsel %vm1406_vm3, %v1039_v22, %v1534_v26 }
 0x13e   : > { %v1601_v32 = vmul.f32 0.2, %v3407_v28  ;;  %v1042_v33 = vpop.f32.mrf.mxu0  ;;  %v1298_v34 = vpop.f32.mrf.mxu1  ;;  %v1726_v46 = vsel %vm1470_vm6, %v1295_v23, %v1598_v31 }
 0x13f   : > { %v1665_v35 = vsel %vm1409_vm4, %v3343_v27, %v1537_v29  ;;  %vm1407_vm7 = vcmp.gt.f32.partialorder %v1042_v33, 0.0  ;;  %v1535_v36 = vmul.f32 0.2, %v1042_v33  ;;  %vm1471_vm8 = vcmp.gt.f32.partialorder %v1298_v34, 0.0 }
 0x140   : > { %v2964_v38 = vpack.c.bf16 %v1665_v35, %v1664_v25  ;;  %v1729_v39 = vsel %vm1473_vm5, %v3407_v28, %v1601_v32  ;;  %v1599_v40 = vmul.f32 0.2, %v1298_v34  ;;  %v3346_v41 = vpop.f32.mrf.mxu0  ;;  %v3410_v42 = vpop.f32.mrf.mxu1 }
 0x141   : > { %v3124_v43 = vpack.c.bf16 %v1729_v39, %v1728_v30  ;;  %v1663_v44 = vsel %vm1407_vm7, %v1042_v33, %v1535_v36  ;;  %vm1412_vm9 = vcmp.gt.f32.partialorder %v3346_v41, 0.0  ;;  %v1540_v45 = vmul.f32 0.2, %v3346_v41 }
 0x142   : > { %3180 = vst [vmem:[%s3684_s24 + $0xc8] sm:$0xff] %v2964_v38   ;;  %v2959_v47 = vpack.c.bf16 %v1663_v44, %v1662_v37  ;;  %v1727_v48 = vsel %vm1471_vm8, %v1298_v34, %v1599_v40  ;;  %v1604_v49 = vmul.f32 0.2, %v3410_v42  ;;  %v1055_v50 = vpop.f32.mrf.mxu0  ;;  %v1311_v51 = vpop.f32.mrf.mxu1  ;;  %vm1476_vm10 = vcmp.gt.f32.partialorder %v3410_v42, 0.0 }
 0x143   : > { %3212 = vst [vmem:[%s3684_s24 + $0x1c8] sm:$0xff] %v3124_v43   ;;  %v3119_v52 = vpack.c.bf16 %v1727_v48, %v1726_v46  ;;  %v1668_v53 = vsel %vm1412_vm9, %v3346_v41, %v1540_v45  ;;  %v1538_v54 = vmul.f32 0.2, %v1055_v50  ;;  %vm1410_vm11 = vcmp.gt.f32.partialorder %v1055_v50, 0.0 }
 0x144   : > { %3179 = vst [vmem:[%s3684_s24 + $0xc0] sm:$0xff] %v2959_v47   ;;  %v3347_v55 = vpop.f32.mrf.mxu0  ;;  %v3411_v56 = vpop.f32.mrf.mxu1  ;;  %v1732_v58 = vsel %vm1476_vm10, %v3410_v42, %v1604_v49  ;;  %vm1474_vm14 = vcmp.gt.f32.partialorder %v1311_v51, 0.0  ;;  %v1602_v59 = vmul.f32 0.2, %v1311_v51 }
 0x145   : > { %3211 = vst [vmem:[%s3684_s24 + $0x1c0] sm:$0xff] %v3119_v52   ;;  %vm1413_vm12 = vcmp.gt.f32.partialorder %v3347_v55, 0.0  ;;  %v1541_v57 = vmul.f32 0.2, %v3347_v55  ;;  %vm1477_vm13 = vcmp.gt.f32.partialorder %v3411_v56, 0.0  ;;  %v1666_v1 = vsel %vm1410_vm11, %v1055_v50, %v1538_v54 }
 0x146   : > { %v1605_v60 = vmul.f32 0.2, %v3411_v56  ;;  %v1058_v61 = vpop.f32.mrf.mxu0  ;;  %v1314_v62 = vpop.f32.mrf.mxu1  ;;  %v1730_v10 = vsel %vm1474_vm14, %v1311_v51, %v1602_v59 }
 0x147   : > { %v1669_v63 = vsel %vm1413_vm12, %v3347_v55, %v1541_v57  ;;  %vm1411_vm15 = vcmp.gt.f32.partialorder %v1058_v61, 0.0  ;;  %v1539_v0 = vmul.f32 0.2, %v1058_v61  ;;  %vm1475_vm0 = vcmp.gt.f32.partialorder %v1314_v62, 0.0 }
 0x148   : > { %v2974_v2 = vpack.c.bf16 %v1669_v63, %v1668_v53  ;;  %v1733_v3 = vsel %vm1477_vm13, %v3411_v56, %v1605_v60  ;;  %v1603_v4 = vmul.f32 0.2, %v1314_v62  ;;  %v3350_v5 = vpop.f32.mrf.mxu0  ;;  %v3414_v6 = vpop.f32.mrf.mxu1 }
 0x149   : > { %v3134_v7 = vpack.c.bf16 %v1733_v3, %v1732_v58  ;;  %v1667_v8 = vsel %vm1411_vm15, %v1058_v61, %v1539_v0  ;;  %vm1416_vm1 = vcmp.gt.f32.partialorder %v3350_v5, 0.0  ;;  %v1544_v9 = vmul.f32 0.2, %v3350_v5 }
 0x14a   : > { %3182 = vst [vmem:[%s3684_s24 + $0xd8] sm:$0xff] %v2974_v2   ;;  %v2969_v11 = vpack.c.bf16 %v1667_v8, %v1666_v1  ;;  %v1731_v12 = vsel %vm1475_vm0, %v1314_v62, %v1603_v4  ;;  %v1608_v13 = vmul.f32 0.2, %v3414_v6  ;;  %v1071_v14 = vpop.f32.mrf.mxu0  ;;  %v1327_v15 = vpop.f32.mrf.mxu1  ;;  %vm1480_vm2 = vcmp.gt.f32.partialorder %v3414_v6, 0.0 }
 0x14b   : > { %3214 = vst [vmem:[%s3684_s24 + $0x1d8] sm:$0xff] %v3134_v7   ;;  %v3129_v16 = vpack.c.bf16 %v1731_v12, %v1730_v10  ;;  %v1672_v17 = vsel %vm1416_vm1, %v3350_v5, %v1544_v9  ;;  %v1542_v18 = vmul.f32 0.2, %v1071_v14  ;;  %vm1414_vm3 = vcmp.gt.f32.partialorder %v1071_v14, 0.0 }
 0x14c   : > { %3181 = vst [vmem:[%s3684_s24 + $0xd0] sm:$0xff] %v2969_v11   ;;  %v3351_v19 = vpop.f32.mrf.mxu0  ;;  %v3415_v20 = vpop.f32.mrf.mxu1  ;;  %v1736_v22 = vsel %vm1480_vm2, %v3414_v6, %v1608_v13  ;;  %vm1478_vm6 = vcmp.gt.f32.partialorder %v1327_v15, 0.0  ;;  %v1606_v23 = vmul.f32 0.2, %v1327_v15 }
 0x14d   : > { %3213 = vst [vmem:[%s3684_s24 + $0x1d0] sm:$0xff] %v3129_v16   ;;  %vm1417_vm4 = vcmp.gt.f32.partialorder %v3351_v19, 0.0  ;;  %v1545_v21 = vmul.f32 0.2, %v3351_v19  ;;  %vm1481_vm5 = vcmp.gt.f32.partialorder %v3415_v20, 0.0  ;;  %v1670_v29 = vsel %vm1414_vm3, %v1071_v14, %v1542_v18 }
 0x14e   : > { %v1609_v24 = vmul.f32 0.2, %v3415_v20  ;;  %v1074_v25 = vpop.f32.mrf.mxu0  ;;  %v1330_v26 = vpop.f32.mrf.mxu1  ;;  %v1734_v38 = vsel %vm1478_vm6, %v1327_v15, %v1606_v23 }
 0x14f   : > { %v1673_v27 = vsel %vm1417_vm4, %v3351_v19, %v1545_v21  ;;  %vm1415_vm7 = vcmp.gt.f32.partialorder %v1074_v25, 0.0  ;;  %v1543_v28 = vmul.f32 0.2, %v1074_v25  ;;  %vm1479_vm8 = vcmp.gt.f32.partialorder %v1330_v26, 0.0 }
 0x150   : > { %v2984_v30 = vpack.c.bf16 %v1673_v27, %v1672_v17  ;;  %v1737_v31 = vsel %vm1481_vm5, %v3415_v20, %v1609_v24  ;;  %v1607_v32 = vmul.f32 0.2, %v1330_v26  ;;  %v3354_v33 = vpop.f32.mrf.mxu0  ;;  %v3418_v34 = vpop.f32.mrf.mxu1 }
 0x151   : > { %v3144_v35 = vpack.c.bf16 %v1737_v31, %v1736_v22  ;;  %v1671_v36 = vsel %vm1415_vm7, %v1074_v25, %v1543_v28  ;;  %vm1420_vm9 = vcmp.gt.f32.partialorder %v3354_v33, 0.0  ;;  %v1548_v37 = vmul.f32 0.2, %v3354_v33 }
 0x152   : > { %3184 = vst [vmem:[%s3684_s24 + $0xe8] sm:$0xff] %v2984_v30   ;;  %v2979_v39 = vpack.c.bf16 %v1671_v36, %v1670_v29  ;;  %v1735_v40 = vsel %vm1479_vm8, %v1330_v26, %v1607_v32  ;;  %v1087_v41 = vpop.f32.mrf.mxu0  ;;  %v1343_v42 = vpop.f32.mrf.mxu1  ;;  %vm1484_vm10 = vcmp.gt.f32.partialorder %v3418_v34, 0.0  ;;  %v1612_v45 = vmul.f32 0.2, %v3418_v34 }
 0x153   : > { %3216 = vst [vmem:[%s3684_s24 + $0x1e8] sm:$0xff] %v3144_v35   ;;  %v3139_v43 = vpack.c.bf16 %v1735_v40, %v1734_v38  ;;  %v1676_v44 = vsel %vm1420_vm9, %v3354_v33, %v1548_v37  ;;  %v1546_v48 = vmul.f32 0.2, %v1087_v41  ;;  %vm1418_vm13 = vcmp.gt.f32.partialorder %v1087_v41, 0.0 }
 0x154   : > { %3183 = vst [vmem:[%s3684_s24 + $0xe0] sm:$0xff] %v2979_v39   ;;  %v3355_v46 = vpop.f32.mrf.mxu0  ;;  %v3419_v47 = vpop.f32.mrf.mxu1  ;;  %vm1482_vm14 = vcmp.gt.f32.partialorder %v1343_v42, 0.0  ;;  %v1610_v50 = vmul.f32 0.2, %v1343_v42  ;;  %v1740_v56 = vsel %vm1484_vm10, %v3418_v34, %v1612_v45 }
 0x155   : > { %3215 = vst [vmem:[%s3684_s24 + $0x1e0] sm:$0xff] %v3139_v43   ;;  %vm1421_vm11 = vcmp.gt.f32.partialorder %v3355_v46, 0.0  ;;  %v1549_v49 = vmul.f32 0.2, %v3355_v46  ;;  %vm1485_vm12 = vcmp.gt.f32.partialorder %v3419_v47, 0.0  ;;  %v1674_v60 = vsel %vm1418_vm13, %v1087_v41, %v1546_v48 }
 0x156   : > { %v1613_v51 = vmul.f32 0.2, %v3419_v47  ;;  %v1090_v52 = vpop.f32.mrf.mxu0  ;;  %v1346_v53 = vpop.f32.mrf.mxu1  ;;  %v1738_v63 = vsel %vm1482_vm14, %v1343_v42, %v1610_v50 }
 0x157   : > { %v1677_v54 = vsel %vm1421_vm11, %v3355_v46, %v1549_v49  ;;  %vm1419_vm15 = vcmp.gt.f32.partialorder %v1090_v52, 0.0  ;;  %v1547_v55 = vmul.f32 0.2, %v1090_v52  ;;  %vm1483_vm0 = vcmp.gt.f32.partialorder %v1346_v53, 0.0 }
 0x158   : > { %v2994_v57 = vpack.c.bf16 %v1677_v54, %v1676_v44  ;;  %v1741_v58 = vsel %vm1485_vm12, %v3419_v47, %v1613_v51  ;;  %v1611_v59 = vmul.f32 0.2, %v1346_v53 }
 0x159   : > { %v3154_v61 = vpack.c.bf16 %v1741_v58, %v1740_v56  ;;  %v1675_v62 = vsel %vm1419_vm15, %v1090_v52, %v1547_v55 }
 0x15a   : > { %3186 = vst [vmem:[%s3684_s24 + $0xf8] sm:$0xff] %v2994_v57   ;;  %v2989_v0 = vpack.c.bf16 %v1675_v62, %v1674_v60  ;;  %v1739_v1 = vsel %vm1483_vm0, %v1346_v53, %v1611_v59 }
 0x15b   : > { %3218 = vst [vmem:[%s3684_s24 + $0x1f8] sm:$0xff] %v3154_v61   ;;  %v3149_v2 = vpack.c.bf16 %v1739_v1, %v1738_v63 }
 0x15c   : > { %3185 = vst [vmem:[%s3684_s24 + $0xf0] sm:$0xff] %v2989_v0  }
 0x15d   : > { %3217 = vst [vmem:[%s3684_s24 + $0x1f0] sm:$0xff] %v3149_v2  }
 0x15e PF: > { %s12_s9 = sadd.s32 1, %s3507_s9  }
 0x15f   : > { %p9_p4 = scmp.ge.s32.totalorder %s12_s9, 4  }
 0x161   :  { %11 = sbr.rel (!%p9_p4) target bundleno = 1 (0x1), region = 58 }

// kernel: discriminator_forward.9
= control target key start
LH: loop header
LB: loop body
LE: loop exit
PB: predicated region body
PF: predicated region fallthrough
CT: control target
= control target key end

     0   :  { %s1643_s1 = inlined_call_operand.vmem [shape: bf16[128,128], index: 1, kind: input, shape index: {}]   ;;  %s1644_s0 = inlined_call_operand.vmem [shape: bf16[512,128], index: 0, kind: input, shape index: {}]   ;;  %s1645_s2 = inlined_call_operand.vmem [shape: f32[512,128], index: 2, kind: output, shape index: {0}]   ;;  %s1646_s3 = inlined_call_operand.vmem [shape: f32[8,128], index: 3, kind: output, shape index: {1}]   ;;  %s1647_s4 = inlined_call_operand.vmem [shape: f32[8,128], index: 4, kind: output, shape index: {2}]  }
   0x1   :  { %v1068_v0 = vld [vmem:[%s1643_s1 + $0x38] sm:$0xff]   ;;  %v1069_v1 = vld [vmem:[%s1643_s1 + $0x30] sm:$0xff]   ;;  %v1070_v2 = vld [vmem:[%s1643_s1 + $0x28] sm:$0xff]  }
   0x2   :  { %972 = vmatprep.subr.bf16.mxu0 %v1068_v0  ;;  %1052 = vmatprep.subr.bf16.mxu1 %v1068_v0  ;;  %v1071_v3 = vld [vmem:[%s1643_s1 + $0x20] sm:$0xff]   ;;  %v1072_v5 = vld [vmem:[%s1643_s1 + $0x18] sm:$0xff]   ;;  %v1073_v6 = vld [vmem:[%s1643_s1 + $0x10] sm:$0xff]  }
   0x3   :  { %973 = vmatpush3.bf16.msra.mxu0 %v1068_v0  ;;  %1060 = vmatpush3.bf16.msra.mxu1 %v1068_v0  ;;  %v1076_v4 = vld [vmem:[%s1644_s0] sm:$0xff]   ;;  %v1074_v7 = vld [vmem:[%s1643_s1 + $0x8] sm:$0xff]   ;;  %v1078_v11 = vld [vmem:[%s1644_s0 + $0x10] sm:$0xff]  }
   0x4   :  { %974 = vmatprep.subr.bf16.mxu0 %v1069_v1  ;;  %1053 = vmatprep.subr.bf16.mxu1 %v1069_v1  ;;  %v1075_v8 = vld [vmem:[%s1643_s1] sm:$0xff]   ;;  %v1077_v10 = vld [vmem:[%s1644_s0 + $0x8] sm:$0xff]   ;;  %v1094_v13 = vld [vmem:[%s1644_s0 + $0x90] sm:$0xff]  }
   0x5   :  { %988 = vmatprep.mubr.bf16.mxu0 %v1076_v4  ;;  %v1092_v9 = vld [vmem:[%s1644_s0 + $0x80] sm:$0xff]   ;;  %v1093_v12 = vld [vmem:[%s1644_s0 + $0x88] sm:$0xff]   ;;  %v1079_v14 = vld [vmem:[%s1644_s0 + $0x18] sm:$0xff]  }
   0x6   :  { %1020 = vmatprep.mubr.bf16.mxu1 %v1092_v9  ;;  %v1080_v15 = vld [vmem:[%s1644_s0 + $0x20] sm:$0xff]   ;;  %v1095_v16 = vld [vmem:[%s1644_s0 + $0x98] sm:$0xff]   ;;  %v1081_v18 = vld [vmem:[%s1644_s0 + $0x28] sm:$0xff]  }
   0x7   :  { %975 = vmatpush3.bf16.msra.mxu0 %v1069_v1  ;;  %1061 = vmatpush3.bf16.msra.mxu1 %v1069_v1  ;;  %v1096_v17 = vld [vmem:[%s1644_s0 + $0xa0] sm:$0xff]   ;;  %v1097_v19 = vld [vmem:[%s1644_s0 + $0xa8] sm:$0xff]   ;;  %v1082_v20 = vld [vmem:[%s1644_s0 + $0x30] sm:$0xff]  }
   0x8   :  { %976 = vmatprep.subr.bf16.mxu0 %v1070_v2  ;;  %1054 = vmatprep.subr.bf16.mxu1 %v1070_v2  ;;  %v1098_v21 = vld [vmem:[%s1644_s0 + $0xb0] sm:$0xff]   ;;  %v1083_v22 = vld [vmem:[%s1644_s0 + $0x38] sm:$0xff]   ;;  %v1084_v24 = vld [vmem:[%s1644_s0 + $0x40] sm:$0xff]  }
   0x9   :  { %v1099_v23 = vld [vmem:[%s1644_s0 + $0xb8] sm:$0xff]   ;;  %v1100_v25 = vld [vmem:[%s1644_s0 + $0xc0] sm:$0xff]   ;;  %v1085_v26 = vld [vmem:[%s1644_s0 + $0x48] sm:$0xff]  }
   0xa   :  { %v1101_v27 = vld [vmem:[%s1644_s0 + $0xc8] sm:$0xff]   ;;  %v1086_v28 = vld [vmem:[%s1644_s0 + $0x50] sm:$0xff]   ;;  %v1087_v30 = vld [vmem:[%s1644_s0 + $0x58] sm:$0xff]  }
   0xb   :  { %977 = vmatpush3.bf16.msra.mxu0 %v1070_v2  ;;  %1062 = vmatpush3.bf16.msra.mxu1 %v1070_v2  ;;  %v1102_v29 = vld [vmem:[%s1644_s0 + $0xd0] sm:$0xff]   ;;  %v1103_v31 = vld [vmem:[%s1644_s0 + $0xd8] sm:$0xff]   ;;  %v1088_v32 = vld [vmem:[%s1644_s0 + $0x60] sm:$0xff]  }
   0xc   :  { %978 = vmatprep.subr.bf16.mxu0 %v1071_v3  ;;  %1055 = vmatprep.subr.bf16.mxu1 %v1071_v3  ;;  %v1104_v33 = vld [vmem:[%s1644_s0 + $0xe0] sm:$0xff]   ;;  %v1089_v34 = vld [vmem:[%s1644_s0 + $0x68] sm:$0xff]   ;;  %v1090_v36 = vld [vmem:[%s1644_s0 + $0x70] sm:$0xff]  }
   0xd   :  { %v1105_v35 = vld [vmem:[%s1644_s0 + $0xe8] sm:$0xff]   ;;  %v1106_v37 = vld [vmem:[%s1644_s0 + $0xf0] sm:$0xff]   ;;  %v1091_v38 = vld [vmem:[%s1644_s0 + $0x78] sm:$0xff]  }
   0xe   :  { %v1107_v39 = vld [vmem:[%s1644_s0 + $0xf8] sm:$0xff]  }
   0xf   :  { %979 = vmatpush3.bf16.msra.mxu0 %v1071_v3  ;;  %1063 = vmatpush3.bf16.msra.mxu1 %v1071_v3 }
  0x10   :  { %980 = vmatprep.subr.bf16.mxu0 %v1072_v5  ;;  %1056 = vmatprep.subr.bf16.mxu1 %v1072_v5 }
  0x13   :  { %981 = vmatpush3.bf16.msra.mxu0 %v1072_v5  ;;  %1064 = vmatpush3.bf16.msra.mxu1 %v1072_v5 }
  0x14   :  { %982 = vmatprep.subr.bf16.mxu0 %v1073_v6  ;;  %1057 = vmatprep.subr.bf16.mxu1 %v1073_v6 }
  0x17   :  { %983 = vmatpush3.bf16.msra.mxu0 %v1073_v6  ;;  %1065 = vmatpush3.bf16.msra.mxu1 %v1073_v6 }
  0x18   :  { %984 = vmatprep.subr.bf16.mxu0 %v1074_v7  ;;  %1058 = vmatprep.subr.bf16.mxu1 %v1074_v7 }
  0x1b   :  { %985 = vmatpush3.bf16.msra.mxu0 %v1074_v7  ;;  %1066 = vmatpush3.bf16.msra.mxu1 %v1074_v7 }
  0x1c   :  { %986 = vmatprep.subr.bf16.mxu0 %v1075_v8  ;;  %1059 = vmatprep.subr.bf16.mxu1 %v1075_v8 }
  0x1f   :  { %987 = vmatpush3.bf16.msra.mxu0 %v1075_v8  ;;  %1067 = vmatpush3.bf16.msra.mxu1 %v1075_v8 }
  0x22   :  { %989 = vmatmul.mubr.bf16.vlgmr.msra.gmra.mxu0 %v1077_v10  ;;  %1021 = vmatmul.mubr.bf16.vlgmr.msra.gmra.mxu1 %v1093_v12 }
  0x23   :  { %992 = vmatprep.mubr.bf16.mxu0 %v1078_v11  ;;  %1024 = vmatprep.mubr.bf16.mxu1 %v1094_v13 }
  0x2a   :  { %993 = vmatmul.mubr.bf16.gmra.mxu0 %v1079_v14  ;;  %1025 = vmatmul.mubr.bf16.gmra.mxu1 %v1095_v16 }
  0x2b   :  { %996 = vmatprep.mubr.bf16.mxu0 %v1080_v15  ;;  %1028 = vmatprep.mubr.bf16.mxu1 %v1096_v17 }
  0x32   :  { %997 = vmatmul.mubr.bf16.gmra.mxu0 %v1081_v18  ;;  %1029 = vmatmul.mubr.bf16.gmra.mxu1 %v1097_v19 }
  0x33   :  { %1000 = vmatprep.mubr.bf16.mxu0 %v1082_v20  ;;  %1032 = vmatprep.mubr.bf16.mxu1 %v1098_v21 }
  0x3a   :  { %1001 = vmatmul.mubr.bf16.gmra.mxu0 %v1083_v22  ;;  %1033 = vmatmul.mubr.bf16.gmra.mxu1 %v1099_v23 }
  0x3b   :  { %1004 = vmatprep.mubr.bf16.mxu0 %v1084_v24  ;;  %1036 = vmatprep.mubr.bf16.mxu1 %v1100_v25 }
  0x42   :  { %1005 = vmatmul.mubr.bf16.gmra.mxu0 %v1085_v26  ;;  %1037 = vmatmul.mubr.bf16.gmra.mxu1 %v1101_v27 }
  0x43   :  { %1008 = vmatprep.mubr.bf16.mxu0 %v1086_v28  ;;  %1040 = vmatprep.mubr.bf16.mxu1 %v1102_v29 }
  0x4a   :  { %1009 = vmatmul.mubr.bf16.gmra.mxu0 %v1087_v30  ;;  %1041 = vmatmul.mubr.bf16.gmra.mxu1 %v1103_v31 }
  0x4b   :  { %1012 = vmatprep.mubr.bf16.mxu0 %v1088_v32  ;;  %1044 = vmatprep.mubr.bf16.mxu1 %v1104_v33 }
  0x52   :  { %1013 = vmatmul.mubr.bf16.gmra.mxu0 %v1089_v34  ;;  %1045 = vmatmul.mubr.bf16.gmra.mxu1 %v1105_v35 }
  0x53   :  { %1016 = vmatprep.mubr.bf16.mxu0 %v1090_v36  ;;  %1048 = vmatprep.mubr.bf16.mxu1 %v1106_v37 }
  0x5a   :  { %1017 = vmatmul.mubr.bf16.gmra.mxu0 %v1091_v38  ;;  %1049 = vmatmul.mubr.bf16.gmra.mxu1 %v1107_v39 }
  0xe2   :  { %v990_v40 = vpop.f32.mrf.mxu0  ;;  %v1253_v41 = vpop.f32.mrf.mxu1 }
  0xe3   :  { %818 = vst [vmem:[%s1645_s2 + $0x10] sm:$0xff] %v990_v40  ;;  %850 = vst [vmem:[%s1645_s2 + $0x110] sm:$0xff] %v1253_v41  ;;  %v690_v53 = vmul.f32 %v990_v40, %v990_v40 }
  0xe4   :  { %v369_v42 = vpop.f32.mrf.mxu0  ;;  %v1262_v43 = vpop.f32.mrf.mxu1 }
  0xe5   :  { %816 = vst [vmem:[%s1645_s2] sm:$0xff] %v369_v42  ;;  %848 = vst [vmem:[%s1645_s2 + $0x100] sm:$0xff] %v1262_v43  ;;  %v688_v48 = vmul.f32 %v369_v42, %v369_v42 }
  0xe6   :  { %v991_v44 = vpop.f32.mrf.mxu0  ;;  %v1271_v45 = vpop.f32.mrf.mxu1 }
  0xe7   :  { %819 = vst [vmem:[%s1645_s2 + $0x18] sm:$0xff] %v991_v44  ;;  %851 = vst [vmem:[%s1645_s2 + $0x118] sm:$0xff] %v1271_v45  ;;  %v691_v58 = vmul.f32 %v991_v44, %v991_v44 }
  0xe8   :  { %v372_v46 = vpop.f32.mrf.mxu0  ;;  %v1280_v47 = vpop.f32.mrf.mxu1 }
  0xe9   :  { %v624_v49 = vadd.f32 %v372_v46, %v369_v42  ;;  %v689_v50 = vmul.f32 %v372_v46, %v372_v46  ;;  %817 = vst [vmem:[%s1645_s2 + $0x8] sm:$0xff] %v372_v46  ;;  %849 = vst [vmem:[%s1645_s2 + $0x108] sm:$0xff] %v1280_v47 }
  0xea   :  { %v994_v51 = vpop.f32.mrf.mxu0  ;;  %v1289_v52 = vpop.f32.mrf.mxu1 }
  0xeb   :  { %v625_v54 = vadd.f32 %v990_v40, %v624_v49  ;;  %v752_v55 = vadd.f32 %v689_v50, %v688_v48  ;;  %822 = vst [vmem:[%s1645_s2 + $0x30] sm:$0xff] %v994_v51  ;;  %854 = vst [vmem:[%s1645_s2 + $0x130] sm:$0xff] %v1289_v52  ;;  %v694_v9 = vmul.f32 %v994_v51, %v994_v51 }
  0xec   :  { %v385_v56 = vpop.f32.mrf.mxu0  ;;  %v1298_v57 = vpop.f32.mrf.mxu1 }
  0xed   :  { %v753_v59 = vadd.f32 %v752_v55, %v690_v53  ;;  %v626_v60 = vadd.f32 %v991_v44, %v625_v54  ;;  %820 = vst [vmem:[%s1645_s2 + $0x20] sm:$0xff] %v385_v56  ;;  %852 = vst [vmem:[%s1645_s2 + $0x120] sm:$0xff] %v1298_v57  ;;  %v692_v0 = vmul.f32 %v385_v56, %v385_v56 }
  0xee   :  { %v995_v61 = vpop.f32.mrf.mxu0  ;;  %v1307_v62 = vpop.f32.mrf.mxu1 }
  0xef   :  { %v627_v63 = vadd.f32 %v626_v60, %v385_v56  ;;  %v754_v1 = vadd.f32 %v753_v59, %v691_v58  ;;  %823 = vst [vmem:[%s1645_s2 + $0x38] sm:$0xff] %v995_v61  ;;  %855 = vst [vmem:[%s1645_s2 + $0x138] sm:$0xff] %v1307_v62  ;;  %v695_v14 = vmul.f32 %v995_v61, %v995_v61 }
  0xf0   :  { %v388_v2 = vpop.f32.mrf.mxu0  ;;  %v1316_v3 = vpop.f32.mrf.mxu1 }
  0xf1   :  { %v755_v4 = vadd.f32 %v754_v1, %v692_v0  ;;  %v628_v5 = vadd.f32 %v627_v63, %v388_v2  ;;  %v693_v6 = vmul.f32 %v388_v2, %v388_v2  ;;  %821 = vst [vmem:[%s1645_s2 + $0x28] sm:$0xff] %v388_v2  ;;  %853 = vst [vmem:[%s1645_s2 + $0x128] sm:$0xff] %v1316_v3 }
  0xf2   :  { %v998_v7 = vpop.f32.mrf.mxu0  ;;  %v1325_v8 = vpop.f32.mrf.mxu1 }
  0xf3   :  { %v629_v10 = vadd.f32 %v994_v51, %v628_v5  ;;  %v756_v11 = vadd.f32 %v755_v4, %v693_v6  ;;  %826 = vst [vmem:[%s1645_s2 + $0x50] sm:$0xff] %v998_v7  ;;  %858 = vst [vmem:[%s1645_s2 + $0x150] sm:$0xff] %v1325_v8  ;;  %v698_v29 = vmul.f32 %v998_v7, %v998_v7 }
  0xf4   :  { %v401_v12 = vpop.f32.mrf.mxu0  ;;  %v1334_v13 = vpop.f32.mrf.mxu1 }
  0xf5   :  { %v757_v15 = vadd.f32 %v756_v11, %v694_v9  ;;  %v630_v16 = vadd.f32 %v995_v61, %v629_v10  ;;  %824 = vst [vmem:[%s1645_s2 + $0x40] sm:$0xff] %v401_v12  ;;  %856 = vst [vmem:[%s1645_s2 + $0x140] sm:$0xff] %v1334_v13  ;;  %v696_v20 = vmul.f32 %v401_v12, %v401_v12 }
  0xf6   :  { %v999_v17 = vpop.f32.mrf.mxu0  ;;  %v1343_v18 = vpop.f32.mrf.mxu1 }
  0xf7   :  { %v631_v19 = vadd.f32 %v630_v16, %v401_v12  ;;  %v758_v21 = vadd.f32 %v757_v15, %v695_v14  ;;  %827 = vst [vmem:[%s1645_s2 + $0x58] sm:$0xff] %v999_v17  ;;  %859 = vst [vmem:[%s1645_s2 + $0x158] sm:$0xff] %v1343_v18  ;;  %v699_v34 = vmul.f32 %v999_v17, %v999_v17 }
  0xf8   :  { %v404_v22 = vpop.f32.mrf.mxu0  ;;  %v1352_v23 = vpop.f32.mrf.mxu1 }
  0xf9   :  { %v759_v24 = vadd.f32 %v758_v21, %v696_v20  ;;  %v632_v25 = vadd.f32 %v631_v19, %v404_v22  ;;  %v697_v26 = vmul.f32 %v404_v22, %v404_v22  ;;  %825 = vst [vmem:[%s1645_s2 + $0x48] sm:$0xff] %v404_v22  ;;  %857 = vst [vmem:[%s1645_s2 + $0x148] sm:$0xff] %v1352_v23 }
  0xfa   :  { %v1002_v27 = vpop.f32.mrf.mxu0  ;;  %v1361_v28 = vpop.f32.mrf.mxu1 }
  0xfb   :  { %v633_v30 = vadd.f32 %v998_v7, %v632_v25  ;;  %v760_v31 = vadd.f32 %v759_v24, %v697_v26  ;;  %830 = vst [vmem:[%s1645_s2 + $0x70] sm:$0xff] %v1002_v27  ;;  %862 = vst [vmem:[%s1645_s2 + $0x170] sm:$0xff] %v1361_v28  ;;  %v702_v54 = vmul.f32 %v1002_v27, %v1002_v27 }
  0xfc   :  { %v417_v32 = vpop.f32.mrf.mxu0  ;;  %v1370_v33 = vpop.f32.mrf.mxu1 }
  0xfd   :  { %v761_v35 = vadd.f32 %v760_v31, %v698_v29  ;;  %v634_v36 = vadd.f32 %v999_v17, %v633_v30  ;;  %828 = vst [vmem:[%s1645_s2 + $0x60] sm:$0xff] %v417_v32  ;;  %860 = vst [vmem:[%s1645_s2 + $0x160] sm:$0xff] %v1370_v33  ;;  %v700_v40 = vmul.f32 %v417_v32, %v417_v32 }
  0xfe   :  { %v1003_v37 = vpop.f32.mrf.mxu0  ;;  %v1379_v38 = vpop.f32.mrf.mxu1 }
  0xff   :  { %v635_v39 = vadd.f32 %v634_v36, %v417_v32  ;;  %v762_v42 = vadd.f32 %v761_v35, %v699_v34  ;;  %831 = vst [vmem:[%s1645_s2 + $0x78] sm:$0xff] %v1003_v37  ;;  %863 = vst [vmem:[%s1645_s2 + $0x178] sm:$0xff] %v1379_v38  ;;  %v703_v60 = vmul.f32 %v1003_v37, %v1003_v37 }
 0x100   :  { %v420_v44 = vpop.f32.mrf.mxu0  ;;  %v1388_v46 = vpop.f32.mrf.mxu1 }
 0x101   :  { %v763_v48 = vadd.f32 %v762_v42, %v700_v40  ;;  %v636_v49 = vadd.f32 %v635_v39, %v420_v44  ;;  %v701_v50 = vmul.f32 %v420_v44, %v420_v44  ;;  %829 = vst [vmem:[%s1645_s2 + $0x68] sm:$0xff] %v420_v44  ;;  %861 = vst [vmem:[%s1645_s2 + $0x168] sm:$0xff] %v1388_v46 }
 0x102   :  { %v1006_v51 = vpop.f32.mrf.mxu0  ;;  %v1397_v53 = vpop.f32.mrf.mxu1 }
 0x103   :  { %v637_v55 = vadd.f32 %v1002_v27, %v636_v49  ;;  %v764_v56 = vadd.f32 %v763_v48, %v701_v50  ;;  %834 = vst [vmem:[%s1645_s2 + $0x90] sm:$0xff] %v1006_v51  ;;  %866 = vst [vmem:[%s1645_s2 + $0x190] sm:$0xff] %v1397_v53  ;;  %v706_v15 = vmul.f32 %v1006_v51, %v1006_v51 }
 0x104   :  { %v433_v58 = vpop.f32.mrf.mxu0  ;;  %v1406_v59 = vpop.f32.mrf.mxu1 }
 0x105   :  { %v765_v61 = vadd.f32 %v764_v56, %v702_v54  ;;  %v638_v63 = vadd.f32 %v1003_v37, %v637_v55  ;;  %832 = vst [vmem:[%s1645_s2 + $0x80] sm:$0xff] %v433_v58  ;;  %864 = vst [vmem:[%s1645_s2 + $0x180] sm:$0xff] %v1406_v59  ;;  %v704_v4 = vmul.f32 %v433_v58, %v433_v58 }
 0x106   :  { %v1007_v0 = vpop.f32.mrf.mxu0  ;;  %v1415_v1 = vpop.f32.mrf.mxu1 }
 0x107   :  { %v639_v2 = vadd.f32 %v638_v63, %v433_v58  ;;  %v766_v5 = vadd.f32 %v765_v61, %v703_v60  ;;  %835 = vst [vmem:[%s1645_s2 + $0x98] sm:$0xff] %v1007_v0  ;;  %867 = vst [vmem:[%s1645_s2 + $0x198] sm:$0xff] %v1415_v1  ;;  %v707_v21 = vmul.f32 %v1007_v0, %v1007_v0 }
 0x108   :  { %v436_v6 = vpop.f32.mrf.mxu0  ;;  %v1424_v7 = vpop.f32.mrf.mxu1 }
 0x109   :  { %v767_v9 = vadd.f32 %v766_v5, %v704_v4  ;;  %v640_v10 = vadd.f32 %v639_v2, %v436_v6  ;;  %v705_v11 = vmul.f32 %v436_v6, %v436_v6  ;;  %833 = vst [vmem:[%s1645_s2 + $0x88] sm:$0xff] %v436_v6  ;;  %865 = vst [vmem:[%s1645_s2 + $0x188] sm:$0xff] %v1424_v7 }
 0x10a   :  { %v1010_v12 = vpop.f32.mrf.mxu0  ;;  %v1433_v14 = vpop.f32.mrf.mxu1 }
 0x10b   :  { %v641_v16 = vadd.f32 %v1006_v51, %v640_v10  ;;  %v768_v17 = vadd.f32 %v767_v9, %v705_v11  ;;  %838 = vst [vmem:[%s1645_s2 + $0xb0] sm:$0xff] %v1010_v12  ;;  %870 = vst [vmem:[%s1645_s2 + $0x1b0] sm:$0xff] %v1433_v14  ;;  %v710_v40 = vmul.f32 %v1010_v12, %v1010_v12 }
 0x10c   :  { %v449_v19 = vpop.f32.mrf.mxu0  ;;  %v1442_v20 = vpop.f32.mrf.mxu1 }
 0x10d   :  { %v769_v22 = vadd.f32 %v768_v17, %v706_v15  ;;  %v642_v24 = vadd.f32 %v1007_v0, %v641_v16  ;;  %836 = vst [vmem:[%s1645_s2 + $0xa0] sm:$0xff] %v449_v19  ;;  %868 = vst [vmem:[%s1645_s2 + $0x1a0] sm:$0xff] %v1442_v20  ;;  %v708_v29 = vmul.f32 %v449_v19, %v449_v19 }
 0x10e   :  { %v1011_v25 = vpop.f32.mrf.mxu0  ;;  %v1451_v26 = vpop.f32.mrf.mxu1 }
 0x10f   :  { %v643_v27 = vadd.f32 %v642_v24, %v449_v19  ;;  %v770_v30 = vadd.f32 %v769_v22, %v707_v21  ;;  %839 = vst [vmem:[%s1645_s2 + $0xb8] sm:$0xff] %v1011_v25  ;;  %871 = vst [vmem:[%s1645_s2 + $0x1b8] sm:$0xff] %v1451_v26  ;;  %v711_v50 = vmul.f32 %v1011_v25, %v1011_v25 }
 0x110   :  { %v452_v31 = vpop.f32.mrf.mxu0  ;;  %v1460_v32 = vpop.f32.mrf.mxu1 }
 0x111   :  { %v771_v34 = vadd.f32 %v770_v30, %v708_v29  ;;  %v644_v35 = vadd.f32 %v643_v27, %v452_v31  ;;  %v709_v36 = vmul.f32 %v452_v31, %v452_v31  ;;  %837 = vst [vmem:[%s1645_s2 + $0xa8] sm:$0xff] %v452_v31  ;;  %869 = vst [vmem:[%s1645_s2 + $0x1a8] sm:$0xff] %v1460_v32 }
 0x112   :  { %v1014_v37 = vpop.f32.mrf.mxu0  ;;  %v1469_v39 = vpop.f32.mrf.mxu1 }
 0x113   :  { %v645_v42 = vadd.f32 %v1010_v12, %v644_v35  ;;  %v772_v44 = vadd.f32 %v771_v34, %v709_v36  ;;  %842 = vst [vmem:[%s1645_s2 + $0xd0] sm:$0xff] %v1014_v37  ;;  %874 = vst [vmem:[%s1645_s2 + $0x1d0] sm:$0xff] %v1469_v39  ;;  %v714_v10 = vmul.f32 %v1014_v37, %v1014_v37 }
 0x114   :  { %v465_v48 = vpop.f32.mrf.mxu0  ;;  %v1478_v49 = vpop.f32.mrf.mxu1 }
 0x115   :  { %v773_v51 = vadd.f32 %v772_v44, %v710_v40  ;;  %v646_v54 = vadd.f32 %v1011_v25, %v645_v42  ;;  %840 = vst [vmem:[%s1645_s2 + $0xc0] sm:$0xff] %v465_v48  ;;  %872 = vst [vmem:[%s1645_s2 + $0x1c0] sm:$0xff] %v1478_v49  ;;  %v712_v60 = vmul.f32 %v465_v48, %v465_v48 }
 0x116   :  { %v1015_v55 = vpop.f32.mrf.mxu0  ;;  %v1487_v56 = vpop.f32.mrf.mxu1 }
 0x117   :  { %v647_v58 = vadd.f32 %v646_v54, %v465_v48  ;;  %v774_v61 = vadd.f32 %v773_v51, %v711_v50  ;;  %843 = vst [vmem:[%s1645_s2 + $0xd8] sm:$0xff] %v1015_v55  ;;  %875 = vst [vmem:[%s1645_s2 + $0x1d8] sm:$0xff] %v1487_v56  ;;  %v715_v17 = vmul.f32 %v1015_v55, %v1015_v55 }
 0x118   :  { %v468_v63 = vpop.f32.mrf.mxu0  ;;  %v1496_v0 = vpop.f32.mrf.mxu1  ;;  %v720_v51 = vmul.f32 %v1262_v43, %v1262_v43 }
 0x119   :  { %v775_v2 = vadd.f32 %v774_v61, %v712_v60  ;;  %v648_v4 = vadd.f32 %v647_v58, %v468_v63  ;;  %v713_v5 = vmul.f32 %v468_v63, %v468_v63  ;;  %841 = vst [vmem:[%s1645_s2 + $0xc8] sm:$0xff] %v468_v63  ;;  %873 = vst [vmem:[%s1645_s2 + $0x1c8] sm:$0xff] %v1496_v0 }
 0x11a   :  { %v1018_v6 = vpop.f32.mrf.mxu0  ;;  %v1505_v9 = vpop.f32.mrf.mxu1  ;;  %v721_v60 = vmul.f32 %v1280_v47, %v1280_v47  ;;  %v722_v63 = vmul.f32 %v1253_v41, %v1253_v41 }
 0x11b   :  { %v649_v11 = vadd.f32 %v1014_v37, %v648_v4  ;;  %v776_v12 = vadd.f32 %v775_v2, %v713_v5  ;;  %846 = vst [vmem:[%s1645_s2 + $0xf0] sm:$0xff] %v1018_v6  ;;  %878 = vst [vmem:[%s1645_s2 + $0x1f0] sm:$0xff] %v1505_v9  ;;  %v718_v37 = vmul.f32 %v1018_v6, %v1018_v6 }
 0x11c   :  { %v481_v15 = vpop.f32.mrf.mxu0  ;;  %v1514_v16 = vpop.f32.mrf.mxu1  ;;  %v723_v5 = vmul.f32 %v1271_v45, %v1271_v45 }
 0x11d   :  { %v777_v19 = vadd.f32 %v776_v12, %v714_v10  ;;  %v650_v21 = vadd.f32 %v1015_v55, %v649_v11  ;;  %844 = vst [vmem:[%s1645_s2 + $0xe0] sm:$0xff] %v481_v15  ;;  %876 = vst [vmem:[%s1645_s2 + $0x1e0] sm:$0xff] %v1514_v16  ;;  %v716_v27 = vmul.f32 %v481_v15, %v481_v15 }
 0x11e   :  { %v1019_v22 = vpop.f32.mrf.mxu0  ;;  %v1523_v24 = vpop.f32.mrf.mxu1  ;;  %v724_v11 = vmul.f32 %v1298_v57, %v1298_v57 }
 0x11f   :  { %v651_v25 = vadd.f32 %v650_v21, %v481_v15  ;;  %v778_v29 = vadd.f32 %v777_v19, %v715_v17  ;;  %847 = vst [vmem:[%s1645_s2 + $0xf8] sm:$0xff] %v1019_v22  ;;  %879 = vst [vmem:[%s1645_s2 + $0x1f8] sm:$0xff] %v1523_v24  ;;  %v719_v44 = vmul.f32 %v1019_v22, %v1019_v22 }
 0x120   :  { %v484_v30 = vpop.f32.mrf.mxu0  ;;  %v1532_v31 = vpop.f32.mrf.mxu1  ;;  %v725_v17 = vmul.f32 %v1316_v3, %v1316_v3 }
 0x121   :  { %v779_v34 = vadd.f32 %v778_v29, %v716_v27  ;;  %v652_v35 = vadd.f32 %v651_v25, %v484_v30  ;;  %v717_v36 = vmul.f32 %v484_v30, %v484_v30  ;;  %845 = vst [vmem:[%s1645_s2 + $0xe8] sm:$0xff] %v484_v30  ;;  %877 = vst [vmem:[%s1645_s2 + $0x1e8] sm:$0xff] %v1532_v31 }
 0x122   :  { %v728_v27 = vmul.f32 %v1334_v13, %v1334_v13 }
 0x123   :  { %v653_v40 = vadd.f32 %v1018_v6, %v652_v35  ;;  %v780_v42 = vadd.f32 %v779_v34, %v717_v36  ;;  %v729_v34 = vmul.f32 %v1352_v23, %v1352_v23 }
 0x125   :  { %v654_v48 = vadd.f32 %v1019_v22, %v653_v40  ;;  %v781_v50 = vadd.f32 %v780_v42, %v718_v37  ;;  %v732_v42 = vmul.f32 %v1370_v33, %v1370_v33 }
 0x127   :  { %v782_v54 = vadd.f32 %v781_v50, %v719_v44  ;;  %v655_v55 = vadd.f32 %v654_v48, %v1262_v43  ;;  %v733_v50 = vmul.f32 %v1388_v46, %v1388_v46 }
 0x129   :  { %v656_v58 = vadd.f32 %v655_v55, %v1280_v47  ;;  %v783_v61 = vadd.f32 %v782_v54, %v720_v51 }
 0x12b   :  { %v657_v2 = vadd.f32 %v1253_v41, %v656_v58  ;;  %v784_v4 = vadd.f32 %v783_v61, %v721_v60  ;;  %v726_v41 = vmul.f32 %v1289_v52, %v1289_v52  ;;  %v736_v60 = vmul.f32 %v1406_v59, %v1406_v59 }
 0x12d   :  { %v785_v6 = vadd.f32 %v784_v4, %v722_v63  ;;  %v658_v10 = vadd.f32 %v1271_v45, %v657_v2  ;;  %v727_v45 = vmul.f32 %v1307_v62, %v1307_v62  ;;  %v737_v2 = vmul.f32 %v1424_v7, %v1424_v7 }
 0x12f   :  { %v659_v43 = vadd.f32 %v658_v10, %v1298_v57  ;;  %v786_v12 = vadd.f32 %v785_v6, %v723_v5 }
 0x131   :  { %v787_v47 = vadd.f32 %v786_v12, %v724_v11  ;;  %v660_v15 = vadd.f32 %v659_v43, %v1316_v3  ;;  %v740_v43 = vmul.f32 %v1442_v20, %v1442_v20 }
 0x133   :  { %v661_v19 = vadd.f32 %v1289_v52, %v660_v15  ;;  %v788_v21 = vadd.f32 %v787_v47, %v725_v17  ;;  %v730_v52 = vmul.f32 %v1325_v8, %v1325_v8  ;;  %v741_v47 = vmul.f32 %v1460_v32, %v1460_v32 }
 0x135   :  { %v789_v22 = vadd.f32 %v788_v21, %v726_v41  ;;  %v662_v25 = vadd.f32 %v1307_v62, %v661_v19  ;;  %v731_v62 = vmul.f32 %v1343_v18, %v1343_v18  ;;  %v744_v21 = vmul.f32 %v1478_v49, %v1478_v49 }
 0x137   :  { %v663_v57 = vadd.f32 %v662_v25, %v1334_v13  ;;  %v790_v29 = vadd.f32 %v789_v22, %v727_v45  ;;  %v745_v25 = vmul.f32 %v1496_v0, %v1496_v0 }
 0x139   :  { %v791_v30 = vadd.f32 %v790_v29, %v728_v27  ;;  %v664_v3 = vadd.f32 %v663_v57, %v1352_v23 }
 0x13b   :  { %v665_v35 = vadd.f32 %v1325_v8, %v664_v3  ;;  %v792_v36 = vadd.f32 %v791_v30, %v729_v34  ;;  %v734_v8 = vmul.f32 %v1361_v28, %v1361_v28  ;;  %v748_v3 = vmul.f32 %v1514_v16, %v1514_v16 }
 0x13d   :  { %v793_v37 = vadd.f32 %v792_v36, %v730_v52  ;;  %v666_v40 = vadd.f32 %v1343_v18, %v665_v35  ;;  %v735_v18 = vmul.f32 %v1379_v38, %v1379_v38  ;;  %v749_v35 = vmul.f32 %v1532_v31, %v1532_v31 }
 0x13f   :  { %v667_v13 = vadd.f32 %v666_v40, %v1370_v33  ;;  %v794_v44 = vadd.f32 %v793_v37, %v731_v62 }
 0x141   :  { %v795_v48 = vadd.f32 %v794_v44, %v732_v42  ;;  %v668_v23 = vadd.f32 %v667_v13, %v1388_v46 }
 0x143   :  { %v669_v51 = vadd.f32 %v1361_v28, %v668_v23  ;;  %v796_v54 = vadd.f32 %v795_v48, %v733_v50  ;;  %v738_v28 = vmul.f32 %v1397_v53, %v1397_v53 }
 0x145   :  { %v797_v55 = vadd.f32 %v796_v54, %v734_v8  ;;  %v670_v58 = vadd.f32 %v1379_v38, %v669_v51  ;;  %v739_v38 = vmul.f32 %v1415_v1, %v1415_v1 }
 0x147   :  { %v671_v33 = vadd.f32 %v670_v58, %v1406_v59  ;;  %v798_v61 = vadd.f32 %v797_v55, %v735_v18 }
 0x149   :  { %v799_v63 = vadd.f32 %v798_v61, %v736_v60  ;;  %v672_v46 = vadd.f32 %v671_v33, %v1424_v7 }
 0x14b   :  { %v673_v4 = vadd.f32 %v1397_v53, %v672_v46  ;;  %v800_v5 = vadd.f32 %v799_v63, %v737_v2  ;;  %v742_v53 = vmul.f32 %v1433_v14, %v1433_v14 }
 0x14d   :  { %v801_v6 = vadd.f32 %v800_v5, %v738_v28  ;;  %v674_v10 = vadd.f32 %v1415_v1, %v673_v4  ;;  %v743_v1 = vmul.f32 %v1451_v26, %v1451_v26 }
 0x14f   :  { %v675_v59 = vadd.f32 %v674_v10, %v1442_v20  ;;  %v802_v11 = vadd.f32 %v801_v6, %v739_v38 }
 0x151   :  { %v803_v12 = vadd.f32 %v802_v11, %v740_v43  ;;  %v676_v7 = vadd.f32 %v675_v59, %v1460_v32 }
 0x153   :  { %v677_v15 = vadd.f32 %v1433_v14, %v676_v7  ;;  %v804_v17 = vadd.f32 %v803_v12, %v741_v47  ;;  %v746_v14 = vmul.f32 %v1469_v39, %v1469_v39 }
 0x155   :  { %v805_v41 = vadd.f32 %v804_v17, %v742_v53  ;;  %v678_v19 = vadd.f32 %v1451_v26, %v677_v15  ;;  %v747_v26 = vmul.f32 %v1487_v56, %v1487_v56 }
 0x157   :  { %v679_v20 = vadd.f32 %v678_v19, %v1478_v49  ;;  %v806_v45 = vadd.f32 %v805_v41, %v743_v1 }
 0x159   :  { %v807_v22 = vadd.f32 %v806_v45, %v744_v21  ;;  %v680_v32 = vadd.f32 %v679_v20, %v1496_v0 }
 0x15b   :  { %v681_v57 = vadd.f32 %v1469_v39, %v680_v32  ;;  %v808_v27 = vadd.f32 %v807_v22, %v745_v25  ;;  %v750_v39 = vmul.f32 %v1505_v9, %v1505_v9 }
 0x15d   :  { %v809_v29 = vadd.f32 %v808_v27, %v746_v14  ;;  %v682_v30 = vadd.f32 %v1487_v56, %v681_v57  ;;  %v751_v56 = vmul.f32 %v1523_v24, %v1523_v24 }
 0x15f   :  { %v683_v49 = vadd.f32 %v682_v30, %v1514_v16  ;;  %v810_v34 = vadd.f32 %v809_v29, %v747_v26 }
 0x161   :  { %v811_v52 = vadd.f32 %v810_v34, %v748_v3  ;;  %v684_v0 = vadd.f32 %v683_v49, %v1532_v31 }
 0x163   :  { %v685_v36 = vadd.f32 %v1505_v9, %v684_v0  ;;  %v812_v62 = vadd.f32 %v811_v52, %v749_v35 }
 0x165   :  { %v686_v37 = vadd.f32 %v1523_v24, %v685_v36  ;;  %v813_v40 = vadd.f32 %v812_v62, %v750_v39 }
 0x167   :  { %687 = vst [vmem:[%s1646_s3] sm:$0xff] %v686_v37  ;;  %v814_v16 = vadd.f32 %v813_v40, %v751_v56 }
 0x169   :  { %815 = vst [vmem:[%s1647_s4] sm:$0xff] %v814_v16 }

// kernel: discriminator_forward.10
= control target key start
LH: loop header
LB: loop body
LE: loop exit
PB: predicated region body
PF: predicated region fallthrough
CT: control target
= control target key end

     0   :  { %s1030_s0 = inlined_call_operand.vmem [shape: f32[512,128], index: 0, kind: input, shape index: {}, may-alias: {0,3}]   ;;  %s1031_s1 = inlined_call_operand.vmem [shape: f32[1,128], index: 1, kind: input, shape index: {}]   ;;  %s1032_s2 = inlined_call_operand.vmem [shape: f32[1,128], index: 2, kind: input, shape index: {}]   ;;  %s1033_s3 = inlined_call_operand.vmem [shape: f32[512,128], index: 3, kind: output, shape index: {}, may-alias: {0,3}]  }
   0x1   :  { %v14_v0 = vld [vmem:[%s1030_s0] sm:$0xff]  ;;  %v15_v4 = vld [vmem:[%s1030_s0 + $0x8] sm:$0xff]  ;;  %v16_v5 = vld [vmem:[%s1030_s0 + $0x10] sm:$0xff] }
   0x2   :  { %v508_v1 = vld [vmem:[%s1031_s1] ss:$0 sm:$0xff]  ;;  %v17_v6 = vld [vmem:[%s1030_s0 + $0x18] sm:$0xff]  ;;  %v19_v11 = vld [vmem:[%s1030_s0 + $0x28] sm:$0xff] }
   0x3   :  { %v513_v2 = vld [vmem:[%s1032_s2] ss:$0 sm:$0xff]  ;;  %v85_v3 = vmul.f32 %v508_v1, %v14_v0  ;;  %v86_v7 = vmul.f32 %v508_v1, %v15_v4  ;;  %v87_v8 = vmul.f32 %v508_v1, %v16_v5  ;;  %v88_v9 = vmul.f32 %v508_v1, %v17_v6  ;;  %v20_v12 = vld [vmem:[%s1030_s0 + $0x30] sm:$0xff]  ;;  %v21_v17 = vld [vmem:[%s1030_s0 + $0x38] sm:$0xff] }
   0x4   :  { %v18_v10 = vld [vmem:[%s1030_s0 + $0x20] sm:$0xff]  ;;  %v90_v15 = vmul.f32 %v508_v1, %v19_v11  ;;  %v91_v16 = vmul.f32 %v508_v1, %v20_v12  ;;  %v92_v21 = vmul.f32 %v508_v1, %v21_v17  ;;  %v23_v30 = vld [vmem:[%s1030_s0 + $0x48] sm:$0xff]  ;;  %v24_v31 = vld [vmem:[%s1030_s0 + $0x50] sm:$0xff] }
   0x5   :  { %v156_v13 = vadd.f32 %v513_v2, %v85_v3  ;;  %v89_v14 = vmul.f32 %v508_v1, %v18_v10  ;;  %v157_v18 = vadd.f32 %v513_v2, %v86_v7  ;;  %v158_v19 = vadd.f32 %v513_v2, %v87_v8  ;;  %v22_v25 = vld [vmem:[%s1030_s0 + $0x40] sm:$0xff] }
   0x6   :  { %v159_v20 = vadd.f32 %v513_v2, %v88_v9  ;;  %v161_v24 = vadd.f32 %v513_v2, %v90_v15  ;;  %v162_v37 = vadd.f32 %v513_v2, %v91_v16  ;;  %v163_v38 = vadd.f32 %v513_v2, %v92_v21 }
   0x7   :  { %vm220_vm0 = vcmp.gt.f32.partialorder %v156_v13, 0.0  ;;  %v284_v22 = vmul.f32 0.2, %v156_v13  ;;  %v160_v23 = vadd.f32 %v513_v2, %v89_v14  ;;  %vm221_vm1 = vcmp.gt.f32.partialorder %v157_v18, 0.0 }
   0x8   :  { %v285_v26 = vmul.f32 0.2, %v157_v18  ;;  %vm222_vm2 = vcmp.gt.f32.partialorder %v158_v19, 0.0  ;;  %v286_v27 = vmul.f32 0.2, %v158_v19  ;;  %vm223_vm3 = vcmp.gt.f32.partialorder %v159_v20, 0.0 }
   0x9   :  { %v348_v28 = vsel %vm220_vm0, %v156_v13, %v284_v22  ;;  %v287_v29 = vmul.f32 0.2, %v159_v20  ;;  %vm224_vm4 = vcmp.gt.f32.partialorder %v160_v23, 0.0  ;;  %v288_v34 = vmul.f32 0.2, %v160_v23 }
   0xa   :  { %412 = vst [vmem:[%s1033_s3] sm:$0xff] %v348_v28  ;;  %v349_v32 = vsel %vm221_vm1, %v157_v18, %v285_v26  ;;  %v350_v33 = vsel %vm222_vm2, %v158_v19, %v286_v27  ;;  %vm225_vm5 = vcmp.gt.f32.partialorder %v161_v24, 0.0  ;;  %v289_v36 = vmul.f32 0.2, %v161_v24 }
   0xb   :  { %413 = vst [vmem:[%s1033_s3 + $0x8] sm:$0xff] %v349_v32  ;;  %414 = vst [vmem:[%s1033_s3 + $0x10] sm:$0xff] %v350_v33  ;;  %v351_v35 = vsel %vm223_vm3, %v159_v20, %v287_v29  ;;  %v352_v39 = vsel %vm224_vm4, %v160_v23, %v288_v34  ;;  %v93_v40 = vmul.f32 %v508_v1, %v22_v25  ;;  %vm226_vm6 = vcmp.gt.f32.partialorder %v162_v37, 0.0 }
   0xc   :  { %415 = vst [vmem:[%s1033_s3 + $0x18] sm:$0xff] %v351_v35  ;;  %v94_v41 = vmul.f32 %v508_v1, %v23_v30  ;;  %v95_v42 = vmul.f32 %v508_v1, %v24_v31  ;;  %v353_v46 = vsel %vm225_vm5, %v161_v24, %v289_v36  ;;  %v290_v47 = vmul.f32 0.2, %v162_v37 }
   0xd   :  { %vm227_vm7 = vcmp.gt.f32.partialorder %v163_v38, 0.0  ;;  %v291_v48 = vmul.f32 0.2, %v163_v38  ;;  %v164_v49 = vadd.f32 %v513_v2, %v93_v40 }
   0xe   :  { %v165_v50 = vadd.f32 %v513_v2, %v94_v41  ;;  %v166_v51 = vadd.f32 %v513_v2, %v95_v42  ;;  %v354_v52 = vsel %vm226_vm6, %v162_v37, %v290_v47 }
   0xf   :  { %v355_v57 = vsel %vm227_vm7, %v163_v38, %v291_v48  ;;  %vm228_vm8 = vcmp.gt.f32.partialorder %v164_v49, 0.0  ;;  %v292_v58 = vmul.f32 0.2, %v164_v49 }
  0x10   :  { %vm229_vm9 = vcmp.gt.f32.partialorder %v165_v50, 0.0  ;;  %v293_v59 = vmul.f32 0.2, %v165_v50  ;;  %vm230_vm10 = vcmp.gt.f32.partialorder %v166_v51, 0.0  ;;  %v294_v60 = vmul.f32 0.2, %v166_v51 }
  0x11   :  { %v356_v62 = vsel %vm228_vm8, %v164_v49, %v292_v58 }
  0x12   :  { %v357_v6 = vsel %vm229_vm9, %v165_v50, %v293_v59  ;;  %v358_v7 = vsel %vm230_vm10, %v166_v51, %v294_v60 }
  0x13   :  { %v25_v43 = vld [vmem:[%s1030_s0 + $0x58] sm:$0xff]  ;;  %v26_v44 = vld [vmem:[%s1030_s0 + $0x60] sm:$0xff]  ;;  %v27_v45 = vld [vmem:[%s1030_s0 + $0x68] sm:$0xff] }
  0x14   :  { %416 = vst [vmem:[%s1033_s3 + $0x20] sm:$0xff] %v352_v39  ;;  %417 = vst [vmem:[%s1033_s3 + $0x28] sm:$0xff] %v353_v46  ;;  %v96_v53 = vmul.f32 %v508_v1, %v25_v43  ;;  %v97_v54 = vmul.f32 %v508_v1, %v26_v44  ;;  %v98_v55 = vmul.f32 %v508_v1, %v27_v45 }
  0x16   :  { %v167_v61 = vadd.f32 %v513_v2, %v96_v53  ;;  %v168_v63 = vadd.f32 %v513_v2, %v97_v54  ;;  %v169_v0 = vadd.f32 %v513_v2, %v98_v55 }
  0x18   :  { %vm231_vm11 = vcmp.gt.f32.partialorder %v167_v61, 0.0  ;;  %v295_v8 = vmul.f32 0.2, %v167_v61  ;;  %vm232_vm12 = vcmp.gt.f32.partialorder %v168_v63, 0.0  ;;  %v296_v11 = vmul.f32 0.2, %v168_v63 }
  0x19   :  { %vm233_vm13 = vcmp.gt.f32.partialorder %v169_v0, 0.0  ;;  %v297_v12 = vmul.f32 0.2, %v169_v0 }
  0x1a   :  { %v359_v13 = vsel %vm231_vm11, %v167_v61, %v295_v8  ;;  %v360_v19 = vsel %vm232_vm12, %v168_v63, %v296_v11 }
  0x1b   :  { %v28_v56 = vld [vmem:[%s1030_s0 + $0x70] sm:$0xff]  ;;  %v361_v20 = vsel %vm233_vm13, %v169_v0, %v297_v12 }
  0x1c   :  { %418 = vst [vmem:[%s1033_s3 + $0x30] sm:$0xff] %v354_v52  ;;  %419 = vst [vmem:[%s1033_s3 + $0x38] sm:$0xff] %v355_v57  ;;  %v99_v3 = vmul.f32 %v508_v1, %v28_v56 }
  0x1e   :  { %v170_v14 = vadd.f32 %v513_v2, %v99_v3 }
  0x20   :  { %vm234_vm14 = vcmp.gt.f32.partialorder %v170_v14, 0.0  ;;  %v298_v23 = vmul.f32 0.2, %v170_v14 }
  0x22   :  { %v362_v30 = vsel %vm234_vm14, %v170_v14, %v298_v23 }
  0x23   :  { %v29_v4 = vld [vmem:[%s1030_s0 + $0x78] sm:$0xff]  ;;  %v30_v5 = vld [vmem:[%s1030_s0 + $0x80] sm:$0xff] }
  0x24   :  { %420 = vst [vmem:[%s1033_s3 + $0x40] sm:$0xff] %v356_v62  ;;  %v100_v15 = vmul.f32 %v508_v1, %v29_v4  ;;  %v101_v16 = vmul.f32 %v508_v1, %v30_v5 }
  0x26   :  { %v171_v24 = vadd.f32 %v513_v2, %v100_v15  ;;  %v172_v25 = vadd.f32 %v513_v2, %v101_v16 }
  0x28   :  { %vm235_vm15 = vcmp.gt.f32.partialorder %v171_v24, 0.0  ;;  %v299_v31 = vmul.f32 0.2, %v171_v24  ;;  %vm236_vm0 = vcmp.gt.f32.partialorder %v172_v25, 0.0  ;;  %v300_v34 = vmul.f32 0.2, %v172_v25 }
  0x2a   :  { %v363_v36 = vsel %vm235_vm15, %v171_v24, %v299_v31  ;;  %v364_v41 = vsel %vm236_vm0, %v172_v25, %v300_v34 }
  0x2b   :  { %v31_v9 = vld [vmem:[%s1030_s0 + $0x88] sm:$0xff]  ;;  %v32_v10 = vld [vmem:[%s1030_s0 + $0x90] sm:$0xff] }
  0x2c   :  { %421 = vst [vmem:[%s1033_s3 + $0x48] sm:$0xff] %v357_v6  ;;  %422 = vst [vmem:[%s1033_s3 + $0x50] sm:$0xff] %v358_v7  ;;  %v102_v21 = vmul.f32 %v508_v1, %v31_v9  ;;  %v103_v22 = vmul.f32 %v508_v1, %v32_v10 }
  0x2e   :  { %v173_v26 = vadd.f32 %v513_v2, %v102_v21  ;;  %v174_v27 = vadd.f32 %v513_v2, %v103_v22 }
  0x30   :  { %vm237_vm1 = vcmp.gt.f32.partialorder %v173_v26, 0.0  ;;  %v301_v35 = vmul.f32 0.2, %v173_v26  ;;  %vm238_vm2 = vcmp.gt.f32.partialorder %v174_v27, 0.0  ;;  %v302_v37 = vmul.f32 0.2, %v174_v27 }
  0x32   :  { %v365_v42 = vsel %vm237_vm1, %v173_v26, %v301_v35  ;;  %v366_v48 = vsel %vm238_vm2, %v174_v27, %v302_v37 }
  0x33   :  { %v33_v17 = vld [vmem:[%s1030_s0 + $0x98] sm:$0xff]  ;;  %v34_v18 = vld [vmem:[%s1030_s0 + $0xa0] sm:$0xff] }
  0x34   :  { %423 = vst [vmem:[%s1033_s3 + $0x58] sm:$0xff] %v359_v13  ;;  %424 = vst [vmem:[%s1033_s3 + $0x60] sm:$0xff] %v360_v19  ;;  %v104_v28 = vmul.f32 %v508_v1, %v33_v17  ;;  %v105_v29 = vmul.f32 %v508_v1, %v34_v18 }
  0x35   :  { %425 = vst [vmem:[%s1033_s3 + $0x68] sm:$0xff] %v361_v20 }
  0x36   :  { %v175_v38 = vadd.f32 %v513_v2, %v104_v28  ;;  %v176_v39 = vadd.f32 %v513_v2, %v105_v29 }
  0x38   :  { %vm239_vm3 = vcmp.gt.f32.partialorder %v175_v38, 0.0  ;;  %v303_v49 = vmul.f32 0.2, %v175_v38  ;;  %vm240_vm4 = vcmp.gt.f32.partialorder %v176_v39, 0.0  ;;  %v304_v50 = vmul.f32 0.2, %v176_v39 }
  0x3a   :  { %v367_v54 = vsel %vm239_vm3, %v175_v38, %v303_v49  ;;  %v368_v60 = vsel %vm240_vm4, %v176_v39, %v304_v50 }
  0x3c   :  { %v35_v32 = vld [vmem:[%s1030_s0 + $0xa8] sm:$0xff]  ;;  %v36_v33 = vld [vmem:[%s1030_s0 + $0xb0] sm:$0xff] }
  0x3d   :  { %426 = vst [vmem:[%s1033_s3 + $0x70] sm:$0xff] %v362_v30  ;;  %v106_v43 = vmul.f32 %v508_v1, %v35_v32  ;;  %v107_v44 = vmul.f32 %v508_v1, %v36_v33 }
  0x3f   :  { %v177_v51 = vadd.f32 %v513_v2, %v106_v43  ;;  %v178_v52 = vadd.f32 %v513_v2, %v107_v44 }
  0x41   :  { %vm241_vm5 = vcmp.gt.f32.partialorder %v177_v51, 0.0  ;;  %v305_v61 = vmul.f32 0.2, %v177_v51  ;;  %vm242_vm6 = vcmp.gt.f32.partialorder %v178_v52, 0.0  ;;  %v306_v62 = vmul.f32 0.2, %v178_v52 }
  0x43   :  { %v369_v4 = vsel %vm241_vm5, %v177_v51, %v305_v61  ;;  %v370_v8 = vsel %vm242_vm6, %v178_v52, %v306_v62 }
  0x44   :  { %v37_v40 = vld [vmem:[%s1030_s0 + $0xb8] sm:$0xff] }
  0x45   :  { %427 = vst [vmem:[%s1033_s3 + $0x78] sm:$0xff] %v363_v36  ;;  %v108_v53 = vmul.f32 %v508_v1, %v37_v40 }
  0x47   :  { %v179_v63 = vadd.f32 %v513_v2, %v108_v53 }
  0x49   :  { %vm243_vm7 = vcmp.gt.f32.partialorder %v179_v63, 0.0  ;;  %v307_v9 = vmul.f32 0.2, %v179_v63 }
  0x4b   :  { %v371_v14 = vsel %vm243_vm7, %v179_v63, %v307_v9 }
  0x4c   :  { %v38_v45 = vld [vmem:[%s1030_s0 + $0xc0] sm:$0xff]  ;;  %v39_v46 = vld [vmem:[%s1030_s0 + $0xc8] sm:$0xff]  ;;  %v40_v47 = vld [vmem:[%s1030_s0 + $0xd0] sm:$0xff] }
  0x4d   :  { %428 = vst [vmem:[%s1033_s3 + $0x80] sm:$0xff] %v364_v41  ;;  %429 = vst [vmem:[%s1033_s3 + $0x88] sm:$0xff] %v365_v42  ;;  %v109_v55 = vmul.f32 %v508_v1, %v38_v45  ;;  %v110_v56 = vmul.f32 %v508_v1, %v39_v46  ;;  %v111_v57 = vmul.f32 %v508_v1, %v40_v47 }
  0x4e   :  { %430 = vst [vmem:[%s1033_s3 + $0x90] sm:$0xff] %v366_v48 }
  0x4f   :  { %v180_v0 = vadd.f32 %v513_v2, %v109_v55  ;;  %v181_v3 = vadd.f32 %v513_v2, %v110_v56  ;;  %v182_v5 = vadd.f32 %v513_v2, %v111_v57 }
  0x51   :  { %vm244_vm8 = vcmp.gt.f32.partialorder %v180_v0, 0.0  ;;  %v308_v12 = vmul.f32 0.2, %v180_v0  ;;  %vm245_vm9 = vcmp.gt.f32.partialorder %v181_v3, 0.0  ;;  %v309_v13 = vmul.f32 0.2, %v181_v3 }
  0x52   :  { %vm246_vm10 = vcmp.gt.f32.partialorder %v182_v5, 0.0  ;;  %v310_v15 = vmul.f32 0.2, %v182_v5 }
  0x53   :  { %v372_v19 = vsel %vm244_vm8, %v180_v0, %v308_v12  ;;  %v373_v20 = vsel %vm245_vm9, %v181_v3, %v309_v13 }
  0x54   :  { %v374_v26 = vsel %vm246_vm10, %v182_v5, %v310_v15 }
  0x55   :  { %v41_v58 = vld [vmem:[%s1030_s0 + $0xd8] sm:$0xff]  ;;  %v42_v59 = vld [vmem:[%s1030_s0 + $0xe0] sm:$0xff] }
  0x56   :  { %431 = vst [vmem:[%s1033_s3 + $0x98] sm:$0xff] %v367_v54  ;;  %432 = vst [vmem:[%s1033_s3 + $0xa0] sm:$0xff] %v368_v60  ;;  %v112_v6 = vmul.f32 %v508_v1, %v41_v58  ;;  %v113_v7 = vmul.f32 %v508_v1, %v42_v59 }
  0x57   :  { %433 = vst [vmem:[%s1033_s3 + $0xa8] sm:$0xff] %v369_v4 }
  0x58   :  { %v183_v16 = vadd.f32 %v513_v2, %v112_v6  ;;  %v184_v17 = vadd.f32 %v513_v2, %v113_v7 }
  0x5a   :  { %vm247_vm11 = vcmp.gt.f32.partialorder %v183_v16, 0.0  ;;  %v311_v27 = vmul.f32 0.2, %v183_v16  ;;  %vm248_vm12 = vcmp.gt.f32.partialorder %v184_v17, 0.0  ;;  %v312_v28 = vmul.f32 0.2, %v184_v17 }
  0x5c   :  { %v375_v32 = vsel %vm247_vm11, %v183_v16, %v311_v27  ;;  %v376_v38 = vsel %vm248_vm12, %v184_v17, %v312_v28 }
  0x5e   :  { %v43_v10 = vld [vmem:[%s1030_s0 + $0xe8] sm:$0xff]  ;;  %v44_v11 = vld [vmem:[%s1030_s0 + $0xf0] sm:$0xff] }
  0x5f   :  { %434 = vst [vmem:[%s1033_s3 + $0xb0] sm:$0xff] %v370_v8  ;;  %v114_v21 = vmul.f32 %v508_v1, %v43_v10  ;;  %v115_v22 = vmul.f32 %v508_v1, %v44_v11 }
  0x61   :  { %v185_v29 = vadd.f32 %v513_v2, %v114_v21  ;;  %v186_v30 = vadd.f32 %v513_v2, %v115_v22 }
  0x63   :  { %vm249_vm13 = vcmp.gt.f32.partialorder %v185_v29, 0.0  ;;  %v313_v39 = vmul.f32 0.2, %v185_v29  ;;  %vm250_vm14 = vcmp.gt.f32.partialorder %v186_v30, 0.0  ;;  %v314_v40 = vmul.f32 0.2, %v186_v30 }
  0x65   :  { %v377_v44 = vsel %vm249_vm13, %v185_v29, %v313_v39  ;;  %v378_v48 = vsel %vm250_vm14, %v186_v30, %v314_v40 }
  0x66   :  { %v45_v18 = vld [vmem:[%s1030_s0 + $0xf8] sm:$0xff] }
  0x67   :  { %435 = vst [vmem:[%s1033_s3 + $0xb8] sm:$0xff] %v371_v14  ;;  %v116_v31 = vmul.f32 %v508_v1, %v45_v18 }
  0x69   :  { %v187_v41 = vadd.f32 %v513_v2, %v116_v31 }
  0x6b   :  { %vm251_vm15 = vcmp.gt.f32.partialorder %v187_v41, 0.0  ;;  %v315_v49 = vmul.f32 0.2, %v187_v41 }
  0x6d   :  { %v379_v54 = vsel %vm251_vm15, %v187_v41, %v315_v49 }
  0x6e   :  { %v46_v23 = vld [vmem:[%s1030_s0 + $0x100] sm:$0xff]  ;;  %v47_v24 = vld [vmem:[%s1030_s0 + $0x108] sm:$0xff]  ;;  %v48_v25 = vld [vmem:[%s1030_s0 + $0x110] sm:$0xff] }
  0x6f   :  { %436 = vst [vmem:[%s1033_s3 + $0xc0] sm:$0xff] %v372_v19  ;;  %437 = vst [vmem:[%s1033_s3 + $0xc8] sm:$0xff] %v373_v20  ;;  %v117_v33 = vmul.f32 %v508_v1, %v46_v23  ;;  %v118_v34 = vmul.f32 %v508_v1, %v47_v24  ;;  %v119_v35 = vmul.f32 %v508_v1, %v48_v25 }
  0x70   :  { %438 = vst [vmem:[%s1033_s3 + $0xd0] sm:$0xff] %v374_v26 }
  0x71   :  { %v188_v42 = vadd.f32 %v513_v2, %v117_v33  ;;  %v189_v43 = vadd.f32 %v513_v2, %v118_v34  ;;  %v190_v45 = vadd.f32 %v513_v2, %v119_v35 }
  0x73   :  { %vm252_vm0 = vcmp.gt.f32.partialorder %v188_v42, 0.0  ;;  %v316_v52 = vmul.f32 0.2, %v188_v42  ;;  %vm253_vm1 = vcmp.gt.f32.partialorder %v189_v43, 0.0  ;;  %v317_v53 = vmul.f32 0.2, %v189_v43 }
  0x74   :  { %vm254_vm2 = vcmp.gt.f32.partialorder %v190_v45, 0.0  ;;  %v318_v55 = vmul.f32 0.2, %v190_v45 }
  0x75   :  { %v380_v59 = vsel %vm252_vm0, %v188_v42, %v316_v52  ;;  %v381_v60 = vsel %vm253_vm1, %v189_v43, %v317_v53 }
  0x76   :  { %v382_v4 = vsel %vm254_vm2, %v190_v45, %v318_v55 }
  0x77   :  { %v49_v36 = vld [vmem:[%s1030_s0 + $0x118] sm:$0xff]  ;;  %v50_v37 = vld [vmem:[%s1030_s0 + $0x120] sm:$0xff] }
  0x78   :  { %439 = vst [vmem:[%s1033_s3 + $0xd8] sm:$0xff] %v375_v32  ;;  %440 = vst [vmem:[%s1033_s3 + $0xe0] sm:$0xff] %v376_v38  ;;  %v120_v46 = vmul.f32 %v508_v1, %v49_v36  ;;  %v121_v47 = vmul.f32 %v508_v1, %v50_v37 }
  0x79   :  { %441 = vst [vmem:[%s1033_s3 + $0xe8] sm:$0xff] %v377_v44 }
  0x7a   :  { %v191_v56 = vadd.f32 %v513_v2, %v120_v46  ;;  %v192_v57 = vadd.f32 %v513_v2, %v121_v47 }
  0x7c   :  { %vm255_vm3 = vcmp.gt.f32.partialorder %v191_v56, 0.0  ;;  %v319_v5 = vmul.f32 0.2, %v191_v56  ;;  %vm256_vm4 = vcmp.gt.f32.partialorder %v192_v57, 0.0  ;;  %v320_v6 = vmul.f32 0.2, %v192_v57 }
  0x7e   :  { %v383_v10 = vsel %vm255_vm3, %v191_v56, %v319_v5  ;;  %v384_v16 = vsel %vm256_vm4, %v192_v57, %v320_v6 }
  0x80   :  { %v51_v50 = vld [vmem:[%s1030_s0 + $0x128] sm:$0xff]  ;;  %v52_v51 = vld [vmem:[%s1030_s0 + $0x130] sm:$0xff] }
  0x81   :  { %442 = vst [vmem:[%s1033_s3 + $0xf0] sm:$0xff] %v378_v48  ;;  %v122_v61 = vmul.f32 %v508_v1, %v51_v50  ;;  %v123_v62 = vmul.f32 %v508_v1, %v52_v51 }
  0x83   :  { %v193_v7 = vadd.f32 %v513_v2, %v122_v61  ;;  %v194_v8 = vadd.f32 %v513_v2, %v123_v62 }
  0x85   :  { %vm257_vm5 = vcmp.gt.f32.partialorder %v193_v7, 0.0  ;;  %v321_v17 = vmul.f32 0.2, %v193_v7  ;;  %vm258_vm6 = vcmp.gt.f32.partialorder %v194_v8, 0.0  ;;  %v322_v18 = vmul.f32 0.2, %v194_v8 }
  0x87   :  { %v385_v22 = vsel %vm257_vm5, %v193_v7, %v321_v17  ;;  %v386_v26 = vsel %vm258_vm6, %v194_v8, %v322_v18 }
  0x88   :  { %v53_v58 = vld [vmem:[%s1030_s0 + $0x138] sm:$0xff] }
  0x89   :  { %443 = vst [vmem:[%s1033_s3 + $0xf8] sm:$0xff] %v379_v54  ;;  %v124_v9 = vmul.f32 %v508_v1, %v53_v58 }
  0x8b   :  { %v195_v19 = vadd.f32 %v513_v2, %v124_v9 }
  0x8d   :  { %vm259_vm7 = vcmp.gt.f32.partialorder %v195_v19, 0.0  ;;  %v323_v27 = vmul.f32 0.2, %v195_v19 }
  0x8f   :  { %v387_v32 = vsel %vm259_vm7, %v195_v19, %v323_v27 }
  0x90   :  { %v54_v63 = vld [vmem:[%s1030_s0 + $0x140] sm:$0xff]  ;;  %v55_v0 = vld [vmem:[%s1030_s0 + $0x148] sm:$0xff]  ;;  %v56_v3 = vld [vmem:[%s1030_s0 + $0x150] sm:$0xff] }
  0x91   :  { %444 = vst [vmem:[%s1033_s3 + $0x100] sm:$0xff] %v380_v59  ;;  %445 = vst [vmem:[%s1033_s3 + $0x108] sm:$0xff] %v381_v60  ;;  %v125_v11 = vmul.f32 %v508_v1, %v54_v63  ;;  %v126_v12 = vmul.f32 %v508_v1, %v55_v0  ;;  %v127_v13 = vmul.f32 %v508_v1, %v56_v3 }
  0x92   :  { %446 = vst [vmem:[%s1033_s3 + $0x110] sm:$0xff] %v382_v4 }
  0x93   :  { %v196_v20 = vadd.f32 %v513_v2, %v125_v11  ;;  %v197_v21 = vadd.f32 %v513_v2, %v126_v12  ;;  %v198_v23 = vadd.f32 %v513_v2, %v127_v13 }
  0x95   :  { %vm260_vm8 = vcmp.gt.f32.partialorder %v196_v20, 0.0  ;;  %v324_v30 = vmul.f32 0.2, %v196_v20  ;;  %vm261_vm9 = vcmp.gt.f32.partialorder %v197_v21, 0.0  ;;  %v325_v31 = vmul.f32 0.2, %v197_v21 }
  0x96   :  { %vm262_vm10 = vcmp.gt.f32.partialorder %v198_v23, 0.0  ;;  %v326_v33 = vmul.f32 0.2, %v198_v23 }
  0x97   :  { %v388_v37 = vsel %vm260_vm8, %v196_v20, %v324_v30  ;;  %v389_v38 = vsel %vm261_vm9, %v197_v21, %v325_v31 }
  0x98   :  { %v390_v44 = vsel %vm262_vm10, %v198_v23, %v326_v33 }
  0x99   :  { %v57_v14 = vld [vmem:[%s1030_s0 + $0x158] sm:$0xff]  ;;  %v58_v15 = vld [vmem:[%s1030_s0 + $0x160] sm:$0xff] }
  0x9a   :  { %447 = vst [vmem:[%s1033_s3 + $0x118] sm:$0xff] %v383_v10  ;;  %448 = vst [vmem:[%s1033_s3 + $0x120] sm:$0xff] %v384_v16  ;;  %v128_v24 = vmul.f32 %v508_v1, %v57_v14  ;;  %v129_v25 = vmul.f32 %v508_v1, %v58_v15 }
  0x9b   :  { %449 = vst [vmem:[%s1033_s3 + $0x128] sm:$0xff] %v385_v22 }
  0x9c   :  { %v199_v34 = vadd.f32 %v513_v2, %v128_v24  ;;  %v200_v35 = vadd.f32 %v513_v2, %v129_v25 }
  0x9e   :  { %vm263_vm11 = vcmp.gt.f32.partialorder %v199_v34, 0.0  ;;  %v327_v45 = vmul.f32 0.2, %v199_v34  ;;  %vm264_vm12 = vcmp.gt.f32.partialorder %v200_v35, 0.0  ;;  %v328_v46 = vmul.f32 0.2, %v200_v35 }
  0xa0   :  { %v391_v50 = vsel %vm263_vm11, %v199_v34, %v327_v45  ;;  %v392_v56 = vsel %vm264_vm12, %v200_v35, %v328_v46 }
  0xa2   :  { %v59_v28 = vld [vmem:[%s1030_s0 + $0x168] sm:$0xff]  ;;  %v60_v29 = vld [vmem:[%s1030_s0 + $0x170] sm:$0xff] }
  0xa3   :  { %450 = vst [vmem:[%s1033_s3 + $0x130] sm:$0xff] %v386_v26  ;;  %v130_v39 = vmul.f32 %v508_v1, %v59_v28  ;;  %v131_v40 = vmul.f32 %v508_v1, %v60_v29 }
  0xa5   :  { %v201_v47 = vadd.f32 %v513_v2, %v130_v39  ;;  %v202_v48 = vadd.f32 %v513_v2, %v131_v40 }
  0xa7   :  { %vm265_vm13 = vcmp.gt.f32.partialorder %v201_v47, 0.0  ;;  %v329_v57 = vmul.f32 0.2, %v201_v47  ;;  %vm266_vm14 = vcmp.gt.f32.partialorder %v202_v48, 0.0  ;;  %v330_v58 = vmul.f32 0.2, %v202_v48 }
  0xa9   :  { %v393_v62 = vsel %vm265_vm13, %v201_v47, %v329_v57  ;;  %v394_v4 = vsel %vm266_vm14, %v202_v48, %v330_v58 }
  0xaa   :  { %v61_v36 = vld [vmem:[%s1030_s0 + $0x178] sm:$0xff] }
  0xab   :  { %451 = vst [vmem:[%s1033_s3 + $0x138] sm:$0xff] %v387_v32  ;;  %v132_v49 = vmul.f32 %v508_v1, %v61_v36 }
  0xad   :  { %v203_v59 = vadd.f32 %v513_v2, %v132_v49 }
  0xaf   :  { %vm267_vm15 = vcmp.gt.f32.partialorder %v203_v59, 0.0  ;;  %v331_v5 = vmul.f32 0.2, %v203_v59 }
  0xb1   :  { %v395_v10 = vsel %vm267_vm15, %v203_v59, %v331_v5 }
  0xb2   :  { %v62_v41 = vld [vmem:[%s1030_s0 + $0x180] sm:$0xff]  ;;  %v63_v42 = vld [vmem:[%s1030_s0 + $0x188] sm:$0xff]  ;;  %v64_v43 = vld [vmem:[%s1030_s0 + $0x190] sm:$0xff] }
  0xb3   :  { %452 = vst [vmem:[%s1033_s3 + $0x140] sm:$0xff] %v388_v37  ;;  %453 = vst [vmem:[%s1033_s3 + $0x148] sm:$0xff] %v389_v38  ;;  %v133_v51 = vmul.f32 %v508_v1, %v62_v41  ;;  %v134_v52 = vmul.f32 %v508_v1, %v63_v42  ;;  %v135_v53 = vmul.f32 %v508_v1, %v64_v43 }
  0xb4   :  { %454 = vst [vmem:[%s1033_s3 + $0x150] sm:$0xff] %v390_v44 }
  0xb5   :  { %v204_v60 = vadd.f32 %v513_v2, %v133_v51  ;;  %v205_v61 = vadd.f32 %v513_v2, %v134_v52  ;;  %v206_v63 = vadd.f32 %v513_v2, %v135_v53 }
  0xb7   :  { %vm268_vm0 = vcmp.gt.f32.partialorder %v204_v60, 0.0  ;;  %v332_v8 = vmul.f32 0.2, %v204_v60  ;;  %vm269_vm1 = vcmp.gt.f32.partialorder %v205_v61, 0.0  ;;  %v333_v9 = vmul.f32 0.2, %v205_v61 }
  0xb8   :  { %vm270_vm2 = vcmp.gt.f32.partialorder %v206_v63, 0.0  ;;  %v334_v11 = vmul.f32 0.2, %v206_v63 }
  0xb9   :  { %v396_v15 = vsel %vm268_vm0, %v204_v60, %v332_v8  ;;  %v397_v16 = vsel %vm269_vm1, %v205_v61, %v333_v9 }
  0xba   :  { %v398_v22 = vsel %vm270_vm2, %v206_v63, %v334_v11 }
  0xbb   :  { %v65_v54 = vld [vmem:[%s1030_s0 + $0x198] sm:$0xff]  ;;  %v66_v55 = vld [vmem:[%s1030_s0 + $0x1a0] sm:$0xff] }
  0xbc   :  { %455 = vst [vmem:[%s1033_s3 + $0x158] sm:$0xff] %v391_v50  ;;  %456 = vst [vmem:[%s1033_s3 + $0x160] sm:$0xff] %v392_v56  ;;  %v136_v0 = vmul.f32 %v508_v1, %v65_v54  ;;  %v137_v3 = vmul.f32 %v508_v1, %v66_v55 }
  0xbd   :  { %457 = vst [vmem:[%s1033_s3 + $0x168] sm:$0xff] %v393_v62 }
  0xbe   :  { %v207_v12 = vadd.f32 %v513_v2, %v136_v0  ;;  %v208_v13 = vadd.f32 %v513_v2, %v137_v3 }
  0xc0   :  { %vm271_vm3 = vcmp.gt.f32.partialorder %v207_v12, 0.0  ;;  %v335_v23 = vmul.f32 0.2, %v207_v12  ;;  %vm272_vm4 = vcmp.gt.f32.partialorder %v208_v13, 0.0  ;;  %v336_v24 = vmul.f32 0.2, %v208_v13 }
  0xc2   :  { %v399_v28 = vsel %vm271_vm3, %v207_v12, %v335_v23  ;;  %v400_v34 = vsel %vm272_vm4, %v208_v13, %v336_v24 }
  0xc4   :  { %v67_v6 = vld [vmem:[%s1030_s0 + $0x1a8] sm:$0xff]  ;;  %v68_v7 = vld [vmem:[%s1030_s0 + $0x1b0] sm:$0xff] }
  0xc5   :  { %458 = vst [vmem:[%s1033_s3 + $0x170] sm:$0xff] %v394_v4  ;;  %v138_v17 = vmul.f32 %v508_v1, %v67_v6  ;;  %v139_v18 = vmul.f32 %v508_v1, %v68_v7 }
  0xc7   :  { %v209_v25 = vadd.f32 %v513_v2, %v138_v17  ;;  %v210_v26 = vadd.f32 %v513_v2, %v139_v18 }
  0xc9   :  { %vm273_vm5 = vcmp.gt.f32.partialorder %v209_v25, 0.0  ;;  %v337_v35 = vmul.f32 0.2, %v209_v25  ;;  %vm274_vm6 = vcmp.gt.f32.partialorder %v210_v26, 0.0  ;;  %v338_v36 = vmul.f32 0.2, %v210_v26 }
  0xcb   :  { %v401_v40 = vsel %vm273_vm5, %v209_v25, %v337_v35  ;;  %v402_v44 = vsel %vm274_vm6, %v210_v26, %v338_v36 }
  0xcc   :  { %v69_v14 = vld [vmem:[%s1030_s0 + $0x1b8] sm:$0xff] }
  0xcd   :  { %459 = vst [vmem:[%s1033_s3 + $0x178] sm:$0xff] %v395_v10  ;;  %v140_v27 = vmul.f32 %v508_v1, %v69_v14 }
  0xcf   :  { %v211_v37 = vadd.f32 %v513_v2, %v140_v27 }
  0xd1   :  { %vm275_vm7 = vcmp.gt.f32.partialorder %v211_v37, 0.0  ;;  %v339_v45 = vmul.f32 0.2, %v211_v37 }
  0xd3   :  { %v403_v50 = vsel %vm275_vm7, %v211_v37, %v339_v45 }
  0xd4   :  { %v70_v19 = vld [vmem:[%s1030_s0 + $0x1c0] sm:$0xff]  ;;  %v71_v20 = vld [vmem:[%s1030_s0 + $0x1c8] sm:$0xff]  ;;  %v72_v21 = vld [vmem:[%s1030_s0 + $0x1d0] sm:$0xff] }
  0xd5   :  { %460 = vst [vmem:[%s1033_s3 + $0x180] sm:$0xff] %v396_v15  ;;  %461 = vst [vmem:[%s1033_s3 + $0x188] sm:$0xff] %v397_v16  ;;  %v141_v29 = vmul.f32 %v508_v1, %v70_v19  ;;  %v142_v30 = vmul.f32 %v508_v1, %v71_v20  ;;  %v143_v31 = vmul.f32 %v508_v1, %v72_v21 }
  0xd6   :  { %462 = vst [vmem:[%s1033_s3 + $0x190] sm:$0xff] %v398_v22 }
  0xd7   :  { %v212_v38 = vadd.f32 %v513_v2, %v141_v29  ;;  %v213_v39 = vadd.f32 %v513_v2, %v142_v30  ;;  %v214_v41 = vadd.f32 %v513_v2, %v143_v31 }
  0xd9   :  { %vm276_vm8 = vcmp.gt.f32.partialorder %v212_v38, 0.0  ;;  %v340_v48 = vmul.f32 0.2, %v212_v38  ;;  %vm277_vm9 = vcmp.gt.f32.partialorder %v213_v39, 0.0  ;;  %v341_v49 = vmul.f32 0.2, %v213_v39 }
  0xda   :  { %vm278_vm10 = vcmp.gt.f32.partialorder %v214_v41, 0.0  ;;  %v342_v51 = vmul.f32 0.2, %v214_v41 }
  0xdb   :  { %v404_v55 = vsel %vm276_vm8, %v212_v38, %v340_v48  ;;  %v405_v56 = vsel %vm277_vm9, %v213_v39, %v341_v49 }
  0xdc   :  { %v406_v59 = vsel %vm278_vm10, %v214_v41, %v342_v51 }
  0xdd   :  { %v73_v32 = vld [vmem:[%s1030_s0 + $0x1d8] sm:$0xff]  ;;  %v74_v33 = vld [vmem:[%s1030_s0 + $0x1e0] sm:$0xff] }
  0xde   :  { %463 = vst [vmem:[%s1033_s3 + $0x198] sm:$0xff] %v399_v28  ;;  %464 = vst [vmem:[%s1033_s3 + $0x1a0] sm:$0xff] %v400_v34  ;;  %v144_v42 = vmul.f32 %v508_v1, %v73_v32  ;;  %v145_v43 = vmul.f32 %v508_v1, %v74_v33 }
  0xdf   :  { %465 = vst [vmem:[%s1033_s3 + $0x1a8] sm:$0xff] %v401_v40 }
  0xe0   :  { %v215_v52 = vadd.f32 %v513_v2, %v144_v42  ;;  %v216_v53 = vadd.f32 %v513_v2, %v145_v43 }
  0xe2   :  { %vm279_vm11 = vcmp.gt.f32.partialorder %v215_v52, 0.0  ;;  %v343_v60 = vmul.f32 0.2, %v215_v52  ;;  %vm280_vm12 = vcmp.gt.f32.partialorder %v216_v53, 0.0  ;;  %v344_v61 = vmul.f32 0.2, %v216_v53 }
  0xe4   :  { %v407_v3 = vsel %vm279_vm11, %v215_v52, %v343_v60  ;;  %v408_v4 = vsel %vm280_vm12, %v216_v53, %v344_v61 }
  0xe6   :  { %v75_v46 = vld [vmem:[%s1030_s0 + $0x1e8] sm:$0xff]  ;;  %v76_v47 = vld [vmem:[%s1030_s0 + $0x1f0] sm:$0xff] }
  0xe7   :  { %466 = vst [vmem:[%s1033_s3 + $0x1b0] sm:$0xff] %v402_v44  ;;  %v146_v57 = vmul.f32 %v508_v1, %v75_v46  ;;  %v147_v58 = vmul.f32 %v508_v1, %v76_v47 }
  0xe9   :  { %v217_v62 = vadd.f32 %v513_v2, %v146_v57  ;;  %v218_v63 = vadd.f32 %v513_v2, %v147_v58 }
  0xeb   :  { %vm281_vm13 = vcmp.gt.f32.partialorder %v217_v62, 0.0  ;;  %v345_v5 = vmul.f32 0.2, %v217_v62  ;;  %vm282_vm14 = vcmp.gt.f32.partialorder %v218_v63, 0.0  ;;  %v346_v6 = vmul.f32 0.2, %v218_v63 }
  0xed   :  { %v409_v8 = vsel %vm281_vm13, %v217_v62, %v345_v5 }
  0xee   :  { %v77_v54 = vld [vmem:[%s1030_s0 + $0x1f8] sm:$0xff] }
  0xef   :  { %467 = vst [vmem:[%s1033_s3 + $0x1b8] sm:$0xff] %v403_v50  ;;  %468 = vst [vmem:[%s1033_s3 + $0x1c0] sm:$0xff] %v404_v55  ;;  %v148_v0 = vmul.f32 %v508_v1, %v77_v54  ;;  %v410_v1 = vsel %vm282_vm14, %v218_v63, %v346_v6 }
  0xf0   :  { %469 = vst [vmem:[%s1033_s3 + $0x1c8] sm:$0xff] %v405_v56  ;;  %470 = vst [vmem:[%s1033_s3 + $0x1d0] sm:$0xff] %v406_v59 }
  0xf1   :  { %471 = vst [vmem:[%s1033_s3 + $0x1d8] sm:$0xff] %v407_v3  ;;  %472 = vst [vmem:[%s1033_s3 + $0x1e0] sm:$0xff] %v408_v4  ;;  %v219_v7 = vadd.f32 %v513_v2, %v148_v0 }
  0xf2   :  { %473 = vst [vmem:[%s1033_s3 + $0x1e8] sm:$0xff] %v409_v8  ;;  %474 = vst [vmem:[%s1033_s3 + $0x1f0] sm:$0xff] %v410_v1 }
  0xf3   :  { %vm283_vm15 = vcmp.gt.f32.partialorder %v219_v7, 0.0  ;;  %v347_v9 = vmul.f32 0.2, %v219_v7 }
  0xf5   :  { %v411_v10 = vsel %vm283_vm15, %v219_v7, %v347_v9 }
  0xf6   :  { %475 = vst [vmem:[%s1033_s3 + $0x1f8] sm:$0xff] %v411_v10 }

// kernel: discriminator_forward.11
= control target key start
LH: loop header
LB: loop body
LE: loop exit
PB: predicated region body
PF: predicated region fallthrough
CT: control target
= control target key end

     0   :  { %s763_s1 = inlined_call_operand.vmem [shape: bf16[256,128], index: 1, kind: input, shape index: {}]   ;;  %s764_s0 = inlined_call_operand.vmem [shape: bf16[128,256], index: 0, kind: input, shape index: {}]   ;;  %s765_s2 = inlined_call_operand.vmem [shape: f32[128,128], index: 2, kind: output, shape index: {0}]   ;;  %s766_s3 = inlined_call_operand.vmem [shape: f32[8,128], index: 3, kind: output, shape index: {1}]   ;;  %s767_s4 = inlined_call_operand.vmem [shape: f32[8,128], index: 4, kind: output, shape index: {2}]  }
   0x1   :  { %v524_v0 = vld [vmem:[%s763_s1 + $0x78] sm:$0xff]   ;;  %v526_v2 = vld [vmem:[%s763_s1 + $0x70] sm:$0xff]   ;;  %v528_v4 = vld [vmem:[%s763_s1 + $0x68] sm:$0xff]  }
   0x2   :  { %v525_v1 = vld [vmem:[%s763_s1 + $0x38] sm:$0xff]   ;;  %444 = vmatprep.subr.bf16.mxu0 %v524_v0  ;;  %508 = vmatprep.subr.bf16.mxu1 %v524_v0  ;;  %v527_v3 = vld [vmem:[%s763_s1 + $0x30] sm:$0xff]   ;;  %v529_v5 = vld [vmem:[%s763_s1 + $0x28] sm:$0xff]  }
   0x3   :  { %445 = vmatpush3.bf16.msra.mxu0 %v525_v1  ;;  %516 = vmatpush3.bf16.msra.mxu1 %v525_v1  ;;  %v530_v6 = vld [vmem:[%s763_s1 + $0x60] sm:$0xff]   ;;  %v532_v8 = vld [vmem:[%s763_s1 + $0x58] sm:$0xff]   ;;  %v534_v10 = vld [vmem:[%s763_s1 + $0x50] sm:$0xff]  }
   0x4   :  { %446 = vmatprep.subr.bf16.mxu0 %v526_v2  ;;  %509 = vmatprep.subr.bf16.mxu1 %v526_v2  ;;  %v531_v7 = vld [vmem:[%s763_s1 + $0x20] sm:$0xff]   ;;  %v533_v9 = vld [vmem:[%s763_s1 + $0x18] sm:$0xff]   ;;  %v535_v12 = vld [vmem:[%s763_s1 + $0x10] sm:$0xff]  }
   0x5   :  { %v542_v11 = vld [vmem:[%s764_s0 + $0x4] ss:$8 sps:$4 sm:$0xff]   ;;  %v540_v18 = vld [vmem:[%s764_s0] ss:$8 sps:$4 sm:$0xff]   ;;  %v543_v20 = vld [vmem:[%s764_s0 + $0x14] ss:$8 sps:$4 sm:$0xff]  }
   0x6   :  { %v548_v13 = vld [vmem:[%s764_s0 + $0x44] ss:$8 sps:$4 sm:$0xff]   ;;  %271 = vmatprep.mubr.bf16.mxu0 %v542_v11  ;;  %v546_v19 = vld [vmem:[%s764_s0 + $0x40] ss:$8 sps:$4 sm:$0xff]   ;;  %v552_v21 = vld [vmem:[%s764_s0 + $0x54] ss:$8 sps:$4 sm:$0xff]  }
   0x7   :  { %447 = vmatpush3.bf16.msra.mxu0 %v527_v3  ;;  %517 = vmatpush3.bf16.msra.mxu1 %v527_v3  ;;  %v536_v14 = vld [vmem:[%s763_s1 + $0x48] sm:$0xff]   ;;  %v538_v16 = vld [vmem:[%s763_s1 + $0x40] sm:$0xff]   ;;  %v545_v22 = vld [vmem:[%s764_s0 + $0x10] ss:$8 sps:$4 sm:$0xff]  }
   0x8   :  { %448 = vmatprep.subr.bf16.mxu0 %v528_v4  ;;  %510 = vmatprep.subr.bf16.mxu1 %v528_v4  ;;  %v537_v15 = vld [vmem:[%s763_s1 + $0x8] sm:$0xff]   ;;  %v539_v17 = vld [vmem:[%s763_s1] sm:$0xff]   ;;  %v554_v23 = vld [vmem:[%s764_s0 + $0x50] ss:$8 sps:$4 sm:$0xff]  }
   0x9   :  { %303 = vmatprep.mubr.bf16.mxu1 %v548_v13  ;;  %v549_v24 = vld [vmem:[%s764_s0 + $0x24] ss:$8 sps:$4 sm:$0xff]   ;;  %v551_v26 = vld [vmem:[%s764_s0 + $0x20] ss:$8 sps:$4 sm:$0xff]   ;;  %v555_v28 = vld [vmem:[%s764_s0 + $0x34] ss:$8 sps:$4 sm:$0xff]  }
   0xa   :  { %v558_v25 = vld [vmem:[%s764_s0 + $0x64] ss:$8 sps:$4 sm:$0xff]   ;;  %v560_v27 = vld [vmem:[%s764_s0 + $0x60] ss:$8 sps:$4 sm:$0xff]   ;;  %v561_v29 = vld [vmem:[%s764_s0 + $0x74] ss:$8 sps:$4 sm:$0xff]  }
   0xb   :  { %449 = vmatpush3.bf16.msra.mxu0 %v529_v5  ;;  %518 = vmatpush3.bf16.msra.mxu1 %v529_v5  ;;  %v557_v30 = vld [vmem:[%s764_s0 + $0x30] ss:$8 sps:$4 sm:$0xff]  }
   0xc   :  { %450 = vmatprep.subr.bf16.mxu0 %v530_v6  ;;  %511 = vmatprep.subr.bf16.mxu1 %v530_v6  ;;  %v563_v31 = vld [vmem:[%s764_s0 + $0x70] ss:$8 sps:$4 sm:$0xff]  }
   0xf   :  { %451 = vmatpush3.bf16.msra.mxu0 %v531_v7  ;;  %519 = vmatpush3.bf16.msra.mxu1 %v531_v7 }
  0x10   :  { %452 = vmatprep.subr.bf16.mxu0 %v532_v8  ;;  %512 = vmatprep.subr.bf16.mxu1 %v532_v8 }
  0x13   :  { %453 = vmatpush3.bf16.msra.mxu0 %v533_v9  ;;  %520 = vmatpush3.bf16.msra.mxu1 %v533_v9 }
  0x14   :  { %454 = vmatprep.subr.bf16.mxu0 %v534_v10  ;;  %513 = vmatprep.subr.bf16.mxu1 %v534_v10 }
  0x17   :  { %455 = vmatpush3.bf16.msra.mxu0 %v535_v12  ;;  %521 = vmatpush3.bf16.msra.mxu1 %v535_v12 }
  0x18   :  { %456 = vmatprep.subr.bf16.mxu0 %v536_v14  ;;  %514 = vmatprep.subr.bf16.mxu1 %v536_v14 }
  0x1b   :  { %457 = vmatpush3.bf16.msra.mxu0 %v537_v15  ;;  %522 = vmatpush3.bf16.msra.mxu1 %v537_v15 }
  0x1c   :  { %458 = vmatprep.subr.bf16.mxu0 %v538_v16  ;;  %515 = vmatprep.subr.bf16.mxu1 %v538_v16 }
  0x1f   :  { %459 = vmatpush3.bf16.msra.mxu0 %v539_v17  ;;  %523 = vmatpush3.bf16.msra.mxu1 %v539_v17 }
  0x22   :  { %272 = vmatmul.mubr.bf16.vlgmr.msra.gmra.mxu0 %v540_v18  ;;  %304 = vmatmul.mubr.bf16.vlgmr.msra.gmra.mxu1 %v546_v19 }
  0x23   :  { %279 = vmatprep.mubr.bf16.mxu0 %v543_v20  ;;  %311 = vmatprep.mubr.bf16.mxu1 %v552_v21 }
  0x2a   :  { %280 = vmatmul.mubr.bf16.gmra.mxu0 %v545_v22  ;;  %312 = vmatmul.mubr.bf16.gmra.mxu1 %v554_v23 }
  0x2b   :  { %287 = vmatprep.mubr.bf16.mxu0 %v549_v24  ;;  %319 = vmatprep.mubr.bf16.mxu1 %v558_v25 }
  0x32   :  { %288 = vmatmul.mubr.bf16.gmra.mxu0 %v551_v26  ;;  %320 = vmatmul.mubr.bf16.gmra.mxu1 %v560_v27 }
  0x33   :  { %295 = vmatprep.mubr.bf16.mxu0 %v555_v28  ;;  %327 = vmatprep.mubr.bf16.mxu1 %v561_v29 }
  0x3a   :  { %296 = vmatmul.mubr.bf16.gmra.mxu0 %v557_v30  ;;  %328 = vmatmul.mubr.bf16.gmra.mxu1 %v563_v31 }
  0xe2   :  { %v460_v32 = vpop.f32.mrf.mxu0  ;;  %v484_v33 = vpop.f32.mrf.mxu1 }
  0xe4   :  { %v461_v34 = vpop.f32.mrf.mxu0  ;;  %v485_v35 = vpop.f32.mrf.mxu1 }
  0xe5   :  { %v462_v36 = vadd.f32 %v461_v34, %v460_v32  ;;  %v685_v37 = vadd.f32 %v485_v35, %v484_v33 }
  0xe6   :  { %v463_v38 = vpop.f32.mrf.mxu0  ;;  %v487_v39 = vpop.f32.mrf.mxu1 }
  0xe7   :  { %384 = vst [vmem:[%s765_s2] sm:$0xff] %v462_v36  ;;  %392 = vst [vmem:[%s765_s2 + $0x40] sm:$0xff] %v685_v37  ;;  %v352_v63 = vmul.f32 %v462_v36, %v462_v36 }
  0xe8   :  { %v464_v40 = vpop.f32.mrf.mxu0  ;;  %v488_v41 = vpop.f32.mrf.mxu1 }
  0xe9   :  { %v465_v42 = vadd.f32 %v464_v40, %v463_v38  ;;  %v694_v43 = vadd.f32 %v488_v41, %v487_v39  ;;  %v360_v38 = vmul.f32 %v685_v37, %v685_v37 }
  0xea   :  { %v466_v44 = vpop.f32.mrf.mxu0  ;;  %v490_v45 = vpop.f32.mrf.mxu1 }
  0xeb   :  { %385 = vst [vmem:[%s765_s2 + $0x8] sm:$0xff] %v465_v42  ;;  %393 = vst [vmem:[%s765_s2 + $0x48] sm:$0xff] %v694_v43  ;;  %v353_v58 = vmul.f32 %v465_v42, %v465_v42  ;;  %v336_v3 = vadd.f32 %v465_v42, %v462_v36  ;;  %v361_v41 = vmul.f32 %v694_v43, %v694_v43 }
  0xec   :  { %v467_v46 = vpop.f32.mrf.mxu0  ;;  %v491_v47 = vpop.f32.mrf.mxu1 }
  0xed   :  { %v468_v48 = vadd.f32 %v467_v46, %v466_v44  ;;  %v703_v49 = vadd.f32 %v491_v47, %v490_v45  ;;  %v368_v4 = vadd.f32 %v353_v58, %v352_v63 }
  0xee   :  { %v469_v50 = vpop.f32.mrf.mxu0  ;;  %v493_v51 = vpop.f32.mrf.mxu1 }
  0xef   :  { %386 = vst [vmem:[%s765_s2 + $0x10] sm:$0xff] %v468_v48  ;;  %394 = vst [vmem:[%s765_s2 + $0x50] sm:$0xff] %v703_v49  ;;  %v354_v0 = vmul.f32 %v468_v48, %v468_v48  ;;  %v337_v8 = vadd.f32 %v468_v48, %v336_v3  ;;  %v362_v45 = vmul.f32 %v703_v49, %v703_v49 }
  0xf0   :  { %v470_v52 = vpop.f32.mrf.mxu0  ;;  %v494_v53 = vpop.f32.mrf.mxu1 }
  0xf1   :  { %v471_v54 = vadd.f32 %v470_v52, %v469_v50  ;;  %v712_v55 = vadd.f32 %v494_v53, %v493_v51  ;;  %v369_v11 = vadd.f32 %v368_v4, %v354_v0 }
  0xf2   :  { %v472_v56 = vpop.f32.mrf.mxu0  ;;  %v496_v57 = vpop.f32.mrf.mxu1 }
  0xf3   :  { %387 = vst [vmem:[%s765_s2 + $0x18] sm:$0xff] %v471_v54  ;;  %395 = vst [vmem:[%s765_s2 + $0x58] sm:$0xff] %v712_v55  ;;  %v355_v5 = vmul.f32 %v471_v54, %v471_v54  ;;  %v338_v14 = vadd.f32 %v471_v54, %v337_v8  ;;  %v363_v48 = vmul.f32 %v712_v55, %v712_v55 }
  0xf4   :  { %v473_v59 = vpop.f32.mrf.mxu0  ;;  %v497_v60 = vpop.f32.mrf.mxu1 }
  0xf5   :  { %v474_v61 = vadd.f32 %v473_v59, %v472_v56  ;;  %v498_v62 = vadd.f32 %v497_v60, %v496_v57  ;;  %v370_v16 = vadd.f32 %v369_v11, %v355_v5 }
  0xf6   :  { %v475_v1 = vpop.f32.mrf.mxu0  ;;  %v499_v2 = vpop.f32.mrf.mxu1 }
  0xf7   :  { %388 = vst [vmem:[%s765_s2 + $0x20] sm:$0xff] %v474_v61  ;;  %396 = vst [vmem:[%s765_s2 + $0x60] sm:$0xff] %v498_v62  ;;  %v356_v15 = vmul.f32 %v474_v61, %v474_v61  ;;  %v339_v19 = vadd.f32 %v474_v61, %v338_v14 }
  0xf8   :  { %v476_v6 = vpop.f32.mrf.mxu0  ;;  %v500_v7 = vpop.f32.mrf.mxu1 }
  0xf9   :  { %v477_v9 = vadd.f32 %v476_v6, %v475_v1  ;;  %v501_v10 = vadd.f32 %v500_v7, %v499_v2  ;;  %v371_v25 = vadd.f32 %v370_v16, %v356_v15 }
  0xfa   :  { %v478_v12 = vpop.f32.mrf.mxu0  ;;  %v502_v13 = vpop.f32.mrf.mxu1 }
  0xfb   :  { %389 = vst [vmem:[%s765_s2 + $0x28] sm:$0xff] %v477_v9  ;;  %397 = vst [vmem:[%s765_s2 + $0x68] sm:$0xff] %v501_v10  ;;  %v357_v20 = vmul.f32 %v477_v9, %v477_v9  ;;  %v340_v26 = vadd.f32 %v477_v9, %v339_v19  ;;  %v365_v56 = vmul.f32 %v501_v10, %v501_v10 }
  0xfc   :  { %v479_v17 = vpop.f32.mrf.mxu0  ;;  %v503_v18 = vpop.f32.mrf.mxu1 }
  0xfd   :  { %v480_v21 = vadd.f32 %v479_v17, %v478_v12  ;;  %v504_v22 = vadd.f32 %v503_v18, %v502_v13  ;;  %v372_v30 = vadd.f32 %v371_v25, %v357_v20 }
  0xfe   :  { %v481_v23 = vpop.f32.mrf.mxu0  ;;  %v505_v24 = vpop.f32.mrf.mxu1 }
  0xff   :  { %v358_v27 = vmul.f32 %v480_v21, %v480_v21  ;;  %390 = vst [vmem:[%s765_s2 + $0x30] sm:$0xff] %v480_v21  ;;  %398 = vst [vmem:[%s765_s2 + $0x70] sm:$0xff] %v504_v22  ;;  %v341_v31 = vadd.f32 %v480_v21, %v340_v26  ;;  %v366_v59 = vmul.f32 %v504_v22, %v504_v22 }
 0x100   :  { %v482_v28 = vpop.f32.mrf.mxu0  ;;  %v506_v29 = vpop.f32.mrf.mxu1 }
 0x101   :  { %v483_v32 = vadd.f32 %v482_v28, %v481_v23  ;;  %v507_v33 = vadd.f32 %v506_v29, %v505_v24  ;;  %v373_v34 = vadd.f32 %v372_v30, %v358_v27 }
 0x103   :  { %v342_v35 = vadd.f32 %v483_v32, %v341_v31  ;;  %v359_v36 = vmul.f32 %v483_v32, %v483_v32  ;;  %391 = vst [vmem:[%s765_s2 + $0x38] sm:$0xff] %v483_v32  ;;  %399 = vst [vmem:[%s765_s2 + $0x78] sm:$0xff] %v507_v33  ;;  %v367_v63 = vmul.f32 %v507_v33, %v507_v33 }
 0x105   :  { %v343_v39 = vadd.f32 %v685_v37, %v342_v35  ;;  %v374_v40 = vadd.f32 %v373_v34, %v359_v36  ;;  %v364_v37 = vmul.f32 %v498_v62, %v498_v62 }
 0x107   :  { %v344_v42 = vadd.f32 %v694_v43, %v343_v39  ;;  %v375_v44 = vadd.f32 %v374_v40, %v360_v38 }
 0x109   :  { %v376_v46 = vadd.f32 %v375_v44, %v361_v41  ;;  %v345_v47 = vadd.f32 %v703_v49, %v344_v42 }
 0x10b   :  { %v346_v50 = vadd.f32 %v712_v55, %v345_v47  ;;  %v377_v51 = vadd.f32 %v376_v46, %v362_v45 }
 0x10d   :  { %v347_v52 = vadd.f32 %v498_v62, %v346_v50  ;;  %v378_v53 = vadd.f32 %v377_v51, %v363_v48 }
 0x10f   :  { %v348_v54 = vadd.f32 %v501_v10, %v347_v52  ;;  %v379_v57 = vadd.f32 %v378_v53, %v364_v37 }
 0x111   :  { %v380_v43 = vadd.f32 %v379_v57, %v365_v56  ;;  %v349_v58 = vadd.f32 %v504_v22, %v348_v54 }
 0x113   :  { %v381_v60 = vadd.f32 %v380_v43, %v366_v59  ;;  %v350_v61 = vadd.f32 %v507_v33, %v349_v58 }
 0x115   :  { %351 = vst [vmem:[%s766_s3] sm:$0xff] %v350_v61  ;;  %v382_v49 = vadd.f32 %v381_v60, %v367_v63 }
 0x117   :  { %383 = vst [vmem:[%s767_s4] sm:$0xff] %v382_v49 }

// kernel: discriminator_forward.12
= control target key start
LH: loop header
LB: loop body
LE: loop exit
PB: predicated region body
PF: predicated region fallthrough
CT: control target
= control target key end

     0   :  { %s305_s0 = inlined_call_operand.vmem [shape: f32[128,128], index: 0, kind: input, shape index: {}, may-alias: {0,3}]   ;;  %s306_s1 = inlined_call_operand.vmem [shape: f32[1,128], index: 1, kind: input, shape index: {}]   ;;  %s307_s2 = inlined_call_operand.vmem [shape: f32[1,128], index: 2, kind: input, shape index: {}]   ;;  %s308_s3 = inlined_call_operand.vmem [shape: f32[128,128], index: 3, kind: output, shape index: {}, may-alias: {0,3}]  }
   0x1   :  { %v14_v0 = vld [vmem:[%s305_s0] sm:$0xff]  ;;  %v15_v4 = vld [vmem:[%s305_s0 + $0x8] sm:$0xff]  ;;  %v16_v5 = vld [vmem:[%s305_s0 + $0x10] sm:$0xff] }
   0x2   :  { %v172_v1 = vld [vmem:[%s306_s1] ss:$0 sm:$0xff]  ;;  %v17_v6 = vld [vmem:[%s305_s0 + $0x18] sm:$0xff]  ;;  %v19_v11 = vld [vmem:[%s305_s0 + $0x28] sm:$0xff] }
   0x3   :  { %v177_v2 = vld [vmem:[%s307_s2] ss:$0 sm:$0xff]  ;;  %v37_v3 = vmul.f32 %v172_v1, %v14_v0  ;;  %v38_v7 = vmul.f32 %v172_v1, %v15_v4  ;;  %v39_v8 = vmul.f32 %v172_v1, %v16_v5  ;;  %v40_v9 = vmul.f32 %v172_v1, %v17_v6  ;;  %v20_v12 = vld [vmem:[%s305_s0 + $0x30] sm:$0xff]  ;;  %v21_v17 = vld [vmem:[%s305_s0 + $0x38] sm:$0xff] }
   0x4   :  { %v18_v10 = vld [vmem:[%s305_s0 + $0x20] sm:$0xff]  ;;  %v42_v15 = vmul.f32 %v172_v1, %v19_v11  ;;  %v43_v16 = vmul.f32 %v172_v1, %v20_v12  ;;  %v44_v21 = vmul.f32 %v172_v1, %v21_v17  ;;  %v23_v30 = vld [vmem:[%s305_s0 + $0x48] sm:$0xff]  ;;  %v24_v31 = vld [vmem:[%s305_s0 + $0x50] sm:$0xff] }
   0x5   :  { %v60_v13 = vadd.f32 %v177_v2, %v37_v3  ;;  %v41_v14 = vmul.f32 %v172_v1, %v18_v10  ;;  %v61_v18 = vadd.f32 %v177_v2, %v38_v7  ;;  %v62_v19 = vadd.f32 %v177_v2, %v39_v8  ;;  %v22_v25 = vld [vmem:[%s305_s0 + $0x40] sm:$0xff] }
   0x6   :  { %v63_v20 = vadd.f32 %v177_v2, %v40_v9  ;;  %v65_v24 = vadd.f32 %v177_v2, %v42_v15  ;;  %v66_v37 = vadd.f32 %v177_v2, %v43_v16  ;;  %v67_v38 = vadd.f32 %v177_v2, %v44_v21 }
   0x7   :  { %vm76_vm0 = vcmp.gt.f32.partialorder %v60_v13, 0.0  ;;  %v92_v22 = vmul.f32 0.2, %v60_v13  ;;  %v64_v23 = vadd.f32 %v177_v2, %v41_v14  ;;  %vm77_vm1 = vcmp.gt.f32.partialorder %v61_v18, 0.0 }
   0x8   :  { %v93_v26 = vmul.f32 0.2, %v61_v18  ;;  %vm78_vm2 = vcmp.gt.f32.partialorder %v62_v19, 0.0  ;;  %v94_v27 = vmul.f32 0.2, %v62_v19  ;;  %vm79_vm3 = vcmp.gt.f32.partialorder %v63_v20, 0.0 }
   0x9   :  { %v108_v28 = vsel %vm76_vm0, %v60_v13, %v92_v22  ;;  %v95_v29 = vmul.f32 0.2, %v63_v20  ;;  %vm80_vm4 = vcmp.gt.f32.partialorder %v64_v23, 0.0  ;;  %v96_v34 = vmul.f32 0.2, %v64_v23 }
   0xa   :  { %124 = vst [vmem:[%s308_s3] sm:$0xff] %v108_v28  ;;  %v109_v32 = vsel %vm77_vm1, %v61_v18, %v93_v26  ;;  %v110_v33 = vsel %vm78_vm2, %v62_v19, %v94_v27  ;;  %vm81_vm5 = vcmp.gt.f32.partialorder %v65_v24, 0.0  ;;  %v97_v36 = vmul.f32 0.2, %v65_v24 }
   0xb   :  { %125 = vst [vmem:[%s308_s3 + $0x8] sm:$0xff] %v109_v32  ;;  %126 = vst [vmem:[%s308_s3 + $0x10] sm:$0xff] %v110_v33  ;;  %v111_v35 = vsel %vm79_vm3, %v63_v20, %v95_v29  ;;  %v112_v39 = vsel %vm80_vm4, %v64_v23, %v96_v34  ;;  %v45_v40 = vmul.f32 %v172_v1, %v22_v25  ;;  %vm82_vm6 = vcmp.gt.f32.partialorder %v66_v37, 0.0 }
   0xc   :  { %127 = vst [vmem:[%s308_s3 + $0x18] sm:$0xff] %v111_v35  ;;  %v46_v41 = vmul.f32 %v172_v1, %v23_v30  ;;  %v47_v42 = vmul.f32 %v172_v1, %v24_v31  ;;  %v113_v46 = vsel %vm81_vm5, %v65_v24, %v97_v36  ;;  %v98_v47 = vmul.f32 0.2, %v66_v37 }
   0xd   :  { %vm83_vm7 = vcmp.gt.f32.partialorder %v67_v38, 0.0  ;;  %v99_v48 = vmul.f32 0.2, %v67_v38  ;;  %v68_v49 = vadd.f32 %v177_v2, %v45_v40 }
   0xe   :  { %v69_v50 = vadd.f32 %v177_v2, %v46_v41  ;;  %v70_v51 = vadd.f32 %v177_v2, %v47_v42  ;;  %v114_v52 = vsel %vm82_vm6, %v66_v37, %v98_v47 }
   0xf   :  { %v115_v57 = vsel %vm83_vm7, %v67_v38, %v99_v48  ;;  %vm84_vm8 = vcmp.gt.f32.partialorder %v68_v49, 0.0  ;;  %v100_v58 = vmul.f32 0.2, %v68_v49 }
  0x10   :  { %vm85_vm9 = vcmp.gt.f32.partialorder %v69_v50, 0.0  ;;  %v101_v59 = vmul.f32 0.2, %v69_v50  ;;  %vm86_vm10 = vcmp.gt.f32.partialorder %v70_v51, 0.0  ;;  %v102_v60 = vmul.f32 0.2, %v70_v51 }
  0x11   :  { %v116_v62 = vsel %vm84_vm8, %v68_v49, %v100_v58 }
  0x12   :  { %v117_v5 = vsel %vm85_vm9, %v69_v50, %v101_v59  ;;  %v118_v6 = vsel %vm86_vm10, %v70_v51, %v102_v60 }
  0x13   :  { %v25_v43 = vld [vmem:[%s305_s0 + $0x58] sm:$0xff]  ;;  %v26_v44 = vld [vmem:[%s305_s0 + $0x60] sm:$0xff]  ;;  %v27_v45 = vld [vmem:[%s305_s0 + $0x68] sm:$0xff] }
  0x14   :  { %128 = vst [vmem:[%s308_s3 + $0x20] sm:$0xff] %v112_v39  ;;  %129 = vst [vmem:[%s308_s3 + $0x28] sm:$0xff] %v113_v46  ;;  %v48_v53 = vmul.f32 %v172_v1, %v25_v43  ;;  %v49_v54 = vmul.f32 %v172_v1, %v26_v44  ;;  %v50_v55 = vmul.f32 %v172_v1, %v27_v45 }
  0x16   :  { %v71_v61 = vadd.f32 %v177_v2, %v48_v53  ;;  %v72_v63 = vadd.f32 %v177_v2, %v49_v54  ;;  %v73_v0 = vadd.f32 %v177_v2, %v50_v55 }
  0x18   :  { %vm87_vm11 = vcmp.gt.f32.partialorder %v71_v61, 0.0  ;;  %v103_v7 = vmul.f32 0.2, %v71_v61  ;;  %vm88_vm12 = vcmp.gt.f32.partialorder %v72_v63, 0.0  ;;  %v104_v8 = vmul.f32 0.2, %v72_v63 }
  0x19   :  { %vm89_vm13 = vcmp.gt.f32.partialorder %v73_v0, 0.0  ;;  %v105_v9 = vmul.f32 0.2, %v73_v0 }
  0x1a   :  { %v119_v10 = vsel %vm87_vm11, %v71_v61, %v103_v7  ;;  %v120_v13 = vsel %vm88_vm12, %v72_v63, %v104_v8 }
  0x1b   :  { %v28_v56 = vld [vmem:[%s305_s0 + $0x70] sm:$0xff]  ;;  %v121_v14 = vsel %vm89_vm13, %v73_v0, %v105_v9 }
  0x1c   :  { %130 = vst [vmem:[%s308_s3 + $0x30] sm:$0xff] %v114_v52  ;;  %131 = vst [vmem:[%s308_s3 + $0x38] sm:$0xff] %v115_v57  ;;  %v51_v3 = vmul.f32 %v172_v1, %v28_v56 }
  0x1e   :  { %v74_v11 = vadd.f32 %v177_v2, %v51_v3 }
  0x20   :  { %vm90_vm14 = vcmp.gt.f32.partialorder %v74_v11, 0.0  ;;  %v106_v15 = vmul.f32 0.2, %v74_v11 }
  0x22   :  { %v122_v17 = vsel %vm90_vm14, %v74_v11, %v106_v15 }
  0x23   :  { %v29_v4 = vld [vmem:[%s305_s0 + $0x78] sm:$0xff] }
  0x24   :  { %132 = vst [vmem:[%s308_s3 + $0x40] sm:$0xff] %v116_v62  ;;  %133 = vst [vmem:[%s308_s3 + $0x48] sm:$0xff] %v117_v5  ;;  %v52_v12 = vmul.f32 %v172_v1, %v29_v4 }
  0x25   :  { %134 = vst [vmem:[%s308_s3 + $0x50] sm:$0xff] %v118_v6  ;;  %135 = vst [vmem:[%s308_s3 + $0x58] sm:$0xff] %v119_v10 }
  0x26   :  { %136 = vst [vmem:[%s308_s3 + $0x60] sm:$0xff] %v120_v13  ;;  %137 = vst [vmem:[%s308_s3 + $0x68] sm:$0xff] %v121_v14  ;;  %v75_v16 = vadd.f32 %v177_v2, %v52_v12 }
  0x27   :  { %138 = vst [vmem:[%s308_s3 + $0x70] sm:$0xff] %v122_v17 }
  0x28   :  { %vm91_vm15 = vcmp.gt.f32.partialorder %v75_v16, 0.0  ;;  %v107_v1 = vmul.f32 0.2, %v75_v16 }
  0x2a   :  { %v123_v18 = vsel %vm91_vm15, %v75_v16, %v107_v1 }
  0x2b   :  { %139 = vst [vmem:[%s308_s3 + $0x78] sm:$0xff] %v123_v18 }

// kernel: discriminator_forward.13
= control target key start
LH: loop header
LB: loop body
LE: loop exit
PB: predicated region body
PF: predicated region fallthrough
CT: control target
= control target key end

     0   :  { %s748_s1 = inlined_call_operand.vmem [shape: bf16[512,128], index: 1, kind: input, shape index: {}]   ;;  %s749_s0 = inlined_call_operand.vmem [shape: bf16[32,512], index: 0, kind: input, shape index: {}]   ;;  %s750_s2 = inlined_call_operand.vmem [shape: f32[32,128], index: 2, kind: output, shape index: {0}]   ;;  %s751_s3 = inlined_call_operand.vmem [shape: f32[8,128], index: 3, kind: output, shape index: {1}]   ;;  %s752_s4 = inlined_call_operand.vmem [shape: f32[8,128], index: 4, kind: output, shape index: {2}]  }
   0x1   :  { %v541_v0 = vld [vmem:[%s748_s1 + $0x78] sm:$0xff]   ;;  %v545_v4 = vld [vmem:[%s748_s1 + $0x70] sm:$0xff]   ;;  %v549_v8 = vld [vmem:[%s748_s1 + $0x68] sm:$0xff]  }
   0x2   :  { %v542_v1 = vld [vmem:[%s748_s1 + $0xf8] sm:$0xff]   ;;  %485 = vmatprep.subr.bf16.mxu0 %v541_v0  ;;  %v546_v5 = vld [vmem:[%s748_s1 + $0xf0] sm:$0xff]   ;;  %v550_v9 = vld [vmem:[%s748_s1 + $0xe8] sm:$0xff]  }
   0x3   :  { %v543_v2 = vld [vmem:[%s748_s1 + $0x38] sm:$0xff]   ;;  %513 = vmatprep.subr.bf16.mxu1 %v542_v1  ;;  %v547_v6 = vld [vmem:[%s748_s1 + $0x30] sm:$0xff]   ;;  %v551_v10 = vld [vmem:[%s748_s1 + $0x28] sm:$0xff]  }
   0x4   :  { %v544_v3 = vld [vmem:[%s748_s1 + $0xb8] sm:$0xff]   ;;  %486 = vmatpush3.bf16.msra.mxu0 %v543_v2  ;;  %v548_v7 = vld [vmem:[%s748_s1 + $0xb0] sm:$0xff]   ;;  %v552_v11 = vld [vmem:[%s748_s1 + $0xa8] sm:$0xff]  }
   0x5   :  { %514 = vmatpush3.bf16.msra.mxu1 %v544_v3  ;;  %487 = vmatprep.subr.bf16.mxu0 %v545_v4  ;;  %v553_v12 = vld [vmem:[%s748_s1 + $0x60] sm:$0xff]   ;;  %v557_v16 = vld [vmem:[%s748_s1 + $0x58] sm:$0xff]   ;;  %v561_v20 = vld [vmem:[%s748_s1 + $0x50] sm:$0xff]  }
   0x6   :  { %515 = vmatprep.subr.bf16.mxu1 %v546_v5  ;;  %v554_v13 = vld [vmem:[%s748_s1 + $0xe0] sm:$0xff]   ;;  %v558_v17 = vld [vmem:[%s748_s1 + $0xd8] sm:$0xff]   ;;  %v562_v21 = vld [vmem:[%s748_s1 + $0xd0] sm:$0xff]  }
   0x7   :  { %v555_v14 = vld [vmem:[%s748_s1 + $0x20] sm:$0xff]   ;;  %v559_v18 = vld [vmem:[%s748_s1 + $0x18] sm:$0xff]   ;;  %v563_v22 = vld [vmem:[%s748_s1 + $0x10] sm:$0xff]  }
   0x8   :  { %488 = vmatpush3.bf16.msra.mxu0 %v547_v6  ;;  %v556_v15 = vld [vmem:[%s748_s1 + $0xa0] sm:$0xff]   ;;  %v560_v19 = vld [vmem:[%s748_s1 + $0x98] sm:$0xff]   ;;  %v564_v23 = vld [vmem:[%s748_s1 + $0x90] sm:$0xff]  }
   0x9   :  { %516 = vmatpush3.bf16.msra.mxu1 %v548_v7  ;;  %489 = vmatprep.subr.bf16.mxu0 %v549_v8  ;;  %v565_v24 = vld [vmem:[%s748_s1 + $0x48] sm:$0xff]   ;;  %v569_v28 = vld [vmem:[%s748_s1 + $0x40] sm:$0xff]  }
   0xa   :  { %517 = vmatprep.subr.bf16.mxu1 %v550_v9  ;;  %v566_v25 = vld [vmem:[%s748_s1 + $0xc8] sm:$0xff]   ;;  %v570_v29 = vld [vmem:[%s748_s1 + $0xc0] sm:$0xff]  }
   0xb   :  { %v567_v26 = vld [vmem:[%s748_s1 + $0x8] sm:$0xff]   ;;  %v571_v30 = vld [vmem:[%s748_s1] sm:$0xff]  }
   0xc   :  { %490 = vmatpush3.bf16.msra.mxu0 %v551_v10  ;;  %v568_v27 = vld [vmem:[%s748_s1 + $0x88] sm:$0xff]   ;;  %v572_v31 = vld [vmem:[%s748_s1 + $0x80] sm:$0xff]  }
   0xd   :  { %518 = vmatpush3.bf16.msra.mxu1 %v552_v11  ;;  %491 = vmatprep.subr.bf16.mxu0 %v553_v12  ;;  %v573_v32 = vld [vmem:[%s749_s0] ss:$16 sps:$4 sm:$0xff]   ;;  %v575_v33 = vld [vmem:[%s749_s0 + $0x4] ss:$16 sps:$4 sm:$0xff]   ;;  %v576_v34 = vld [vmem:[%s749_s0 + $0x8] ss:$16 sps:$4 sm:$0xff]  }
   0xe   :  { %519 = vmatprep.subr.bf16.mxu1 %v554_v13  ;;  %v578_v35 = vld [vmem:[%s749_s0 + $0xc] ss:$16 sps:$4 sm:$0xff]   ;;  %351 = vmatprep.mubr.bf16.mxu0 %v575_v33  ;;  %v579_v36 = vld [vmem:[%s749_s0 + $0x24] ss:$16 sps:$4 sm:$0xff]   ;;  %v583_v38 = vld [vmem:[%s749_s0 + $0x20] ss:$16 sps:$4 sm:$0xff]  }
   0xf   :  { %400 = vmatprep.mubr.bf16.mxu1 %v578_v35  ;;  %v581_v37 = vld [vmem:[%s749_s0 + $0x2c] ss:$16 sps:$4 sm:$0xff]   ;;  %v584_v39 = vld [vmem:[%s749_s0 + $0x28] ss:$16 sps:$4 sm:$0xff]  }
  0x10   :  { %492 = vmatpush3.bf16.msra.mxu0 %v555_v14 }
  0x11   :  { %520 = vmatpush3.bf16.msra.mxu1 %v556_v15  ;;  %493 = vmatprep.subr.bf16.mxu0 %v557_v16 }
  0x12   :  { %521 = vmatprep.subr.bf16.mxu1 %v558_v17 }
  0x14   :  { %494 = vmatpush3.bf16.msra.mxu0 %v559_v18 }
  0x15   :  { %522 = vmatpush3.bf16.msra.mxu1 %v560_v19  ;;  %495 = vmatprep.subr.bf16.mxu0 %v561_v20 }
  0x16   :  { %523 = vmatprep.subr.bf16.mxu1 %v562_v21 }
  0x18   :  { %496 = vmatpush3.bf16.msra.mxu0 %v563_v22 }
  0x19   :  { %524 = vmatpush3.bf16.msra.mxu1 %v564_v23  ;;  %497 = vmatprep.subr.bf16.mxu0 %v565_v24 }
  0x1a   :  { %525 = vmatprep.subr.bf16.mxu1 %v566_v25 }
  0x1c   :  { %498 = vmatpush3.bf16.msra.mxu0 %v567_v26 }
  0x1d   :  { %526 = vmatpush3.bf16.msra.mxu1 %v568_v27  ;;  %499 = vmatprep.subr.bf16.mxu0 %v569_v28 }
  0x1e   :  { %527 = vmatprep.subr.bf16.mxu1 %v570_v29 }
  0x20   :  { %500 = vmatpush3.bf16.msra.mxu0 %v571_v30 }
  0x21   :  { %528 = vmatpush3.bf16.msra.mxu1 %v572_v31 }
  0x23   :  { %352 = vmatmul.mubr.bf16.vlgmr.msra.gmra.mxu0 %v573_v32 }
  0x24   :  { %401 = vmatmul.mubr.bf16.vlgmr.msra.gmra.mxu1 %v576_v34  ;;  %359 = vmatprep.mubr.bf16.mxu0 %v579_v36 }
  0x25   :  { %408 = vmatprep.mubr.bf16.mxu1 %v581_v37 }
  0x2b   :  { %360 = vmatmul.mubr.bf16.gmra.mxu0 %v583_v38 }
  0x2c   :  { %409 = vmatmul.mubr.bf16.gmra.mxu1 %v584_v39 }
  0xe3   :  { %v501_v40 = vpop.f32.mrf.mxu0 }
  0xe4   :  { %v529_v41 = vpop.f32.mrf.mxu1 }
  0xe5   :  { %v502_v42 = vpop.f32.mrf.mxu0 }
  0xe6   :  { %v503_v43 = vadd.f32 %v502_v42, %v501_v40  ;;  %v530_v44 = vpop.f32.mrf.mxu1 }
  0xe7   :  { %v531_v45 = vadd.f32 %v530_v44, %v529_v41  ;;  %v504_v46 = vpop.f32.mrf.mxu0 }
  0xe8   :  { %v532_v47 = vpop.f32.mrf.mxu1 }
  0xe9   :  { %v403_v48 = vadd.f32 %v531_v45, %v503_v43  ;;  %v505_v49 = vpop.f32.mrf.mxu0 }
  0xea   :  { %v506_v50 = vadd.f32 %v505_v49, %v504_v46  ;;  %v533_v51 = vpop.f32.mrf.mxu1 }
  0xeb   :  { %429 = vst [vmem:[%s750_s2] sm:$0xff] %v403_v48  ;;  %v534_v52 = vadd.f32 %v533_v51, %v532_v47  ;;  %v507_v53 = vpop.f32.mrf.mxu0  ;;  %v421_v3 = vmul.f32 %v403_v48, %v403_v48 }
  0xec   :  { %v535_v54 = vpop.f32.mrf.mxu1 }
  0xed   :  { %v406_v55 = vadd.f32 %v534_v52, %v506_v50  ;;  %v508_v56 = vpop.f32.mrf.mxu0 }
  0xee   :  { %v509_v57 = vadd.f32 %v508_v56, %v507_v53  ;;  %v536_v58 = vpop.f32.mrf.mxu1 }
  0xef   :  { %430 = vst [vmem:[%s750_s2 + $0x8] sm:$0xff] %v406_v55  ;;  %v537_v59 = vadd.f32 %v536_v58, %v535_v54  ;;  %v510_v60 = vpop.f32.mrf.mxu0  ;;  %v422_v62 = vmul.f32 %v406_v55, %v406_v55  ;;  %v417_v4 = vadd.f32 %v406_v55, %v403_v48 }
  0xf0   :  { %v538_v61 = vpop.f32.mrf.mxu1 }
  0xf1   :  { %v411_v63 = vadd.f32 %v537_v59, %v509_v57  ;;  %v511_v0 = vpop.f32.mrf.mxu0  ;;  %v425_v7 = vadd.f32 %v422_v62, %v421_v3 }
  0xf2   :  { %v512_v1 = vadd.f32 %v511_v0, %v510_v60  ;;  %v539_v2 = vpop.f32.mrf.mxu1 }
  0xf3   :  { %v423_v5 = vmul.f32 %v411_v63, %v411_v63  ;;  %431 = vst [vmem:[%s750_s2 + $0x10] sm:$0xff] %v411_v63  ;;  %v540_v6 = vadd.f32 %v539_v2, %v538_v61  ;;  %v418_v8 = vadd.f32 %v417_v4, %v411_v63 }
  0xf5   :  { %v414_v9 = vadd.f32 %v540_v6, %v512_v1  ;;  %v426_v10 = vadd.f32 %v425_v7, %v423_v5 }
  0xf7   :  { %v419_v11 = vadd.f32 %v418_v8, %v414_v9  ;;  %v424_v12 = vmul.f32 %v414_v9, %v414_v9  ;;  %432 = vst [vmem:[%s750_s2 + $0x18] sm:$0xff] %v414_v9 }
  0xf9   :  { %420 = vst [vmem:[%s751_s3] sm:$0xff] %v419_v11  ;;  %v427_v13 = vadd.f32 %v426_v10, %v424_v12 }
  0xfb   :  { %428 = vst [vmem:[%s752_s4] sm:$0xff] %v427_v13 }

// kernel: discriminator_forward.14
= control target key start
LH: loop header
LB: loop body
LE: loop exit
PB: predicated region body
PF: predicated region fallthrough
CT: control target
= control target key end

     0   :  { %s112_s0 = inlined_call_operand.vmem [shape: f32[32,128], index: 0, kind: input, shape index: {}, may-alias: {0,3}]   ;;  %s113_s1 = inlined_call_operand.vmem [shape: f32[1,128], index: 1, kind: input, shape index: {}]   ;;  %s114_s2 = inlined_call_operand.vmem [shape: f32[1,128], index: 2, kind: input, shape index: {}]   ;;  %s115_s3 = inlined_call_operand.vmem [shape: f32[32,128], index: 3, kind: output, shape index: {}, may-alias: {0,3}]  }
   0x1   :  { %v14_v0 = vld [vmem:[%s112_s0] sm:$0xff]  ;;  %v15_v4 = vld [vmem:[%s112_s0 + $0x8] sm:$0xff]  ;;  %v16_v5 = vld [vmem:[%s112_s0 + $0x10] sm:$0xff] }
   0x2   :  { %v60_v1 = vld [vmem:[%s113_s1] ss:$0 sm:$0xff]  ;;  %v17_v6 = vld [vmem:[%s112_s0 + $0x18] sm:$0xff] }
   0x3   :  { %v61_v2 = vld [vmem:[%s114_s2] ss:$0 sm:$0xff]  ;;  %v25_v3 = vmul.f32 %v60_v1, %v14_v0  ;;  %v26_v7 = vmul.f32 %v60_v1, %v15_v4  ;;  %v27_v8 = vmul.f32 %v60_v1, %v16_v5  ;;  %v28_v9 = vmul.f32 %v60_v1, %v17_v6 }
   0x5   :  { %v36_v10 = vadd.f32 %v61_v2, %v25_v3  ;;  %v37_v11 = vadd.f32 %v61_v2, %v26_v7  ;;  %v38_v12 = vadd.f32 %v61_v2, %v27_v8  ;;  %v39_v13 = vadd.f32 %v61_v2, %v28_v9 }
   0x7   :  { %vm40_vm0 = vcmp.gt.f32.partialorder %v36_v10, 0.0  ;;  %v44_v14 = vmul.f32 0.2, %v36_v10  ;;  %vm41_vm1 = vcmp.gt.f32.partialorder %v37_v11, 0.0  ;;  %v45_v15 = vmul.f32 0.2, %v37_v11 }
   0x8   :  { %vm42_vm2 = vcmp.gt.f32.partialorder %v38_v12, 0.0  ;;  %v46_v16 = vmul.f32 0.2, %v38_v12  ;;  %vm43_vm3 = vcmp.gt.f32.partialorder %v39_v13, 0.0  ;;  %v47_v18 = vmul.f32 0.2, %v39_v13 }
   0x9   :  { %v48_v17 = vsel %vm40_vm0, %v36_v10, %v44_v14  ;;  %v49_v19 = vsel %vm41_vm1, %v37_v11, %v45_v15 }
   0xa   :  { %52 = vst [vmem:[%s115_s3] sm:$0xff] %v48_v17  ;;  %v50_v20 = vsel %vm42_vm2, %v38_v12, %v46_v16  ;;  %53 = vst [vmem:[%s115_s3 + $0x8] sm:$0xff] %v49_v19  ;;  %v51_v21 = vsel %vm43_vm3, %v39_v13, %v47_v18 }
   0xb   :  { %54 = vst [vmem:[%s115_s3 + $0x10] sm:$0xff] %v50_v20  ;;  %55 = vst [vmem:[%s115_s3 + $0x18] sm:$0xff] %v51_v21 }

// kernel: discriminator_forward.15
= control target key start
LH: loop header
LB: loop body
LE: loop exit
PB: predicated region body
PF: predicated region fallthrough
CT: control target
= control target key end

     0   :  { %s1186_s1 = inlined_call_operand.vmem [shape: bf16[1024,128], index: 1, kind: input, shape index: {}]   ;;  %s1187_s0 = inlined_call_operand.vmem [shape: bf16[8,1024], index: 0, kind: input, shape index: {}]   ;;  %s1188_s2 = inlined_call_operand.vmem [shape: f32[8,128], index: 2, kind: output, shape index: {}]  }
   0x1   :  { %v888_v0 = vld [vmem:[%s1186_s1 + $0x78] sm:$0xff]   ;;  %v892_v4 = vld [vmem:[%s1186_s1 + $0x70] sm:$0xff]   ;;  %v896_v8 = vld [vmem:[%s1186_s1 + $0x68] sm:$0xff]  }
   0x2   :  { %v889_v1 = vld [vmem:[%s1186_s1 + $0xf8] sm:$0xff]   ;;  %800 = vmatprep.subr.bf16.mxu0 %v888_v0  ;;  %v893_v5 = vld [vmem:[%s1186_s1 + $0xf0] sm:$0xff]   ;;  %v897_v9 = vld [vmem:[%s1186_s1 + $0xe8] sm:$0xff]  }
   0x3   :  { %v890_v2 = vld [vmem:[%s1186_s1 + $0x38] sm:$0xff]   ;;  %822 = vmatprep.subr.bf16.mxu1 %v889_v1  ;;  %v894_v6 = vld [vmem:[%s1186_s1 + $0x30] sm:$0xff]   ;;  %v898_v10 = vld [vmem:[%s1186_s1 + $0x28] sm:$0xff]  }
   0x4   :  { %v891_v3 = vld [vmem:[%s1186_s1 + $0xb8] sm:$0xff]   ;;  %801 = vmatpush3.bf16.msra.mxu0 %v890_v2  ;;  %v895_v7 = vld [vmem:[%s1186_s1 + $0xb0] sm:$0xff]   ;;  %v899_v11 = vld [vmem:[%s1186_s1 + $0xa8] sm:$0xff]  }
   0x5   :  { %823 = vmatpush3.bf16.msra.mxu1 %v891_v3  ;;  %802 = vmatprep.subr.bf16.mxu0 %v892_v4  ;;  %v900_v12 = vld [vmem:[%s1186_s1 + $0x60] sm:$0xff]   ;;  %v904_v16 = vld [vmem:[%s1186_s1 + $0x58] sm:$0xff]   ;;  %v908_v20 = vld [vmem:[%s1186_s1 + $0x50] sm:$0xff]  }
   0x6   :  { %824 = vmatprep.subr.bf16.mxu1 %v893_v5  ;;  %v901_v13 = vld [vmem:[%s1186_s1 + $0xe0] sm:$0xff]   ;;  %v905_v17 = vld [vmem:[%s1186_s1 + $0xd8] sm:$0xff]   ;;  %v909_v21 = vld [vmem:[%s1186_s1 + $0xd0] sm:$0xff]  }
   0x7   :  { %v902_v14 = vld [vmem:[%s1186_s1 + $0x20] sm:$0xff]   ;;  %v906_v18 = vld [vmem:[%s1186_s1 + $0x18] sm:$0xff]   ;;  %v910_v22 = vld [vmem:[%s1186_s1 + $0x10] sm:$0xff]  }
   0x8   :  { %803 = vmatpush3.bf16.msra.mxu0 %v894_v6  ;;  %v903_v15 = vld [vmem:[%s1186_s1 + $0xa0] sm:$0xff]   ;;  %v907_v19 = vld [vmem:[%s1186_s1 + $0x98] sm:$0xff]   ;;  %v911_v23 = vld [vmem:[%s1186_s1 + $0x90] sm:$0xff]  }
   0x9   :  { %825 = vmatpush3.bf16.msra.mxu1 %v895_v7  ;;  %804 = vmatprep.subr.bf16.mxu0 %v896_v8  ;;  %v912_v24 = vld [vmem:[%s1186_s1 + $0x48] sm:$0xff]   ;;  %v916_v28 = vld [vmem:[%s1186_s1 + $0x40] sm:$0xff]   ;;  %v924_v38 = vld [vmem:[%s1186_s1 + $0x178] sm:$0xff]  }
   0xa   :  { %826 = vmatprep.subr.bf16.mxu1 %v897_v9  ;;  %v913_v25 = vld [vmem:[%s1186_s1 + $0xc8] sm:$0xff]   ;;  %v917_v29 = vld [vmem:[%s1186_s1 + $0xc0] sm:$0xff]   ;;  %v925_v39 = vld [vmem:[%s1186_s1 + $0x1f8] sm:$0xff]  }
   0xb   :  { %v914_v26 = vld [vmem:[%s1186_s1 + $0x8] sm:$0xff]   ;;  %v918_v30 = vld [vmem:[%s1186_s1] sm:$0xff]   ;;  %v926_v40 = vld [vmem:[%s1186_s1 + $0x138] sm:$0xff]  }
   0xc   :  { %805 = vmatpush3.bf16.msra.mxu0 %v898_v10  ;;  %v915_v27 = vld [vmem:[%s1186_s1 + $0x88] sm:$0xff]   ;;  %v919_v31 = vld [vmem:[%s1186_s1 + $0x80] sm:$0xff]   ;;  %v927_v41 = vld [vmem:[%s1186_s1 + $0x1b8] sm:$0xff]  }
   0xd   :  { %827 = vmatpush3.bf16.msra.mxu1 %v899_v11  ;;  %806 = vmatprep.subr.bf16.mxu0 %v900_v12  ;;  %v12_v32 = vld [vmem:[%s1187_s0] sm:$0xff]  ;;  %v13_v33 = vld [vmem:[%s1187_s0 + $0x8] sm:$0xff]  ;;  %v928_v42 = vld [vmem:[%s1186_s1 + $0x170] sm:$0xff]  }
   0xe   :  { %828 = vmatprep.subr.bf16.mxu1 %v901_v13  ;;  %v727_v34 = vcombine.low %v12_v32, %v12_v32  ;;  %v728_v35 = vcombine.high %v12_v32, %v12_v32  ;;  %v729_v36 = vcombine.low %v13_v33, %v13_v33  ;;  %v730_v37 = vcombine.high %v13_v33, %v13_v33  ;;  %v929_v43 = vld [vmem:[%s1186_s1 + $0x1f0] sm:$0xff]   ;;  %v932_v46 = vld [vmem:[%s1186_s1 + $0x168] sm:$0xff]   ;;  %v936_v50 = vld [vmem:[%s1186_s1 + $0x160] sm:$0xff]  }
   0xf   :  { %v930_v44 = vld [vmem:[%s1186_s1 + $0x130] sm:$0xff]   ;;  %v933_v47 = vld [vmem:[%s1186_s1 + $0x1e8] sm:$0xff]   ;;  %v937_v51 = vld [vmem:[%s1186_s1 + $0x1e0] sm:$0xff]  }
  0x10   :  { %807 = vmatpush3.bf16.msra.mxu0 %v902_v14  ;;  %588 = vmatprep.mubr.bf16.mxu0 %v728_v35  ;;  %v931_v45 = vld [vmem:[%s1186_s1 + $0x1b0] sm:$0xff]   ;;  %v934_v48 = vld [vmem:[%s1186_s1 + $0x128] sm:$0xff]   ;;  %v938_v52 = vld [vmem:[%s1186_s1 + $0x120] sm:$0xff]  }
  0x11   :  { %829 = vmatpush3.bf16.msra.mxu1 %v903_v15  ;;  %808 = vmatprep.subr.bf16.mxu0 %v904_v16  ;;  %v935_v49 = vld [vmem:[%s1186_s1 + $0x1a8] sm:$0xff]   ;;  %v939_v53 = vld [vmem:[%s1186_s1 + $0x1a0] sm:$0xff]   ;;  %v940_v54 = vld [vmem:[%s1186_s1 + $0x158] sm:$0xff]  }
  0x12   :  { %830 = vmatprep.subr.bf16.mxu1 %v905_v17  ;;  %628 = vmatprep.mubr.bf16.mxu1 %v730_v37  ;;  %v941_v55 = vld [vmem:[%s1186_s1 + $0x1d8] sm:$0xff]   ;;  %v944_v58 = vld [vmem:[%s1186_s1 + $0x150] sm:$0xff]   ;;  %v948_v62 = vld [vmem:[%s1186_s1 + $0x148] sm:$0xff]  }
  0x13   :  { %v942_v56 = vld [vmem:[%s1186_s1 + $0x118] sm:$0xff]   ;;  %v945_v59 = vld [vmem:[%s1186_s1 + $0x1d0] sm:$0xff]   ;;  %v949_v63 = vld [vmem:[%s1186_s1 + $0x1c8] sm:$0xff]  }
  0x14   :  { %809 = vmatpush3.bf16.msra.mxu0 %v906_v18  ;;  %v943_v57 = vld [vmem:[%s1186_s1 + $0x198] sm:$0xff]   ;;  %v946_v60 = vld [vmem:[%s1186_s1 + $0x110] sm:$0xff]   ;;  %v950_v0 = vld [vmem:[%s1186_s1 + $0x108] sm:$0xff]  }
  0x15   :  { %831 = vmatpush3.bf16.msra.mxu1 %v907_v19  ;;  %810 = vmatprep.subr.bf16.mxu0 %v908_v20  ;;  %v947_v61 = vld [vmem:[%s1186_s1 + $0x190] sm:$0xff]   ;;  %v951_v1 = vld [vmem:[%s1186_s1 + $0x188] sm:$0xff]   ;;  %v952_v2 = vld [vmem:[%s1186_s1 + $0x140] sm:$0xff]  }
  0x16   :  { %832 = vmatprep.subr.bf16.mxu1 %v909_v21  ;;  %v953_v3 = vld [vmem:[%s1186_s1 + $0x1c0] sm:$0xff]   ;;  %v14_v6 = vld [vmem:[%s1187_s0 + $0x10] sm:$0xff]  ;;  %v15_v9 = vld [vmem:[%s1187_s0 + $0x18] sm:$0xff] }
  0x17   :  { %v954_v4 = vld [vmem:[%s1186_s1 + $0x100] sm:$0xff]   ;;  %v731_v7 = vcombine.low %v14_v6, %v14_v6  ;;  %v732_v8 = vcombine.high %v14_v6, %v14_v6  ;;  %v733_v10 = vcombine.low %v15_v9, %v15_v9  ;;  %v734_v11 = vcombine.high %v15_v9, %v15_v9 }
  0x18   :  { %811 = vmatpush3.bf16.msra.mxu0 %v910_v22  ;;  %v955_v5 = vld [vmem:[%s1186_s1 + $0x180] sm:$0xff]  }
  0x19   :  { %833 = vmatpush3.bf16.msra.mxu1 %v911_v23  ;;  %812 = vmatprep.subr.bf16.mxu0 %v912_v24 }
  0x1a   :  { %834 = vmatprep.subr.bf16.mxu1 %v913_v25 }
  0x1c   :  { %813 = vmatpush3.bf16.msra.mxu0 %v914_v26 }
  0x1d   :  { %835 = vmatpush3.bf16.msra.mxu1 %v915_v27  ;;  %814 = vmatprep.subr.bf16.mxu0 %v916_v28 }
  0x1e   :  { %836 = vmatprep.subr.bf16.mxu1 %v917_v29 }
  0x20   :  { %815 = vmatpush3.bf16.msra.mxu0 %v918_v30 }
  0x21   :  { %837 = vmatpush3.bf16.msra.mxu1 %v919_v31  ;;  %844 = vmatprep.subr.bf16.mxu0 %v924_v38 }
  0x22   :  { %866 = vmatprep.subr.bf16.mxu1 %v925_v39 }
  0x23   :  { %589 = vmatmul.mubr.bf16.vlgmr.msra.gmra.mxu0 %v727_v34 }
  0x24   :  { %629 = vmatmul.mubr.bf16.vlgmr.msra.gmra.mxu1 %v729_v36  ;;  %845 = vmatpush3.bf16.msra.mxu0 %v926_v40 }
  0x25   :  { %867 = vmatpush3.bf16.msra.mxu1 %v927_v41  ;;  %846 = vmatprep.subr.bf16.mxu0 %v928_v42 }
  0x26   :  { %868 = vmatprep.subr.bf16.mxu1 %v929_v43  ;;  %668 = vmatprep.mubr.bf16.mxu0 %v732_v8 }
  0x27   :  { %708 = vmatprep.mubr.bf16.mxu1 %v734_v11 }
  0x28   :  { %847 = vmatpush3.bf16.msra.mxu0 %v930_v44 }
  0x29   :  { %869 = vmatpush3.bf16.msra.mxu1 %v931_v45  ;;  %848 = vmatprep.subr.bf16.mxu0 %v932_v46 }
  0x2a   :  { %870 = vmatprep.subr.bf16.mxu1 %v933_v47 }
  0x2c   :  { %849 = vmatpush3.bf16.msra.mxu0 %v934_v48 }
  0x2d   :  { %871 = vmatpush3.bf16.msra.mxu1 %v935_v49  ;;  %850 = vmatprep.subr.bf16.mxu0 %v936_v50 }
  0x2e   :  { %872 = vmatprep.subr.bf16.mxu1 %v937_v51 }
  0x30   :  { %851 = vmatpush3.bf16.msra.mxu0 %v938_v52 }
  0x31   :  { %873 = vmatpush3.bf16.msra.mxu1 %v939_v53  ;;  %852 = vmatprep.subr.bf16.mxu0 %v940_v54 }
  0x32   :  { %874 = vmatprep.subr.bf16.mxu1 %v941_v55 }
  0x34   :  { %853 = vmatpush3.bf16.msra.mxu0 %v942_v56 }
  0x35   :  { %875 = vmatpush3.bf16.msra.mxu1 %v943_v57  ;;  %854 = vmatprep.subr.bf16.mxu0 %v944_v58 }
  0x36   :  { %876 = vmatprep.subr.bf16.mxu1 %v945_v59 }
  0x38   :  { %855 = vmatpush3.bf16.msra.mxu0 %v946_v60 }
  0x39   :  { %877 = vmatpush3.bf16.msra.mxu1 %v947_v61  ;;  %856 = vmatprep.subr.bf16.mxu0 %v948_v62 }
  0x3a   :  { %878 = vmatprep.subr.bf16.mxu1 %v949_v63 }
  0x3c   :  { %857 = vmatpush3.bf16.msra.mxu0 %v950_v0 }
  0x3d   :  { %879 = vmatpush3.bf16.msra.mxu1 %v951_v1  ;;  %858 = vmatprep.subr.bf16.mxu0 %v952_v2 }
  0x3e   :  { %880 = vmatprep.subr.bf16.mxu1 %v953_v3 }
  0x40   :  { %859 = vmatpush3.bf16.msra.mxu0 %v954_v4 }
  0x41   :  { %881 = vmatpush3.bf16.msra.mxu1 %v955_v5 }
  0x43   :  { %669 = vmatmul.mubr.bf16.vlgmr.msra.gmra.mxu0 %v731_v7 }
  0x44   :  { %709 = vmatmul.mubr.bf16.vlgmr.msra.gmra.mxu1 %v733_v10 }
  0xe3   :  { %v816_v12 = vpop.f32.mrf.mxu0 }
  0xe4   :  { %v838_v13 = vpop.f32.mrf.mxu1 }
  0xe5   :  { %v817_v14 = vpop.f32.mrf.mxu0 }
  0xe6   :  { %v839_v15 = vpop.f32.mrf.mxu1  ;;  %v818_v20 = vadd.f32 %v817_v14, %v816_v12 }
  0xe7   :  { %v819_v16 = vpop.f32.mrf.mxu0  ;;  %v840_v21 = vadd.f32 %v839_v15, %v838_v13 }
  0xe8   :  { %v841_v17 = vpop.f32.mrf.mxu1 }
  0xe9   :  { %v820_v18 = vpop.f32.mrf.mxu0  ;;  %v631_v26 = vadd.f32 %v840_v21, %v818_v20 }
  0xea   :  { %v842_v19 = vpop.f32.mrf.mxu1 }
 0x103   :  { %v860_v22 = vpop.f32.mrf.mxu0 }
 0x104   :  { %v882_v23 = vpop.f32.mrf.mxu1 }
 0x105   :  { %v861_v24 = vpop.f32.mrf.mxu0 }
 0x106   :  { %v883_v25 = vpop.f32.mrf.mxu1  ;;  %v862_v27 = vadd.f32 %v861_v24, %v860_v22 }
 0x107   :  { %v863_v28 = vpop.f32.mrf.mxu0  ;;  %v884_v31 = vadd.f32 %v883_v25, %v882_v23 }
 0x108   :  { %v885_v29 = vpop.f32.mrf.mxu1  ;;  %v671_v30 = vadd.f32 %v862_v27, %v631_v26 }
 0x109   :  { %v864_v32 = vpop.f32.mrf.mxu0 }
 0x10a   :  { %v886_v33 = vpop.f32.mrf.mxu1  ;;  %v711_v34 = vadd.f32 %v884_v31, %v671_v30 }
 0x10c   :  { %v799_v35 = vmul.f32 -1.442695, %v711_v34 }
 0x10e   :  { %960 = vpow2.f32 %v799_v35 }
 0x11b   :  { %v961_v36 = vpop.eup %960 }
 0x11c   :  { %v719_v37 = vadd.f32 1.0, %v961_v36 }
 0x11e   :  { %962 = vrcp.f32 %v719_v37 }
 0x12b   :  { %v963_v38 = vpop.eup %962 }
 0x12c   :  { %722 = vst [vmem:[%s1188_s2] sm:$0xff] %v963_v38 }

</bundles_post_ra>
